<compile_context>
chip_gen: v5e
topology: v5e:2x2
jax: 0.10.0
libtpu: 0.0.40
codegen_flags: <defaults>
</compile_context>

<pallas_src>
import functools
import math

import numpy as np
import jax
import jax.numpy as jnp
from jax.experimental import pallas as pl
from jax.experimental.pallas import tpu as pltpu

# ----------------- config (small synthetic GeneralizedRCNN) -----------------
IMG_SIZE = 32
BACKBONE_CHANNELS = 32          # backbone.out_channels
STEM_CHANNELS = 16
NUM_ANCHORS = 3                 # anchors per location
NUM_CLASSES = 5                 # including background class 0
NUM_PROPOSALS = 8               # proposals kept per image (post top-k)
MLP_DIM = 64                    # box-head MLP width
LEVEL_STRIDES = (4, 8)          # two FPN-style levels: 8x8 and 4x4 feature maps
HEAD_PAD = 128                  # lane-dense width for packed head outputs
BBOX_XFORM_CLIP = math.log(1000.0 / 16.0)

STEM_H = STEM_W = IMG_SIZE // 2                 # 16x16 stem map
L1_H = L1_W = IMG_SIZE // LEVEL_STRIDES[0]      # 8x8 level-0 map
L2_H = L2_W = IMG_SIZE // LEVEL_STRIDES[1]      # 4x4 level-1 map


# --------------------- compile-time conv tap selection ----------------------
@functools.lru_cache(maxsize=None)
def _conv3x3_select_np(H, W, stride):
    """One-hot gather matrices [9, Ho*Wo, H*W] for a single-image 3x3 'same' conv.
    Tap t = dy*3+dx selects input (y*stride+dy-1, x*stride+dx-1); all-zero rows realize
    the zero padding.  Built with numpy at trace time -> baked-in constants."""
    Ho = (H - 1) // stride + 1
    Wo = (W - 1) // stride + 1
    sel = np.zeros((9, Ho * Wo, H * W), np.float32)
    for oy in range(Ho):
        for ox in range(Wo):
            o = oy * Wo + ox
            for dy in range(3):
                for dx in range(3):
                    iy = oy * stride + dy - 1
                    ix = ox * stride + dx - 1
                    if 0 <= iy < H and 0 <= ix < W:
                        sel[dy * 3 + dx, o, iy * W + ix] = 1.0
    return sel


def _sel_const(H, W, stride):
    return jnp.asarray(_conv3x3_select_np(H, W, stride), dtype=jnp.bfloat16)


# --------------------------- fused backbone + RPN ----------------------------
def _backbone_rpn_kernel(patch_ref, stem_w_ref, stem_b_ref,
                         sel_c1_ref, c1_w_ref, c1_b_ref,
                         sel_c2_ref, c2_w_ref, c2_b_ref,
                         sel_r1_ref, sel_r2_ref,
                         rpn_cw_ref, rpn_cb_ref,
                         rpn_hw_ref, rpn_hb_ref,
                         feat_ref, rpn_ref):
    """One grid step == one image. stem -> c1 -> c2 -> RPN tower -> packed RPN heads,
    all activations stay in VMEM/vregs."""

    def conv3x3(x_bf16, sel_ref, w_ref, b_ref):
        # 9 shift-and-accumulate matmuls; sel[t] gathers the (strided) shifted rows.
        n_out = sel_ref.shape[1]
        c_out = w_ref.shape[2]
        acc = jnp.zeros((n_out, c_out), jnp.float32)
        for t in range(9):
            tap = jnp.dot(sel_ref[t], x_bf16,
                          preferred_element_type=jnp.float32).astype(jnp.bfloat16)
            acc = acc + jnp.dot(tap, w_ref[t], preferred_element_type=jnp.float32)
        return jnp.maximum(acc + b_ref[...], 0.0)

    # stem 3x3/s2 conv on the raw image, lowered to one im2col GEMM (+ReLU).
    stem = jnp.dot(patch_ref[...], stem_w_ref[...], preferred_element_type=jnp.float32)
    stem = jnp.maximum(stem + stem_b_ref[...], 0.0).astype(jnp.bfloat16)        # [256,16]

    c1 = conv3x3(stem, sel_c1_ref, c1_w_ref, c1_b_ref).astype(jnp.bfloat16)     # [64, 32]
    feat_ref[...] = c1                                                          # level-0 feats
    c2 = conv3x3(c1, sel_c2_ref, c2_w_ref, c2_b_ref).astype(jnp.bfloat16)       # [16, 32]

    # Shared RPN tower (3x3/s1 conv + ReLU) on both levels, then packed heads.
    t1 = conv3x3(c1, sel_r1_ref, rpn_cw_ref, rpn_cb_ref).astype(jnp.bfloat16)   # [64, 32]
    t2 = conv3x3(c2, sel_r2_ref, rpn_cw_ref, rpn_cb_ref).astype(jnp.bfloat16)   # [16, 32]

    hw = rpn_hw_ref[...]
    hb = rpn_hb_ref[...]

    def rpn_head(tower):
        h = jnp.dot(tower, hw, preferred_element_type=jnp.float32) + hb         # [n, 128]
        lane = jax.lax.broadcasted_iota(jnp.int32, h.shape, 1)
        sig = pl.reciprocal(1.0 + jnp.exp(-h), approx=True)   # objectness sigmoid (EUP)
        return jnp.where(lane < NUM_ANCHORS, sig, h).astype(jnp.bfloat16)

    n1 = sel_r1_ref.shape[1]
    n2 = sel_r2_ref.shape[1]
    rpn_ref[0, 0:n1, :] = rpn_head(t1)          # full lane-dense stores, sublane aligned
    rpn_ref[0, n1:n1 + n2, :] = rpn_head(t2)


def backbone_rpn_fused(patches, q, B):
    n_patch = patches.shape[0] // B
    sel_c1 = _sel_const(STEM_H, STEM_W, 2)      # [9, 64, 256]
    sel_c2 = _sel_const(L1_H, L1_W, 2)          # [9, 16, 64]
    sel_r1 = _sel_const(L1_H, L1_W, 1)          # [9, 64, 64]
    sel_r2 = _sel_const(L2_H, L2_W, 1)          # [9, 16, 16]
    n1 = L1_H * L1_W
    n2 = L2_H * L2_W

    consts = (q["stem_w"], q["stem_b"], sel_c1, q["c1_w"], q["c1_b"],
              sel_c2, q["c2_w"], q["c2_b"], sel_r1, sel_r2,
              q["rpn_conv_w"], q["rpn_conv_b"], q["rpn_head_w"], q["rpn_head_b"])

    def _const_spec(a):
        if a.ndim == 3:
            return pl.BlockSpec(a.shape, lambda b: (0, 0, 0))
        return pl.BlockSpec(a.shape, lambda b: (0, 0))

    feat, rpn_out = pl.pallas_call(
        _backbone_rpn_kernel,
        out_shape=(jax.ShapeDtypeStruct((B * n1, BACKBONE_CHANNELS), jnp.bfloat16),
                   jax.ShapeDtypeStruct((B, n1 + n2, HEAD_PAD), jnp.bfloat16)),
        grid=(B,),
        in_specs=[pl.BlockSpec((n_patch, patches.shape[1]), lambda b: (b, 0))]
                 + [_const_spec(a) for a in consts],
        out_specs=(pl.BlockSpec((n1, BACKBONE_CHANNELS), lambda b: (b, 0)),
                   pl.BlockSpec((1, n1 + n2, HEAD_PAD), lambda b: (b, 0, 0))),
        compiler_params=pltpu.CompilerParams(dimension_semantics=("parallel",)),
    )(patches.astype(jnp.bfloat16), *consts)
    return feat, rpn_out


# ------------------------------ fused box head --------------------------------
def _box_head_kernel(rois_ref, feat_ref, fc1w_ref, fc1b_ref, fc2w_ref, fc2b_ref,
                     hw_ref, hb_ref, o_ref, *, B, H, W):
    """ROI mask-pool (one mask @ feat matmul) -> fc1 -> fc2 -> packed cls/bbox head ->
    lane-masked softmax; a single lane-dense [NR, 128] store."""
    BHW = B * H * W
    rois = rois_ref[...]                                     # [NR, 8] f32
    bidx = rois[:, 0:1]
    x1 = rois[:, 1:2]
    y1 = rois[:, 2:3]
    x2 = rois[:, 3:4]
    y2 = rois[:, 4:5]

    pos = jax.lax.broadcasted_iota(jnp.int32, (1, BHW), 1)
    sb = (H * W).bit_length() - 1
    sy = W.bit_length() - 1
    pb = (pos >> sb).astype(jnp.float32)
    py = ((pos >> sy) & (H - 1)).astype(jnp.float32)
    px = (pos & (W - 1)).astype(jnp.float32)

    inside = (pb == bidx) & (px >= x1) & (px <= x2) & (py >= y1) & (py <= y2)
    mask = inside.astype(jnp.float32)                        # [NR, BHW]
    cnt = jnp.maximum(jnp.sum(mask, axis=-1, keepdims=True), 1.0)
    maskn = (mask * pl.reciprocal(cnt, approx=True)).astype(jnp.bfloat16)

    pooled = jnp.dot(maskn, feat_ref[...], preferred_element_type=jnp.float32)   # [NR, C]
    h1 = jnp.maximum(jnp.dot(pooled.astype(jnp.bfloat16), fc1w_ref[...],
                             preferred_element_type=jnp.float32) + fc1b_ref[...], 0.0)
    h2 = jnp.maximum(jnp.dot(h1.astype(jnp.bfloat16), fc2w_ref[...],
                             preferred_element_type=jnp.float32) + fc2b_ref[...], 0.0)
    head = jnp.dot(h2.astype(jnp.bfloat16), hw_ref[...],
                   preferred_element_type=jnp.float32) + hb_ref[...]             # [NR, 128]

    # Lane-masked softmax over the class lanes; one full dense store.
    lane = jax.lax.broadcasted_iota(jnp.int32, head.shape, 1)
    is_cls = lane < NUM_CLASSES
    cls_m = jnp.where(is_cls, head, -1e30)
    m = jnp.max(cls_m, axis=-1, keepdims=True)
    e = jnp.where(is_cls, jnp.exp(cls_m - m), 0.0)
    probs = e * pl.reciprocal(jnp.sum(e, axis=-1, keepdims=True), approx=True)
    o_ref[...] = jnp.where(is_cls, probs, head)


def box_head_fused(rois, feat_flat, q, B, H, W):
    assert (H & (H - 1)) == 0 and (W & (W - 1)) == 0, "feature dims must be powers of two"
    NR = rois.shape[0]
    kernel = functools.partial(_box_head_kernel, B=B, H=H, W=W)
    return pl.pallas_call(
        kernel,
        out_shape=jax.ShapeDtypeStruct((NR, HEAD_PAD), jnp.float32),
    )(rois.astype(jnp.float32), feat_flat.astype(jnp.bfloat16),
      q["fc1_w"], q["fc1_b"], q["fc2_w"], q["fc2_b"],
      q["box_head_w"], q["box_head_b"])


# ------------------------------ conv helpers ---------------------------------
def im2col(x, ksize, stride, pad):
    """Host-side im2col, used ONLY for the raw input image (tiny, not an intermediate)."""
    B, H, W, C = x.shape
    xp = jnp.pad(x, ((0, 0), (pad, pad), (pad, pad), (0, 0)))
    Ho = (H + 2 * pad - ksize) // stride + 1
    Wo = (W + 2 * pad - ksize) // stride + 1
    cols = []
    for dy in range(ksize):
        for dx in range(ksize):
            cols.append(xp[:, dy:dy + stride * Ho:stride, dx:dx + stride * Wo:stride, :])
    patches = jnp.concatenate(cols, axis=-1)                 # [B, Ho, Wo, k*k*C]
    return patches.reshape(B * Ho * Wo, ksize * ksize * C), (B, Ho, Wo)


# ------------------------------- parameters ----------------------------------
def init_params(key):
    keys = jax.random.split(key, 10)
    s = 0.05
    C = BACKBONE_CHANNELS
    p = {
        "stem_w": s * jax.random.normal(keys[0], (3, 3, 3, STEM_CHANNELS)),
        "stem_b": jnp.zeros((STEM_CHANNELS,)),
        "c1_w": s * jax.random.normal(keys[1], (3, 3, STEM_CHANNELS, C)),
        "c1_b": jnp.zeros((C,)),
        "c2_w": s * jax.random.normal(keys[2], (3, 3, C, C)),
        "c2_b": jnp.zeros((C,)),
        "rpn_conv_w": s * jax.random.normal(keys[3], (3, 3, C, C)),
        "rpn_conv_b": jnp.zeros((C,)),
        "rpn_cls_w": s * jax.random.normal(keys[4], (C, NUM_ANCHORS)),
        "rpn_cls_b": jnp.zeros((NUM_ANCHORS,)),
        "rpn_bbox_w": s * jax.random.normal(keys[5], (C, NUM_ANCHORS * 4)),
        "rpn_bbox_b": jnp.zeros((NUM_ANCHORS * 4,)),
        "fc1_w": s * jax.random.normal(keys[6], (C, MLP_DIM)),
        "fc1_b": jnp.zeros((MLP_DIM,)),
        "fc2_w": s * jax.random.normal(keys[7], (MLP_DIM, MLP_DIM)),
        "fc2_b": jnp.zeros((MLP_DIM,)),
        "cls_w": s * jax.random.normal(keys[8], (MLP_DIM, NUM_CLASSES)),
        "cls_b": jnp.zeros((NUM_CLASSES,)),
        "bbox_w": s * jax.random.normal(keys[9], (MLP_DIM, NUM_CLASSES * 4)),
        "bbox_b": jnp.zeros((NUM_CLASSES * 4,)),
    }
    return jax.tree_util.tree_map(lambda a: a.astype(jnp.float32), p)


def prepare_params(p):
    """Pack sibling heads into one lane-dense (N=128) matrix each, reshape conv weights to
    per-tap [9, Cin, Cout] form, bf16 matmul operands, f32 (1,N) biases."""
    bf = lambda a: a.astype(jnp.bfloat16)
    b2 = lambda a: a.reshape(1, -1).astype(jnp.float32)
    C = BACKBONE_CHANNELS
    q = {
        "stem_w": bf(p["stem_w"].reshape(-1, STEM_CHANNELS)),            # [27, 16]
        "stem_b": b2(p["stem_b"]),
        "c1_w": bf(p["c1_w"].reshape(9, STEM_CHANNELS, C)),
        "c1_b": b2(p["c1_b"]),
        "c2_w": bf(p["c2_w"].reshape(9, C, C)),
        "c2_b": b2(p["c2_b"]),
        "rpn_conv_w": bf(p["rpn_conv_w"].reshape(9, C, C)),
        "rpn_conv_b": b2(p["rpn_conv_b"]),
        "fc1_w": bf(p["fc1_w"]),
        "fc1_b": b2(p["fc1_b"]),
        "fc2_w": bf(p["fc2_w"]),
        "fc2_b": b2(p["fc2_b"]),
    }
    rpn_hw = jnp.concatenate([p["rpn_cls_w"], p["rpn_bbox_w"]], axis=1)   # [C, 15]
    rpn_hb = jnp.concatenate([p["rpn_cls_b"], p["rpn_bbox_b"]], axis=0)
    q["rpn_head_w"] = bf(jnp.pad(rpn_hw, ((0, 0), (0, HEAD_PAD - rpn_hw.shape[1]))))
    q["rpn_head_b"] = b2(jnp.pad(rpn_hb, (0, HEAD_PAD - rpn_hb.shape[0])))

    box_hw = jnp.concatenate([p["cls_w"], p["bbox_w"]], axis=1)           # [MLP, 25]
    box_hb = jnp.concatenate([p["cls_b"], p["bbox_b"]], axis=0)
    q["box_head_w"] = bf(jnp.pad(box_hw, ((0, 0), (0, HEAD_PAD - box_hw.shape[1]))))
    q["box_head_b"] = b2(jnp.pad(box_hb, (0, HEAD_PAD - box_hb.shape[0])))
    return q


# ------------------------------ model pieces ----------------------------------
def make_anchors(h, w, stride):
    ys = (jnp.arange(h, dtype=jnp.float32) + 0.5) * stride
    xs = (jnp.arange(w, dtype=jnp.float32) + 0.5) * stride
    cy, cx = jnp.meshgrid(ys, xs, indexing="ij")
    sizes = jnp.array([2.0, 4.0, 8.0], jnp.float32) * stride
    cx = cx[:, :, None]
    cy = cy[:, :, None]
    half = sizes[None, None, :] / 2.0
    anchors = jnp.stack([cx - half, cy - half, cx + half, cy + half], axis=-1)
    return anchors.reshape(-1, 4)


def decode_boxes(deltas, boxes):
    # TODO(synk): bbox_reg_weights scaling from the reference config is omitted.
    w = boxes[..., 2] - boxes[..., 0]
    h = boxes[..., 3] - boxes[..., 1]
    cx = boxes[..., 0] + 0.5 * w
    cy = boxes[..., 1] + 0.5 * h
    dx, dy = deltas[..., 0], deltas[..., 1]
    dw = jnp.clip(deltas[..., 2], -BBOX_XFORM_CLIP, BBOX_XFORM_CLIP)
    dh = jnp.clip(deltas[..., 3], -BBOX_XFORM_CLIP, BBOX_XFORM_CLIP)
    pcx = dx * w + cx
    pcy = dy * h + cy
    pw = jnp.exp(dw) * w
    ph = jnp.exp(dh) * h
    out = jnp.stack([pcx - 0.5 * pw, pcy - 0.5 * ph, pcx + 0.5 * pw, pcy + 0.5 * ph], axis=-1)
    return jnp.clip(out, 0.0, IMG_SIZE - 1.0)


def rpn_postprocess(rpn_out, B):
    """RPN decode + proposal selection (objectness sigmoid already applied in-kernel)."""
    levels = ((L1_H, L1_W, LEVEL_STRIDES[0], 0),
              (L2_H, L2_W, LEVEL_STRIDES[1], L1_H * L1_W))
    all_scores, all_boxes = [], []
    for (H, W, stride, off) in levels:
        o = rpn_out[:, off:off + H * W, :].astype(jnp.float32).reshape(B, H, W, HEAD_PAD)
        scores = o[..., :NUM_ANCHORS].reshape(B, -1)
        deltas = o[..., NUM_ANCHORS:NUM_ANCHORS * 5].reshape(B, H * W * NUM_ANCHORS, 4)
        anchors = make_anchors(H, W, stride)
        boxes = decode_boxes(deltas, anchors[None, :, :])
        all_scores.append(scores)
        all_boxes.append(boxes)
    scores = jnp.concatenate(all_scores, axis=1)
    boxes = jnp.concatenate(all_boxes, axis=1)
    # TODO(synk): NMS on proposals has no clean Pallas/TPU equivalent; top-k selection only.
    _, idx = jax.lax.top_k(scores, NUM_PROPOSALS)
    proposals = jnp.take_along_axis(boxes, idx[..., None], axis=1)        # [B, P, 4]
    proposal_losses = {}  # TODO(synk): training-mode RPN losses not implemented.
    return proposals, proposal_losses


def roi_heads(feat_flat, proposals, q, B):
    # TODO(synk): bilinear ROIAlign + FPN level assignment simplified to a masked avg-pool
    # on level 0 (a single mask @ feat matmul inside the fused box-head kernel).
    H, W, C = L1_H, L1_W, BACKBONE_CHANNELS
    P = proposals.shape[1]
    stride = LEVEL_STRIDES[0]

    boxes_f = proposals / stride
    x1 = jnp.clip(jnp.floor(boxes_f[..., 0]), 0, W - 1)
    y1 = jnp.clip(jnp.floor(boxes_f[..., 1]), 0, H - 1)
    x2 = jnp.maximum(jnp.clip(jnp.floor(boxes_f[..., 2]), 0, W - 1), x1)
    y2 = jnp.maximum(jnp.clip(jnp.floor(boxes_f[..., 3]), 0, H - 1), y1)
    batch_idx = jnp.repeat(jnp.arange(B, dtype=jnp.float32), P)
    rois = jnp.stack([batch_idx, x1.reshape(-1), y1.reshape(-1),
                      x2.reshape(-1), y2.reshape(-1)], axis=-1)
    rois = jnp.pad(rois, ((0, 0), (0, 3)))                   # [B*P, 8] f32

    out = box_head_fused(rois, feat_flat, q, B, H, W)        # [B*P, 128] (Pallas, fused)

    probs = out[:, :NUM_CLASSES]
    box_deltas = out[:, NUM_CLASSES:NUM_CLASSES * 5]
    labels = jnp.argmax(probs[:, 1:], axis=-1) + 1           # skip background class
    scores = jnp.take_along_axis(probs, labels[:, None], axis=1)[:, 0]
    deltas_per_cls = box_deltas.reshape(-1, NUM_CLASSES, 4)
    sel_deltas = jnp.take_along_axis(deltas_per_cls, labels[:, None, None], axis=1)[:, 0, :]
    det_boxes = decode_boxes(sel_deltas, proposals.reshape(-1, 4))

    result = {
        "boxes": det_boxes.reshape(B, P, 4),
        "scores": scores.reshape(B, P),
        "labels": labels.reshape(B, P),
    }
    detector_losses = {}  # TODO(synk): training-mode detector losses not implemented.
    return None, result, detector_losses


def generalized_rcnn_forward(images_nchw, params, targets=None, training=False):
    if training and targets is None:
        raise ValueError("In training mode, targets should be passed")
    q = prepare_params(params)
    B = images_nchw.shape[0]
    x = jnp.transpose(images_nchw, (0, 2, 3, 1)).astype(jnp.bfloat16)    # NCHW -> NHWC bf16
    # Host-side im2col of the network INPUT only (tiny); all downstream conv taps are
    # built in-kernel from VMEM-resident activations.
    patches, _ = im2col(x, 3, 2, 1)                                      # [B*256, 27]
    feat_flat, rpn_out = backbone_rpn_fused(patches, q, B)               # Pallas call #1
    proposals, proposal_losses = rpn_postprocess(rpn_out, B)
    _, result, detector_losses = roi_heads(feat_flat, proposals, q, B)   # Pallas call #2
    if training:
        losses = {}
        losses.update(detector_losses)
        losses.update(proposal_losses)
        return losses
    return result


# ---------------------------------- main --------------------------------------
if __name__ == "__main__":
    key = jax.random.PRNGKey(0)
    k_img, k_param = jax.random.split(key)
    images = jax.random.normal(k_img, (2, 3, IMG_SIZE, IMG_SIZE), dtype=jnp.float32)
    params = init_params(k_param)

    forward = jax.jit(functools.partial(generalized_rcnn_forward, training=False))
    result = forward(images, params)
    result = jax.tree_util.tree_map(jax.block_until_ready, result)

    assert result["boxes"].shape == (2, NUM_PROPOSALS, 4)
    assert result["scores"].shape == (2, NUM_PROPOSALS)
    assert result["labels"].shape == (2, NUM_PROPOSALS)
    assert bool(jnp.all(jnp.isfinite(result["boxes"])))
    assert bool(jnp.all(jnp.isfinite(result["scores"])))
    print("KERNEL_OK")
</pallas_src>

<mosaic_0001>
module attributes {stable_mosaic.version = 11 : i64} {
  func.func @_backbone_rpn_kernel(%arg0: i32, %arg1: memref<256x27xbf16, #tpu.memory_space<vmem>>, %arg2: memref<27x16xbf16, #tpu.memory_space<vmem>>, %arg3: memref<1x16xf32, #tpu.memory_space<vmem>>, %arg4: memref<9x64x256xbf16, #tpu.memory_space<vmem>>, %arg5: memref<9x16x32xbf16, #tpu.memory_space<vmem>>, %arg6: memref<1x32xf32, #tpu.memory_space<vmem>>, %arg7: memref<9x16x64xbf16, #tpu.memory_space<vmem>>, %arg8: memref<9x32x32xbf16, #tpu.memory_space<vmem>>, %arg9: memref<1x32xf32, #tpu.memory_space<vmem>>, %arg10: memref<9x64x64xbf16, #tpu.memory_space<vmem>>, %arg11: memref<9x16x16xbf16, #tpu.memory_space<vmem>>, %arg12: memref<9x32x32xbf16, #tpu.memory_space<vmem>>, %arg13: memref<1x32xf32, #tpu.memory_space<vmem>>, %arg14: memref<32x128xbf16, #tpu.memory_space<vmem>>, %arg15: memref<1x128xf32, #tpu.memory_space<vmem>>, %arg16: memref<64x32xbf16, #tpu.memory_space<vmem>>, %arg17: memref<1x80x128xbf16, #tpu.memory_space<vmem>>) attributes {dimension_semantics = [#tpu.dimension_semantics<parallel>], iteration_bounds = array<i64: 2>, scalar_prefetch = 0 : i64, scratch_operands = 0 : i64, tpu.core_type = #tpu.core_type<tc>, window_params = [{transform_indices = @transform_0, window_bounds = array<i64: 256, 27>}, {pipeline_mode = #tpu.pipeline_mode<synchronous>, transform_indices = @transform_1, window_bounds = array<i64: 27, 16>}, {pipeline_mode = #tpu.pipeline_mode<synchronous>, transform_indices = @transform_2, window_bounds = array<i64: 1, 16>}, {pipeline_mode = #tpu.pipeline_mode<synchronous>, transform_indices = @transform_3, window_bounds = array<i64: 9, 64, 256>}, {pipeline_mode = #tpu.pipeline_mode<synchronous>, transform_indices = @transform_4, window_bounds = array<i64: 9, 16, 32>}, {pipeline_mode = #tpu.pipeline_mode<synchronous>, transform_indices = @transform_5, window_bounds = array<i64: 1, 32>}, {pipeline_mode = #tpu.pipeline_mode<synchronous>, transform_indices = @transform_6, window_bounds = array<i64: 9, 16, 64>}, {pipeline_mode = #tpu.pipeline_mode<synchronous>, transform_indices = @transform_7, window_bounds = array<i64: 9, 32, 32>}, {pipeline_mode = #tpu.pipeline_mode<synchronous>, transform_indices = @transform_8, window_bounds = array<i64: 1, 32>}, {pipeline_mode = #tpu.pipeline_mode<synchronous>, transform_indices = @transform_9, window_bounds = array<i64: 9, 64, 64>}, {pipeline_mode = #tpu.pipeline_mode<synchronous>, transform_indices = @transform_10, window_bounds = array<i64: 9, 16, 16>}, {pipeline_mode = #tpu.pipeline_mode<synchronous>, transform_indices = @transform_11, window_bounds = array<i64: 9, 32, 32>}, {pipeline_mode = #tpu.pipeline_mode<synchronous>, transform_indices = @transform_12, window_bounds = array<i64: 1, 32>}, {pipeline_mode = #tpu.pipeline_mode<synchronous>, transform_indices = @transform_13, window_bounds = array<i64: 32, 128>}, {pipeline_mode = #tpu.pipeline_mode<synchronous>, transform_indices = @transform_14, window_bounds = array<i64: 1, 128>}, {transform_indices = @transform_15, window_bounds = array<i64: 64, 32>}, {transform_indices = @transform_16, window_bounds = array<i64: 1, 80, 128>}]} {
    %c0 = arith.constant 0 : index
    %c0_0 = arith.constant 0 : index
    %0 = vector.load %arg1[%c0, %c0_0] : memref<256x27xbf16, #tpu.memory_space<vmem>>, vector<256x27xbf16>
    %c0_1 = arith.constant 0 : index
    %c0_2 = arith.constant 0 : index
    %1 = vector.load %arg2[%c0_1, %c0_2] : memref<27x16xbf16, #tpu.memory_space<vmem>>, vector<27x16xbf16>
    %cst = arith.constant dense<0.000000e+00> : vector<256x16xf32>
    %2 = tpu.matmul %0, %1, %cst {dimension_numbers = #tpu.dot_dimension_numbers<[1], [0], [0], [1], [0, 0, 1, 1], [], []>} : vector<256x27xbf16>, vector<27x16xbf16>, vector<256x16xf32> -> vector<256x16xf32>
    %c0_3 = arith.constant 0 : index
    %c0_4 = arith.constant 0 : index
    %3 = vector.load %arg3[%c0_3, %c0_4] : memref<1x16xf32, #tpu.memory_space<vmem>>, vector<1x16xf32>
    %4 = vector.broadcast %3 : vector<1x16xf32> to vector<256x16xf32>
    %5 = arith.addf %2, %4 : vector<256x16xf32>
    %cst_5 = arith.constant 0.000000e+00 : f32
    %6 = vector.broadcast %cst_5 : f32 to vector<256x16xf32>
    %7 = arith.maximumf %5, %6 : vector<256x16xf32>
    %8 = arith.truncf %7 : vector<256x16xf32> to vector<256x16xbf16>
    %cst_6 = arith.constant 0.000000e+00 : f32
    %9 = vector.broadcast %cst_6 : f32 to vector<64x32xf32>
    %c0_7 = arith.constant 0 : index
    %c0_8 = arith.constant 0 : index
    %c0_9 = arith.constant 0 : index
    %10 = vector.load %arg4[%c0_7, %c0_8, %c0_9] : memref<9x64x256xbf16, #tpu.memory_space<vmem>>, vector<1x64x256xbf16>
    %11 = vector.shape_cast %10 : vector<1x64x256xbf16> to vector<64x256xbf16>
    %cst_10 = arith.constant dense<0.000000e+00> : vector<64x16xf32>
    %12 = tpu.matmul %11, %8, %cst_10 {dimension_numbers = #tpu.dot_dimension_numbers<[1], [0], [0], [1], [0, 0, 1, 1], [], []>} : vector<64x256xbf16>, vector<256x16xbf16>, vector<64x16xf32> -> vector<64x16xf32>
    %13 = arith.truncf %12 : vector<64x16xf32> to vector<64x16xbf16>
    %c0_11 = arith.constant 0 : index
    %c0_12 = arith.constant 0 : index
    %c0_13 = arith.constant 0 : index
    %14 = vector.load %arg5[%c0_11, %c0_12, %c0_13] : memref<9x16x32xbf16, #tpu.memory_space<vmem>>, vector<1x16x32xbf16>
    %15 = vector.shape_cast %14 : vector<1x16x32xbf16> to vector<16x32xbf16>
    %cst_14 = arith.constant dense<0.000000e+00> : vector<64x32xf32>
    %16 = tpu.matmul %13, %15, %cst_14 {dimension_numbers = #tpu.dot_dimension_numbers<[1], [0], [0], [1], [0, 0, 1, 1], [], []>} : vector<64x16xbf16>, vector<16x32xbf16>, vector<64x32xf32> -> vector<64x32xf32>
    %17 = arith.addf %9, %16 : vector<64x32xf32>
    %c1 = arith.constant 1 : index
    %c0_15 = arith.constant 0 : index
    %c0_16 = arith.constant 0 : index
    %18 = vector.load %arg4[%c1, %c0_15, %c0_16] : memref<9x64x256xbf16, #tpu.memory_space<vmem>>, vector<1x64x256xbf16>
    %19 = vector.shape_cast %18 : vector<1x64x256xbf16> to vector<64x256xbf16>
    %cst_17 = arith.constant dense<0.000000e+00> : vector<64x16xf32>
    %20 = tpu.matmul %19, %8, %cst_17 {dimension_numbers = #tpu.dot_dimension_numbers<[1], [0], [0], [1], [0, 0, 1, 1], [], []>} : vector<64x256xbf16>, vector<256x16xbf16>, vector<64x16xf32> -> vector<64x16xf32>
    %21 = arith.truncf %20 : vector<64x16xf32> to vector<64x16xbf16>
    %c1_18 = arith.constant 1 : index
    %c0_19 = arith.constant 0 : index
    %c0_20 = arith.constant 0 : index
    %22 = vector.load %arg5[%c1_18, %c0_19, %c0_20] : memref<9x16x32xbf16, #tpu.memory_space<vmem>>, vector<1x16x32xbf16>
    %23 = vector.shape_cast %22 : vector<1x16x32xbf16> to vector<16x32xbf16>
    %cst_21 = arith.constant dense<0.000000e+00> : vector<64x32xf32>
    %24 = tpu.matmul %21, %23, %cst_21 {dimension_numbers = #tpu.dot_dimension_numbers<[1], [0], [0], [1], [0, 0, 1, 1], [], []>} : vector<64x16xbf16>, vector<16x32xbf16>, vector<64x32xf32> -> vector<64x32xf32>
    %25 = arith.addf %17, %24 : vector<64x32xf32>
    %c2 = arith.constant 2 : index
    %c0_22 = arith.constant 0 : index
    %c0_23 = arith.constant 0 : index
    %26 = vector.load %arg4[%c2, %c0_22, %c0_23] : memref<9x64x256xbf16, #tpu.memory_space<vmem>>, vector<1x64x256xbf16>
    %27 = vector.shape_cast %26 : vector<1x64x256xbf16> to vector<64x256xbf16>
    %cst_24 = arith.constant dense<0.000000e+00> : vector<64x16xf32>
    %28 = tpu.matmul %27, %8, %cst_24 {dimension_numbers = #tpu.dot_dimension_numbers<[1], [0], [0], [1], [0, 0, 1, 1], [], []>} : vector<64x256xbf16>, vector<256x16xbf16>, vector<64x16xf32> -> vector<64x16xf32>
    %29 = arith.truncf %28 : vector<64x16xf32> to vector<64x16xbf16>
    %c2_25 = arith.constant 2 : index
    %c0_26 = arith.constant 0 : index
    %c0_27 = arith.constant 0 : index
    %30 = vector.load %arg5[%c2_25, %c0_26, %c0_27] : memref<9x16x32xbf16, #tpu.memory_space<vmem>>, vector<1x16x32xbf16>
    %31 = vector.shape_cast %30 : vector<1x16x32xbf16> to vector<16x32xbf16>
    %cst_28 = arith.constant dense<0.000000e+00> : vector<64x32xf32>
    %32 = tpu.matmul %29, %31, %cst_28 {dimension_numbers = #tpu.dot_dimension_numbers<[1], [0], [0], [1], [0, 0, 1, 1], [], []>} : vector<64x16xbf16>, vector<16x32xbf16>, vector<64x32xf32> -> vector<64x32xf32>
    %33 = arith.addf %25, %32 : vector<64x32xf32>
    %c3 = arith.constant 3 : index
    %c0_29 = arith.constant 0 : index
    %c0_30 = arith.constant 0 : index
    %34 = vector.load %arg4[%c3, %c0_29, %c0_30] : memref<9x64x256xbf16, #tpu.memory_space<vmem>>, vector<1x64x256xbf16>
    %35 = vector.shape_cast %34 : vector<1x64x256xbf16> to vector<64x256xbf16>
    %cst_31 = arith.constant dense<0.000000e+00> : vector<64x16xf32>
    %36 = tpu.matmul %35, %8, %cst_31 {dimension_numbers = #tpu.dot_dimension_numbers<[1], [0], [0], [1], [0, 0, 1, 1], [], []>} : vector<64x256xbf16>, vector<256x16xbf16>, vector<64x16xf32> -> vector<64x16xf32>
    %37 = arith.truncf %36 : vector<64x16xf32> to vector<64x16xbf16>
    %c3_32 = arith.constant 3 : index
    %c0_33 = arith.constant 0 : index
    %c0_34 = arith.constant 0 : index
    %38 = vector.load %arg5[%c3_32, %c0_33, %c0_34] : memref<9x16x32xbf16, #tpu.memory_space<vmem>>, vector<1x16x32xbf16>
    %39 = vector.shape_cast %38 : vector<1x16x32xbf16> to vector<16x32xbf16>
    %cst_35 = arith.constant dense<0.000000e+00> : vector<64x32xf32>
    %40 = tpu.matmul %37, %39, %cst_35 {dimension_numbers = #tpu.dot_dimension_numbers<[1], [0], [0], [1], [0, 0, 1, 1], [], []>} : vector<64x16xbf16>, vector<16x32xbf16>, vector<64x32xf32> -> vector<64x32xf32>
    %41 = arith.addf %33, %40 : vector<64x32xf32>
    %c4 = arith.constant 4 : index
    %c0_36 = arith.constant 0 : index
    %c0_37 = arith.constant 0 : index
    %42 = vector.load %arg4[%c4, %c0_36, %c0_37] : memref<9x64x256xbf16, #tpu.memory_space<vmem>>, vector<1x64x256xbf16>
    %43 = vector.shape_cast %42 : vector<1x64x256xbf16> to vector<64x256xbf16>
    %cst_38 = arith.constant dense<0.000000e+00> : vector<64x16xf32>
    %44 = tpu.matmul %43, %8, %cst_38 {dimension_numbers = #tpu.dot_dimension_numbers<[1], [0], [0], [1], [0, 0, 1, 1], [], []>} : vector<64x256xbf16>, vector<256x16xbf16>, vector<64x16xf32> -> vector<64x16xf32>
    %45 = arith.truncf %44 : vector<64x16xf32> to vector<64x16xbf16>
    %c4_39 = arith.constant 4 : index
    %c0_40 = arith.constant 0 : index
    %c0_41 = arith.constant 0 : index
    %46 = vector.load %arg5[%c4_39, %c0_40, %c0_41] : memref<9x16x32xbf16, #tpu.memory_space<vmem>>, vector<1x16x32xbf16>
    %47 = vector.shape_cast %46 : vector<1x16x32xbf16> to vector<16x32xbf16>
    %cst_42 = arith.constant dense<0.000000e+00> : vector<64x32xf32>
    %48 = tpu.matmul %45, %47, %cst_42 {dimension_numbers = #tpu.dot_dimension_numbers<[1], [0], [0], [1], [0, 0, 1, 1], [], []>} : vector<64x16xbf16>, vector<16x32xbf16>, vector<64x32xf32> -> vector<64x32xf32>
    %49 = arith.addf %41, %48 : vector<64x32xf32>
    %c5 = arith.constant 5 : index
    %c0_43 = arith.constant 0 : index
    %c0_44 = arith.constant 0 : index
    %50 = vector.load %arg4[%c5, %c0_43, %c0_44] : memref<9x64x256xbf16, #tpu.memory_space<vmem>>, vector<1x64x256xbf16>
    %51 = vector.shape_cast %50 : vector<1x64x256xbf16> to vector<64x256xbf16>
    %cst_45 = arith.constant dense<0.000000e+00> : vector<64x16xf32>
    %52 = tpu.matmul %51, %8, %cst_45 {dimension_numbers = #tpu.dot_dimension_numbers<[1], [0], [0], [1], [0, 0, 1, 1], [], []>} : vector<64x256xbf16>, vector<256x16xbf16>, vector<64x16xf32> -> vector<64x16xf32>
    %53 = arith.truncf %52 : vector<64x16xf32> to vector<64x16xbf16>
    %c5_46 = arith.constant 5 : index
    %c0_47 = arith.constant 0 : index
    %c0_48 = arith.constant 0 : index
    %54 = vector.load %arg5[%c5_46, %c0_47, %c0_48] : memref<9x16x32xbf16, #tpu.memory_space<vmem>>, vector<1x16x32xbf16>
    %55 = vector.shape_cast %54 : vector<1x16x32xbf16> to vector<16x32xbf16>
    %cst_49 = arith.constant dense<0.000000e+00> : vector<64x32xf32>
    %56 = tpu.matmul %53, %55, %cst_49 {dimension_numbers = #tpu.dot_dimension_numbers<[1], [0], [0], [1], [0, 0, 1, 1], [], []>} : vector<64x16xbf16>, vector<16x32xbf16>, vector<64x32xf32> -> vector<64x32xf32>
    %57 = arith.addf %49, %56 : vector<64x32xf32>
    %c6 = arith.constant 6 : index
    %c0_50 = arith.constant 0 : index
    %c0_51 = arith.constant 0 : index
    %58 = vector.load %arg4[%c6, %c0_50, %c0_51] : memref<9x64x256xbf16, #tpu.memory_space<vmem>>, vector<1x64x256xbf16>
    %59 = vector.shape_cast %58 : vector<1x64x256xbf16> to vector<64x256xbf16>
    %cst_52 = arith.constant dense<0.000000e+00> : vector<64x16xf32>
    %60 = tpu.matmul %59, %8, %cst_52 {dimension_numbers = #tpu.dot_dimension_numbers<[1], [0], [0], [1], [0, 0, 1, 1], [], []>} : vector<64x256xbf16>, vector<256x16xbf16>, vector<64x16xf32> -> vector<64x16xf32>
    %61 = arith.truncf %60 : vector<64x16xf32> to vector<64x16xbf16>
    %c6_53 = arith.constant 6 : index
    %c0_54 = arith.constant 0 : index
    %c0_55 = arith.constant 0 : index
    %62 = vector.load %arg5[%c6_53, %c0_54, %c0_55] : memref<9x16x32xbf16, #tpu.memory_space<vmem>>, vector<1x16x32xbf16>
    %63 = vector.shape_cast %62 : vector<1x16x32xbf16> to vector<16x32xbf16>
    %cst_56 = arith.constant dense<0.000000e+00> : vector<64x32xf32>
    %64 = tpu.matmul %61, %63, %cst_56 {dimension_numbers = #tpu.dot_dimension_numbers<[1], [0], [0], [1], [0, 0, 1, 1], [], []>} : vector<64x16xbf16>, vector<16x32xbf16>, vector<64x32xf32> -> vector<64x32xf32>
    %65 = arith.addf %57, %64 : vector<64x32xf32>
    %c7 = arith.constant 7 : index
    %c0_57 = arith.constant 0 : index
    %c0_58 = arith.constant 0 : index
    %66 = vector.load %arg4[%c7, %c0_57, %c0_58] : memref<9x64x256xbf16, #tpu.memory_space<vmem>>, vector<1x64x256xbf16>
    %67 = vector.shape_cast %66 : vector<1x64x256xbf16> to vector<64x256xbf16>
    %cst_59 = arith.constant dense<0.000000e+00> : vector<64x16xf32>
    %68 = tpu.matmul %67, %8, %cst_59 {dimension_numbers = #tpu.dot_dimension_numbers<[1], [0], [0], [1], [0, 0, 1, 1], [], []>} : vector<64x256xbf16>, vector<256x16xbf16>, vector<64x16xf32> -> vector<64x16xf32>
    %69 = arith.truncf %68 : vector<64x16xf32> to vector<64x16xbf16>
    %c7_60 = arith.constant 7 : index
    %c0_61 = arith.constant 0 : index
    %c0_62 = arith.constant 0 : index
    %70 = vector.load %arg5[%c7_60, %c0_61, %c0_62] : memref<9x16x32xbf16, #tpu.memory_space<vmem>>, vector<1x16x32xbf16>
    %71 = vector.shape_cast %70 : vector<1x16x32xbf16> to vector<16x32xbf16>
    %cst_63 = arith.constant dense<0.000000e+00> : vector<64x32xf32>
    %72 = tpu.matmul %69, %71, %cst_63 {dimension_numbers = #tpu.dot_dimension_numbers<[1], [0], [0], [1], [0, 0, 1, 1], [], []>} : vector<64x16xbf16>, vector<16x32xbf16>, vector<64x32xf32> -> vector<64x32xf32>
    %73 = arith.addf %65, %72 : vector<64x32xf32>
    %c8 = arith.constant 8 : index
    %c0_64 = arith.constant 0 : index
    %c0_65 = arith.constant 0 : index
    %74 = vector.load %arg4[%c8, %c0_64, %c0_65] : memref<9x64x256xbf16, #tpu.memory_space<vmem>>, vector<1x64x256xbf16>
    %75 = vector.shape_cast %74 : vector<1x64x256xbf16> to vector<64x256xbf16>
    %cst_66 = arith.constant dense<0.000000e+00> : vector<64x16xf32>
    %76 = tpu.matmul %75, %8, %cst_66 {dimension_numbers = #tpu.dot_dimension_numbers<[1], [0], [0], [1], [0, 0, 1, 1], [], []>} : vector<64x256xbf16>, vector<256x16xbf16>, vector<64x16xf32> -> vector<64x16xf32>
    %77 = arith.truncf %76 : vector<64x16xf32> to vector<64x16xbf16>
    %c8_67 = arith.constant 8 : index
    %c0_68 = arith.constant 0 : index
    %c0_69 = arith.constant 0 : index
    %78 = vector.load %arg5[%c8_67, %c0_68, %c0_69] : memref<9x16x32xbf16, #tpu.memory_space<vmem>>, vector<1x16x32xbf16>
    %79 = vector.shape_cast %78 : vector<1x16x32xbf16> to vector<16x32xbf16>
    %cst_70 = arith.constant dense<0.000000e+00> : vector<64x32xf32>
    %80 = tpu.matmul %77, %79, %cst_70 {dimension_numbers = #tpu.dot_dimension_numbers<[1], [0], [0], [1], [0, 0, 1, 1], [], []>} : vector<64x16xbf16>, vector<16x32xbf16>, vector<64x32xf32> -> vector<64x32xf32>
    %81 = arith.addf %73, %80 : vector<64x32xf32>
    %c0_71 = arith.constant 0 : index
    %c0_72 = arith.constant 0 : index
    %82 = vector.load %arg6[%c0_71, %c0_72] : memref<1x32xf32, #tpu.memory_space<vmem>>, vector<1x32xf32>
    %83 = vector.broadcast %82 : vector<1x32xf32> to vector<64x32xf32>
    %84 = arith.addf %81, %83 : vector<64x32xf32>
    %cst_73 = arith.constant 0.000000e+00 : f32
    %85 = vector.broadcast %cst_73 : f32 to vector<64x32xf32>
    %86 = arith.maximumf %84, %85 : vector<64x32xf32>
    %87 = arith.truncf %86 : vector<64x32xf32> to vector<64x32xbf16>
    %c0_74 = arith.constant 0 : index
    %c0_75 = arith.constant 0 : index
    %88 = vector.load %arg16[%c0_74, %c0_75] : memref<64x32xbf16, #tpu.memory_space<vmem>>, vector<64x32xbf16>
    tpu.vector_store %arg16[%c0_74, %c0_75], %87 {strides = array<i32>} : memref<64x32xbf16, #tpu.memory_space<vmem>>, vector<64x32xbf16>,
    %cst_76 = arith.constant 0.000000e+00 : f32
    %89 = vector.broadcast %cst_76 : f32 to vector<16x32xf32>
    %c0_77 = arith.constant 0 : index
    %c0_78 = arith.constant 0 : index
    %c0_79 = arith.constant 0 : index
    %90 = vector.load %arg7[%c0_77, %c0_78, %c0_79] : memref<9x16x64xbf16, #tpu.memory_space<vmem>>, vector<1x16x64xbf16>
    %91 = vector.shape_cast %90 : vector<1x16x64xbf16> to vector<16x64xbf16>
    %cst_80 = arith.constant dense<0.000000e+00> : vector<16x32xf32>
    %92 = tpu.matmul %91, %87, %cst_80 {dimension_numbers = #tpu.dot_dimension_numbers<[1], [0], [0], [1], [0, 0, 1, 1], [], []>} : vector<16x64xbf16>, vector<64x32xbf16>, vector<16x32xf32> -> vector<16x32xf32>
    %93 = arith.truncf %92 : vector<16x32xf32> to vector<16x32xbf16>
    %c0_81 = arith.constant 0 : index
    %c0_82 = arith.constant 0 : index
    %c0_83 = arith.constant 0 : index
    %94 = vector.load %arg8[%c0_81, %c0_82, %c0_83] : memref<9x32x32xbf16, #tpu.memory_space<vmem>>, vector<1x32x32xbf16>
    %95 = vector.shape_cast %94 : vector<1x32x32xbf16> to vector<32x32xbf16>
    %cst_84 = arith.constant dense<0.000000e+00> : vector<16x32xf32>
    %96 = tpu.matmul %93, %95, %cst_84 {dimension_numbers = #tpu.dot_dimension_numbers<[1], [0], [0], [1], [0, 0, 1, 1], [], []>} : vector<16x32xbf16>, vector<32x32xbf16>, vector<16x32xf32> -> vector<16x32xf32>
    %97 = arith.addf %89, %96 : vector<16x32xf32>
    %c1_85 = arith.constant 1 : index
    %c0_86 = arith.constant 0 : index
    %c0_87 = arith.constant 0 : index
    %98 = vector.load %arg7[%c1_85, %c0_86, %c0_87] : memref<9x16x64xbf16, #tpu.memory_space<vmem>>, vector<1x16x64xbf16>
    %99 = vector.shape_cast %98 : vector<1x16x64xbf16> to vector<16x64xbf16>
    %cst_88 = arith.constant dense<0.000000e+00> : vector<16x32xf32>
    %100 = tpu.matmul %99, %87, %cst_88 {dimension_numbers = #tpu.dot_dimension_numbers<[1], [0], [0], [1], [0, 0, 1, 1], [], []>} : vector<16x64xbf16>, vector<64x32xbf16>, vector<16x32xf32> -> vector<16x32xf32>
    %101 = arith.truncf %100 : vector<16x32xf32> to vector<16x32xbf16>
    %c1_89 = arith.constant 1 : index
    %c0_90 = arith.constant 0 : index
    %c0_91 = arith.constant 0 : index
    %102 = vector.load %arg8[%c1_89, %c0_90, %c0_91] : memref<9x32x32xbf16, #tpu.memory_space<vmem>>, vector<1x32x32xbf16>
    %103 = vector.shape_cast %102 : vector<1x32x32xbf16> to vector<32x32xbf16>
    %cst_92 = arith.constant dense<0.000000e+00> : vector<16x32xf32>
    %104 = tpu.matmul %101, %103, %cst_92 {dimension_numbers = #tpu.dot_dimension_numbers<[1], [0], [0], [1], [0, 0, 1, 1], [], []>} : vector<16x32xbf16>, vector<32x32xbf16>, vector<16x32xf32> -> vector<16x32xf32>
    %105 = arith.addf %97, %104 : vector<16x32xf32>
    %c2_93 = arith.constant 2 : index
    %c0_94 = arith.constant 0 : index
    %c0_95 = arith.constant 0 : index
    %106 = vector.load %arg7[%c2_93, %c0_94, %c0_95] : memref<9x16x64xbf16, #tpu.memory_space<vmem>>, vector<1x16x64xbf16>
    %107 = vector.shape_cast %106 : vector<1x16x64xbf16> to vector<16x64xbf16>
    %cst_96 = arith.constant dense<0.000000e+00> : vector<16x32xf32>
    %108 = tpu.matmul %107, %87, %cst_96 {dimension_numbers = #tpu.dot_dimension_numbers<[1], [0], [0], [1], [0, 0, 1, 1], [], []>} : vector<16x64xbf16>, vector<64x32xbf16>, vector<16x32xf32> -> vector<16x32xf32>
    %109 = arith.truncf %108 : vector<16x32xf32> to vector<16x32xbf16>
    %c2_97 = arith.constant 2 : index
    %c0_98 = arith.constant 0 : index
    %c0_99 = arith.constant 0 : index
    %110 = vector.load %arg8[%c2_97, %c0_98, %c0_99] : memref<9x32x32xbf16, #tpu.memory_space<vmem>>, vector<1x32x32xbf16>
    %111 = vector.shape_cast %110 : vector<1x32x32xbf16> to vector<32x32xbf16>
    %cst_100 = arith.constant dense<0.000000e+00> : vector<16x32xf32>
    %112 = tpu.matmul %109, %111, %cst_100 {dimension_numbers = #tpu.dot_dimension_numbers<[1], [0], [0], [1], [0, 0, 1, 1], [], []>} : vector<16x32xbf16>, vector<32x32xbf16>, vector<16x32xf32> -> vector<16x32xf32>
    %113 = arith.addf %105, %112 : vector<16x32xf32>
    %c3_101 = arith.constant 3 : index
    %c0_102 = arith.constant 0 : index
    %c0_103 = arith.constant 0 : index
    %114 = vector.load %arg7[%c3_101, %c0_102, %c0_103] : memref<9x16x64xbf16, #tpu.memory_space<vmem>>, vector<1x16x64xbf16>
    %115 = vector.shape_cast %114 : vector<1x16x64xbf16> to vector<16x64xbf16>
    %cst_104 = arith.constant dense<0.000000e+00> : vector<16x32xf32>
    %116 = tpu.matmul %115, %87, %cst_104 {dimension_numbers = #tpu.dot_dimension_numbers<[1], [0], [0], [1], [0, 0, 1, 1], [], []>} : vector<16x64xbf16>, vector<64x32xbf16>, vector<16x32xf32> -> vector<16x32xf32>
    %117 = arith.truncf %116 : vector<16x32xf32> to vector<16x32xbf16>
    %c3_105 = arith.constant 3 : index
    %c0_106 = arith.constant 0 : index
    %c0_107 = arith.constant 0 : index
    %118 = vector.load %arg8[%c3_105, %c0_106, %c0_107] : memref<9x32x32xbf16, #tpu.memory_space<vmem>>, vector<1x32x32xbf16>
    %119 = vector.shape_cast %118 : vector<1x32x32xbf16> to vector<32x32xbf16>
    %cst_108 = arith.constant dense<0.000000e+00> : vector<16x32xf32>
    %120 = tpu.matmul %117, %119, %cst_108 {dimension_numbers = #tpu.dot_dimension_numbers<[1], [0], [0], [1], [0, 0, 1, 1], [], []>} : vector<16x32xbf16>, vector<32x32xbf16>, vector<16x32xf32> -> vector<16x32xf32>
    %121 = arith.addf %113, %120 : vector<16x32xf32>
    %c4_109 = arith.constant 4 : index
    %c0_110 = arith.constant 0 : index
    %c0_111 = arith.constant 0 : index
    %122 = vector.load %arg7[%c4_109, %c0_110, %c0_111] : memref<9x16x64xbf16, #tpu.memory_space<vmem>>, vector<1x16x64xbf16>
    %123 = vector.shape_cast %122 : vector<1x16x64xbf16> to vector<16x64xbf16>
    %cst_112 = arith.constant dense<0.000000e+00> : vector<16x32xf32>
    %124 = tpu.matmul %123, %87, %cst_112 {dimension_numbers = #tpu.dot_dimension_numbers<[1], [0], [0], [1], [0, 0, 1, 1], [], []>} : vector<16x64xbf16>, vector<64x32xbf16>, vector<16x32xf32> -> vector<16x32xf32>
    %125 = arith.truncf %124 : vector<16x32xf32> to vector<16x32xbf16>
    %c4_113 = arith.constant 4 : index
    %c0_114 = arith.constant 0 : index
    %c0_115 = arith.constant 0 : index
    %126 = vector.load %arg8[%c4_113, %c0_114, %c0_115] : memref<9x32x32xbf16, #tpu.memory_space<vmem>>, vector<1x32x32xbf16>
    %127 = vector.shape_cast %126 : vector<1x32x32xbf16> to vector<32x32xbf16>
    %cst_116 = arith.constant dense<0.000000e+00> : vector<16x32xf32>
    %128 = tpu.matmul %125, %127, %cst_116 {dimension_numbers = #tpu.dot_dimension_numbers<[1], [0], [0], [1], [0, 0, 1, 1], [], []>} : vector<16x32xbf16>, vector<32x32xbf16>, vector<16x32xf32> -> vector<16x32xf32>
    %129 = arith.addf %121, %128 : vector<16x32xf32>
    %c5_117 = arith.constant 5 : index
    %c0_118 = arith.constant 0 : index
    %c0_119 = arith.constant 0 : index
    %130 = vector.load %arg7[%c5_117, %c0_118, %c0_119] : memref<9x16x64xbf16, #tpu.memory_space<vmem>>, vector<1x16x64xbf16>
    %131 = vector.shape_cast %130 : vector<1x16x64xbf16> to vector<16x64xbf16>
    %cst_120 = arith.constant dense<0.000000e+00> : vector<16x32xf32>
    %132 = tpu.matmul %131, %87, %cst_120 {dimension_numbers = #tpu.dot_dimension_numbers<[1], [0], [0], [1], [0, 0, 1, 1], [], []>} : vector<16x64xbf16>, vector<64x32xbf16>, vector<16x32xf32> -> vector<16x32xf32>
    %133 = arith.truncf %132 : vector<16x32xf32> to vector<16x32xbf16>
    %c5_121 = arith.constant 5 : index
    %c0_122 = arith.constant 0 : index
    %c0_123 = arith.constant 0 : index
    %134 = vector.load %arg8[%c5_121, %c0_122, %c0_123] : memref<9x32x32xbf16, #tpu.memory_space<vmem>>, vector<1x32x32xbf16>
    %135 = vector.shape_cast %134 : vector<1x32x32xbf16> to vector<32x32xbf16>
    %cst_124 = arith.constant dense<0.000000e+00> : vector<16x32xf32>
    %136 = tpu.matmul %133, %135, %cst_124 {dimension_numbers = #tpu.dot_dimension_numbers<[1], [0], [0], [1], [0, 0, 1, 1], [], []>} : vector<16x32xbf16>, vector<32x32xbf16>, vector<16x32xf32> -> vector<16x32xf32>
    %137 = arith.addf %129, %136 : vector<16x32xf32>
    %c6_125 = arith.constant 6 : index
    %c0_126 = arith.constant 0 : index
    %c0_127 = arith.constant 0 : index
    %138 = vector.load %arg7[%c6_125, %c0_126, %c0_127] : memref<9x16x64xbf16, #tpu.memory_space<vmem>>, vector<1x16x64xbf16>
    %139 = vector.shape_cast %138 : vector<1x16x64xbf16> to vector<16x64xbf16>
    %cst_128 = arith.constant dense<0.000000e+00> : vector<16x32xf32>
    %140 = tpu.matmul %139, %87, %cst_128 {dimension_numbers = #tpu.dot_dimension_numbers<[1], [0], [0], [1], [0, 0, 1, 1], [], []>} : vector<16x64xbf16>, vector<64x32xbf16>, vector<16x32xf32> -> vector<16x32xf32>
    %141 = arith.truncf %140 : vector<16x32xf32> to vector<16x32xbf16>
    %c6_129 = arith.constant 6 : index
    %c0_130 = arith.constant 0 : index
    %c0_131 = arith.constant 0 : index
    %142 = vector.load %arg8[%c6_129, %c0_130, %c0_131] : memref<9x32x32xbf16, #tpu.memory_space<vmem>>, vector<1x32x32xbf16>
    %143 = vector.shape_cast %142 : vector<1x32x32xbf16> to vector<32x32xbf16>
    %cst_132 = arith.constant dense<0.000000e+00> : vector<16x32xf32>
    %144 = tpu.matmul %141, %143, %cst_132 {dimension_numbers = #tpu.dot_dimension_numbers<[1], [0], [0], [1], [0, 0, 1, 1], [], []>} : vector<16x32xbf16>, vector<32x32xbf16>, vector<16x32xf32> -> vector<16x32xf32>
    %145 = arith.addf %137, %144 : vector<16x32xf32>
    %c7_133 = arith.constant 7 : index
    %c0_134 = arith.constant 0 : index
    %c0_135 = arith.constant 0 : index
    %146 = vector.load %arg7[%c7_133, %c0_134, %c0_135] : memref<9x16x64xbf16, #tpu.memory_space<vmem>>, vector<1x16x64xbf16>
    %147 = vector.shape_cast %146 : vector<1x16x64xbf16> to vector<16x64xbf16>
    %cst_136 = arith.constant dense<0.000000e+00> : vector<16x32xf32>
    %148 = tpu.matmul %147, %87, %cst_136 {dimension_numbers = #tpu.dot_dimension_numbers<[1], [0], [0], [1], [0, 0, 1, 1], [], []>} : vector<16x64xbf16>, vector<64x32xbf16>, vector<16x32xf32> -> vector<16x32xf32>
    %149 = arith.truncf %148 : vector<16x32xf32> to vector<16x32xbf16>
    %c7_137 = arith.constant 7 : index
    %c0_138 = arith.constant 0 : index
    %c0_139 = arith.constant 0 : index
    %150 = vector.load %arg8[%c7_137, %c0_138, %c0_139] : memref<9x32x32xbf16, #tpu.memory_space<vmem>>, vector<1x32x32xbf16>
    %151 = vector.shape_cast %150 : vector<1x32x32xbf16> to vector<32x32xbf16>
    %cst_140 = arith.constant dense<0.000000e+00> : vector<16x32xf32>
    %152 = tpu.matmul %149, %151, %cst_140 {dimension_numbers = #tpu.dot_dimension_numbers<[1], [0], [0], [1], [0, 0, 1, 1], [], []>} : vector<16x32xbf16>, vector<32x32xbf16>, vector<16x32xf32> -> vector<16x32xf32>
    %153 = arith.addf %145, %152 : vector<16x32xf32>
    %c8_141 = arith.constant 8 : index
    %c0_142 = arith.constant 0 : index
    %c0_143 = arith.constant 0 : index
    %154 = vector.load %arg7[%c8_141, %c0_142, %c0_143] : memref<9x16x64xbf16, #tpu.memory_space<vmem>>, vector<1x16x64xbf16>
    %155 = vector.shape_cast %154 : vector<1x16x64xbf16> to vector<16x64xbf16>
    %cst_144 = arith.constant dense<0.000000e+00> : vector<16x32xf32>
    %156 = tpu.matmul %155, %87, %cst_144 {dimension_numbers = #tpu.dot_dimension_numbers<[1], [0], [0], [1], [0, 0, 1, 1], [], []>} : vector<16x64xbf16>, vector<64x32xbf16>, vector<16x32xf32> -> vector<16x32xf32>
    %157 = arith.truncf %156 : vector<16x32xf32> to vector<16x32xbf16>
    %c8_145 = arith.constant 8 : index
    %c0_146 = arith.constant 0 : index
    %c0_147 = arith.constant 0 : index
    %158 = vector.load %arg8[%c8_145, %c0_146, %c0_147] : memref<9x32x32xbf16, #tpu.memory_space<vmem>>, vector<1x32x32xbf16>
    %159 = vector.shape_cast %158 : vector<1x32x32xbf16> to vector<32x32xbf16>
    %cst_148 = arith.constant dense<0.000000e+00> : vector<16x32xf32>
    %160 = tpu.matmul %157, %159, %cst_148 {dimension_numbers = #tpu.dot_dimension_numbers<[1], [0], [0], [1], [0, 0, 1, 1], [], []>} : vector<16x32xbf16>, vector<32x32xbf16>, vector<16x32xf32> -> vector<16x32xf32>
    %161 = arith.addf %153, %160 : vector<16x32xf32>
    %c0_149 = arith.constant 0 : index
    %c0_150 = arith.constant 0 : index
    %162 = vector.load %arg9[%c0_149, %c0_150] : memref<1x32xf32, #tpu.memory_space<vmem>>, vector<1x32xf32>
    %163 = vector.broadcast %162 : vector<1x32xf32> to vector<16x32xf32>
    %164 = arith.addf %161, %163 : vector<16x32xf32>
    %cst_151 = arith.constant 0.000000e+00 : f32
    %165 = vector.broadcast %cst_151 : f32 to vector<16x32xf32>
    %166 = arith.maximumf %164, %165 : vector<16x32xf32>
    %167 = arith.truncf %166 : vector<16x32xf32> to vector<16x32xbf16>
    %cst_152 = arith.constant 0.000000e+00 : f32
    %168 = vector.broadcast %cst_152 : f32 to vector<64x32xf32>
    %c0_153 = arith.constant 0 : index
    %c0_154 = arith.constant 0 : index
    %c0_155 = arith.constant 0 : index
    %169 = vector.load %arg10[%c0_153, %c0_154, %c0_155] : memref<9x64x64xbf16, #tpu.memory_space<vmem>>, vector<1x64x64xbf16>
    %170 = vector.shape_cast %169 : vector<1x64x64xbf16> to vector<64x64xbf16>
    %cst_156 = arith.constant dense<0.000000e+00> : vector<64x32xf32>
    %171 = tpu.matmul %170, %87, %cst_156 {dimension_numbers = #tpu.dot_dimension_numbers<[1], [0], [0], [1], [0, 0, 1, 1], [], []>} : vector<64x64xbf16>, vector<64x32xbf16>, vector<64x32xf32> -> vector<64x32xf32>
    %172 = arith.truncf %171 : vector<64x32xf32> to vector<64x32xbf16>
    %c0_157 = arith.constant 0 : index
    %c0_158 = arith.constant 0 : index
    %c0_159 = arith.constant 0 : index
    %173 = vector.load %arg12[%c0_157, %c0_158, %c0_159] : memref<9x32x32xbf16, #tpu.memory_space<vmem>>, vector<1x32x32xbf16>
    %174 = vector.shape_cast %173 : vector<1x32x32xbf16> to vector<32x32xbf16>
    %cst_160 = arith.constant dense<0.000000e+00> : vector<64x32xf32>
    %175 = tpu.matmul %172, %174, %cst_160 {dimension_numbers = #tpu.dot_dimension_numbers<[1], [0], [0], [1], [0, 0, 1, 1], [], []>} : vector<64x32xbf16>, vector<32x32xbf16>, vector<64x32xf32> -> vector<64x32xf32>
    %176 = arith.addf %168, %175 : vector<64x32xf32>
    %c1_161 = arith.constant 1 : index
    %c0_162 = arith.constant 0 : index
    %c0_163 = arith.constant 0 : index
    %177 = vector.load %arg10[%c1_161, %c0_162, %c0_163] : memref<9x64x64xbf16, #tpu.memory_space<vmem>>, vector<1x64x64xbf16>
    %178 = vector.shape_cast %177 : vector<1x64x64xbf16> to vector<64x64xbf16>
    %cst_164 = arith.constant dense<0.000000e+00> : vector<64x32xf32>
    %179 = tpu.matmul %178, %87, %cst_164 {dimension_numbers = #tpu.dot_dimension_numbers<[1], [0], [0], [1], [0, 0, 1, 1], [], []>} : vector<64x64xbf16>, vector<64x32xbf16>, vector<64x32xf32> -> vector<64x32xf32>
    %180 = arith.truncf %179 : vector<64x32xf32> to vector<64x32xbf16>
    %c1_165 = arith.constant 1 : index
    %c0_166 = arith.constant 0 : index
    %c0_167 = arith.constant 0 : index
    %181 = vector.load %arg12[%c1_165, %c0_166, %c0_167] : memref<9x32x32xbf16, #tpu.memory_space<vmem>>, vector<1x32x32xbf16>
    %182 = vector.shape_cast %181 : vector<1x32x32xbf16> to vector<32x32xbf16>
    %cst_168 = arith.constant dense<0.000000e+00> : vector<64x32xf32>
    %183 = tpu.matmul %180, %182, %cst_168 {dimension_numbers = #tpu.dot_dimension_numbers<[1], [0], [0], [1], [0, 0, 1, 1], [], []>} : vector<64x32xbf16>, vector<32x32xbf16>, vector<64x32xf32> -> vector<64x32xf32>
    %184 = arith.addf %176, %183 : vector<64x32xf32>
    %c2_169 = arith.constant 2 : index
    %c0_170 = arith.constant 0 : index
    %c0_171 = arith.constant 0 : index
    %185 = vector.load %arg10[%c2_169, %c0_170, %c0_171] : memref<9x64x64xbf16, #tpu.memory_space<vmem>>, vector<1x64x64xbf16>
    %186 = vector.shape_cast %185 : vector<1x64x64xbf16> to vector<64x64xbf16>
    %cst_172 = arith.constant dense<0.000000e+00> : vector<64x32xf32>
    %187 = tpu.matmul %186, %87, %cst_172 {dimension_numbers = #tpu.dot_dimension_numbers<[1], [0], [0], [1], [0, 0, 1, 1], [], []>} : vector<64x64xbf16>, vector<64x32xbf16>, vector<64x32xf32> -> vector<64x32xf32>
    %188 = arith.truncf %187 : vector<64x32xf32> to vector<64x32xbf16>
    %c2_173 = arith.constant 2 : index
    %c0_174 = arith.constant 0 : index
    %c0_175 = arith.constant 0 : index
    %189 = vector.load %arg12[%c2_173, %c0_174, %c0_175] : memref<9x32x32xbf16, #tpu.memory_space<vmem>>, vector<1x32x32xbf16>
    %190 = vector.shape_cast %189 : vector<1x32x32xbf16> to vector<32x32xbf16>
    %cst_176 = arith.constant dense<0.000000e+00> : vector<64x32xf32>
    %191 = tpu.matmul %188, %190, %cst_176 {dimension_numbers = #tpu.dot_dimension_numbers<[1], [0], [0], [1], [0, 0, 1, 1], [], []>} : vector<64x32xbf16>, vector<32x32xbf16>, vector<64x32xf32> -> vector<64x32xf32>
    %192 = arith.addf %184, %191 : vector<64x32xf32>
    %c3_177 = arith.constant 3 : index
    %c0_178 = arith.constant 0 : index
    %c0_179 = arith.constant 0 : index
    %193 = vector.load %arg10[%c3_177, %c0_178, %c0_179] : memref<9x64x64xbf16, #tpu.memory_space<vmem>>, vector<1x64x64xbf16>
    %194 = vector.shape_cast %193 : vector<1x64x64xbf16> to vector<64x64xbf16>
    %cst_180 = arith.constant dense<0.000000e+00> : vector<64x32xf32>
    %195 = tpu.matmul %194, %87, %cst_180 {dimension_numbers = #tpu.dot_dimension_numbers<[1], [0], [0], [1], [0, 0, 1, 1], [], []>} : vector<64x64xbf16>, vector<64x32xbf16>, vector<64x32xf32> -> vector<64x32xf32>
    %196 = arith.truncf %195 : vector<64x32xf32> to vector<64x32xbf16>
    %c3_181 = arith.constant 3 : index
    %c0_182 = arith.constant 0 : index
    %c0_183 = arith.constant 0 : index
    %197 = vector.load %arg12[%c3_181, %c0_182, %c0_183] : memref<9x32x32xbf16, #tpu.memory_space<vmem>>, vector<1x32x32xbf16>
    %198 = vector.shape_cast %197 : vector<1x32x32xbf16> to vector<32x32xbf16>
    %cst_184 = arith.constant dense<0.000000e+00> : vector<64x32xf32>
    %199 = tpu.matmul %196, %198, %cst_184 {dimension_numbers = #tpu.dot_dimension_numbers<[1], [0], [0], [1], [0, 0, 1, 1], [], []>} : vector<64x32xbf16>, vector<32x32xbf16>, vector<64x32xf32> -> vector<64x32xf32>
    %200 = arith.addf %192, %199 : vector<64x32xf32>
    %c4_185 = arith.constant 4 : index
    %c0_186 = arith.constant 0 : index
    %c0_187 = arith.constant 0 : index
    %201 = vector.load %arg10[%c4_185, %c0_186, %c0_187] : memref<9x64x64xbf16, #tpu.memory_space<vmem>>, vector<1x64x64xbf16>
    %202 = vector.shape_cast %201 : vector<1x64x64xbf16> to vector<64x64xbf16>
    %cst_188 = arith.constant dense<0.000000e+00> : vector<64x32xf32>
    %203 = tpu.matmul %202, %87, %cst_188 {dimension_numbers = #tpu.dot_dimension_numbers<[1], [0], [0], [1], [0, 0, 1, 1], [], []>} : vector<64x64xbf16>, vector<64x32xbf16>, vector<64x32xf32> -> vector<64x32xf32>
    %204 = arith.truncf %203 : vector<64x32xf32> to vector<64x32xbf16>
    %c4_189 = arith.constant 4 : index
    %c0_190 = arith.constant 0 : index
    %c0_191 = arith.constant 0 : index
    %205 = vector.load %arg12[%c4_189, %c0_190, %c0_191] : memref<9x32x32xbf16, #tpu.memory_space<vmem>>, vector<1x32x32xbf16>
    %206 = vector.shape_cast %205 : vector<1x32x32xbf16> to vector<32x32xbf16>
    %cst_192 = arith.constant dense<0.000000e+00> : vector<64x32xf32>
    %207 = tpu.matmul %204, %206, %cst_192 {dimension_numbers = #tpu.dot_dimension_numbers<[1], [0], [0], [1], [0, 0, 1, 1], [], []>} : vector<64x32xbf16>, vector<32x32xbf16>, vector<64x32xf32> -> vector<64x32xf32>
    %208 = arith.addf %200, %207 : vector<64x32xf32>
    %c5_193 = arith.constant 5 : index
    %c0_194 = arith.constant 0 : index
    %c0_195 = arith.constant 0 : index
    %209 = vector.load %arg10[%c5_193, %c0_194, %c0_195] : memref<9x64x64xbf16, #tpu.memory_space<vmem>>, vector<1x64x64xbf16>
    %210 = vector.shape_cast %209 : vector<1x64x64xbf16> to vector<64x64xbf16>
    %cst_196 = arith.constant dense<0.000000e+00> : vector<64x32xf32>
    %211 = tpu.matmul %210, %87, %cst_196 {dimension_numbers = #tpu.dot_dimension_numbers<[1], [0], [0], [1], [0, 0, 1, 1], [], []>} : vector<64x64xbf16>, vector<64x32xbf16>, vector<64x32xf32> -> vector<64x32xf32>
    %212 = arith.truncf %211 : vector<64x32xf32> to vector<64x32xbf16>
    %c5_197 = arith.constant 5 : index
    %c0_198 = arith.constant 0 : index
    %c0_199 = arith.constant 0 : index
    %213 = vector.load %arg12[%c5_197, %c0_198, %c0_199] : memref<9x32x32xbf16, #tpu.memory_space<vmem>>, vector<1x32x32xbf16>
    %214 = vector.shape_cast %213 : vector<1x32x32xbf16> to vector<32x32xbf16>
    %cst_200 = arith.constant dense<0.000000e+00> : vector<64x32xf32>
    %215 = tpu.matmul %212, %214, %cst_200 {dimension_numbers = #tpu.dot_dimension_numbers<[1], [0], [0], [1], [0, 0, 1, 1], [], []>} : vector<64x32xbf16>, vector<32x32xbf16>, vector<64x32xf32> -> vector<64x32xf32>
    %216 = arith.addf %208, %215 : vector<64x32xf32>
    %c6_201 = arith.constant 6 : index
    %c0_202 = arith.constant 0 : index
    %c0_203 = arith.constant 0 : index
    %217 = vector.load %arg10[%c6_201, %c0_202, %c0_203] : memref<9x64x64xbf16, #tpu.memory_space<vmem>>, vector<1x64x64xbf16>
    %218 = vector.shape_cast %217 : vector<1x64x64xbf16> to vector<64x64xbf16>
    %cst_204 = arith.constant dense<0.000000e+00> : vector<64x32xf32>
    %219 = tpu.matmul %218, %87, %cst_204 {dimension_numbers = #tpu.dot_dimension_numbers<[1], [0], [0], [1], [0, 0, 1, 1], [], []>} : vector<64x64xbf16>, vector<64x32xbf16>, vector<64x32xf32> -> vector<64x32xf32>
    %220 = arith.truncf %219 : vector<64x32xf32> to vector<64x32xbf16>
    %c6_205 = arith.constant 6 : index
    %c0_206 = arith.constant 0 : index
    %c0_207 = arith.constant 0 : index
    %221 = vector.load %arg12[%c6_205, %c0_206, %c0_207] : memref<9x32x32xbf16, #tpu.memory_space<vmem>>, vector<1x32x32xbf16>
    %222 = vector.shape_cast %221 : vector<1x32x32xbf16> to vector<32x32xbf16>
    %cst_208 = arith.constant dense<0.000000e+00> : vector<64x32xf32>
    %223 = tpu.matmul %220, %222, %cst_208 {dimension_numbers = #tpu.dot_dimension_numbers<[1], [0], [0], [1], [0, 0, 1, 1], [], []>} : vector<64x32xbf16>, vector<32x32xbf16>, vector<64x32xf32> -> vector<64x32xf32>
    %224 = arith.addf %216, %223 : vector<64x32xf32>
    %c7_209 = arith.constant 7 : index
    %c0_210 = arith.constant 0 : index
    %c0_211 = arith.constant 0 : index
    %225 = vector.load %arg10[%c7_209, %c0_210, %c0_211] : memref<9x64x64xbf16, #tpu.memory_space<vmem>>, vector<1x64x64xbf16>
    %226 = vector.shape_cast %225 : vector<1x64x64xbf16> to vector<64x64xbf16>
    %cst_212 = arith.constant dense<0.000000e+00> : vector<64x32xf32>
    %227 = tpu.matmul %226, %87, %cst_212 {dimension_numbers = #tpu.dot_dimension_numbers<[1], [0], [0], [1], [0, 0, 1, 1], [], []>} : vector<64x64xbf16>, vector<64x32xbf16>, vector<64x32xf32> -> vector<64x32xf32>
    %228 = arith.truncf %227 : vector<64x32xf32> to vector<64x32xbf16>
    %c7_213 = arith.constant 7 : index
    %c0_214 = arith.constant 0 : index
    %c0_215 = arith.constant 0 : index
    %229 = vector.load %arg12[%c7_213, %c0_214, %c0_215] : memref<9x32x32xbf16, #tpu.memory_space<vmem>>, vector<1x32x32xbf16>
    %230 = vector.shape_cast %229 : vector<1x32x32xbf16> to vector<32x32xbf16>
    %cst_216 = arith.constant dense<0.000000e+00> : vector<64x32xf32>
    %231 = tpu.matmul %228, %230, %cst_216 {dimension_numbers = #tpu.dot_dimension_numbers<[1], [0], [0], [1], [0, 0, 1, 1], [], []>} : vector<64x32xbf16>, vector<32x32xbf16>, vector<64x32xf32> -> vector<64x32xf32>
    %232 = arith.addf %224, %231 : vector<64x32xf32>
    %c8_217 = arith.constant 8 : index
    %c0_218 = arith.constant 0 : index
    %c0_219 = arith.constant 0 : index
    %233 = vector.load %arg10[%c8_217, %c0_218, %c0_219] : memref<9x64x64xbf16, #tpu.memory_space<vmem>>, vector<1x64x64xbf16>
    %234 = vector.shape_cast %233 : vector<1x64x64xbf16> to vector<64x64xbf16>
    %cst_220 = arith.constant dense<0.000000e+00> : vector<64x32xf32>
    %235 = tpu.matmul %234, %87, %cst_220 {dimension_numbers = #tpu.dot_dimension_numbers<[1], [0], [0], [1], [0, 0, 1, 1], [], []>} : vector<64x64xbf16>, vector<64x32xbf16>, vector<64x32xf32> -> vector<64x32xf32>
    %236 = arith.truncf %235 : vector<64x32xf32> to vector<64x32xbf16>
    %c8_221 = arith.constant 8 : index
    %c0_222 = arith.constant 0 : index
    %c0_223 = arith.constant 0 : index
    %237 = vector.load %arg12[%c8_221, %c0_222, %c0_223] : memref<9x32x32xbf16, #tpu.memory_space<vmem>>, vector<1x32x32xbf16>
    %238 = vector.shape_cast %237 : vector<1x32x32xbf16> to vector<32x32xbf16>
    %cst_224 = arith.constant dense<0.000000e+00> : vector<64x32xf32>
    %239 = tpu.matmul %236, %238, %cst_224 {dimension_numbers = #tpu.dot_dimension_numbers<[1], [0], [0], [1], [0, 0, 1, 1], [], []>} : vector<64x32xbf16>, vector<32x32xbf16>, vector<64x32xf32> -> vector<64x32xf32>
    %240 = arith.addf %232, %239 : vector<64x32xf32>
    %c0_225 = arith.constant 0 : index
    %c0_226 = arith.constant 0 : index
    %241 = vector.load %arg13[%c0_225, %c0_226] : memref<1x32xf32, #tpu.memory_space<vmem>>, vector<1x32xf32>
    %242 = vector.broadcast %241 : vector<1x32xf32> to vector<64x32xf32>
    %243 = arith.addf %240, %242 : vector<64x32xf32>
    %cst_227 = arith.constant 0.000000e+00 : f32
    %244 = vector.broadcast %cst_227 : f32 to vector<64x32xf32>
    %245 = arith.maximumf %243, %244 : vector<64x32xf32>
    %246 = arith.truncf %245 : vector<64x32xf32> to vector<64x32xbf16>
    %cst_228 = arith.constant 0.000000e+00 : f32
    %247 = vector.broadcast %cst_228 : f32 to vector<16x32xf32>
    %c0_229 = arith.constant 0 : index
    %c0_230 = arith.constant 0 : index
    %c0_231 = arith.constant 0 : index
    %248 = vector.load %arg11[%c0_229, %c0_230, %c0_231] : memref<9x16x16xbf16, #tpu.memory_space<vmem>>, vector<1x16x16xbf16>
    %249 = vector.shape_cast %248 : vector<1x16x16xbf16> to vector<16x16xbf16>
    %cst_232 = arith.constant dense<0.000000e+00> : vector<16x32xf32>
    %250 = tpu.matmul %249, %167, %cst_232 {dimension_numbers = #tpu.dot_dimension_numbers<[1], [0], [0], [1], [0, 0, 1, 1], [], []>} : vector<16x16xbf16>, vector<16x32xbf16>, vector<16x32xf32> -> vector<16x32xf32>
    %251 = arith.truncf %250 : vector<16x32xf32> to vector<16x32xbf16>
    %c0_233 = arith.constant 0 : index
    %c0_234 = arith.constant 0 : index
    %c0_235 = arith.constant 0 : index
    %252 = vector.load %arg12[%c0_233, %c0_234, %c0_235] : memref<9x32x32xbf16, #tpu.memory_space<vmem>>, vector<1x32x32xbf16>
    %253 = vector.shape_cast %252 : vector<1x32x32xbf16> to vector<32x32xbf16>
    %cst_236 = arith.constant dense<0.000000e+00> : vector<16x32xf32>
    %254 = tpu.matmul %251, %253, %cst_236 {dimension_numbers = #tpu.dot_dimension_numbers<[1], [0], [0], [1], [0, 0, 1, 1], [], []>} : vector<16x32xbf16>, vector<32x32xbf16>, vector<16x32xf32> -> vector<16x32xf32>
    %255 = arith.addf %247, %254 : vector<16x32xf32>
    %c1_237 = arith.constant 1 : index
    %c0_238 = arith.constant 0 : index
    %c0_239 = arith.constant 0 : index
    %256 = vector.load %arg11[%c1_237, %c0_238, %c0_239] : memref<9x16x16xbf16, #tpu.memory_space<vmem>>, vector<1x16x16xbf16>
    %257 = vector.shape_cast %256 : vector<1x16x16xbf16> to vector<16x16xbf16>
    %cst_240 = arith.constant dense<0.000000e+00> : vector<16x32xf32>
    %258 = tpu.matmul %257, %167, %cst_240 {dimension_numbers = #tpu.dot_dimension_numbers<[1], [0], [0], [1], [0, 0, 1, 1], [], []>} : vector<16x16xbf16>, vector<16x32xbf16>, vector<16x32xf32> -> vector<16x32xf32>
    %259 = arith.truncf %258 : vector<16x32xf32> to vector<16x32xbf16>
    %c1_241 = arith.constant 1 : index
    %c0_242 = arith.constant 0 : index
    %c0_243 = arith.constant 0 : index
    %260 = vector.load %arg12[%c1_241, %c0_242, %c0_243] : memref<9x32x32xbf16, #tpu.memory_space<vmem>>, vector<1x32x32xbf16>
    %261 = vector.shape_cast %260 : vector<1x32x32xbf16> to vector<32x32xbf16>
    %cst_244 = arith.constant dense<0.000000e+00> : vector<16x32xf32>
    %262 = tpu.matmul %259, %261, %cst_244 {dimension_numbers = #tpu.dot_dimension_numbers<[1], [0], [0], [1], [0, 0, 1, 1], [], []>} : vector<16x32xbf16>, vector<32x32xbf16>, vector<16x32xf32> -> vector<16x32xf32>
    %263 = arith.addf %255, %262 : vector<16x32xf32>
    %c2_245 = arith.constant 2 : index
    %c0_246 = arith.constant 0 : index
    %c0_247 = arith.constant 0 : index
    %264 = vector.load %arg11[%c2_245, %c0_246, %c0_247] : memref<9x16x16xbf16, #tpu.memory_space<vmem>>, vector<1x16x16xbf16>
    %265 = vector.shape_cast %264 : vector<1x16x16xbf16> to vector<16x16xbf16>
    %cst_248 = arith.constant dense<0.000000e+00> : vector<16x32xf32>
    %266 = tpu.matmul %265, %167, %cst_248 {dimension_numbers = #tpu.dot_dimension_numbers<[1], [0], [0], [1], [0, 0, 1, 1], [], []>} : vector<16x16xbf16>, vector<16x32xbf16>, vector<16x32xf32> -> vector<16x32xf32>
    %267 = arith.truncf %266 : vector<16x32xf32> to vector<16x32xbf16>
    %c2_249 = arith.constant 2 : index
    %c0_250 = arith.constant 0 : index
    %c0_251 = arith.constant 0 : index
    %268 = vector.load %arg12[%c2_249, %c0_250, %c0_251] : memref<9x32x32xbf16, #tpu.memory_space<vmem>>, vector<1x32x32xbf16>
    %269 = vector.shape_cast %268 : vector<1x32x32xbf16> to vector<32x32xbf16>
    %cst_252 = arith.constant dense<0.000000e+00> : vector<16x32xf32>
    %270 = tpu.matmul %267, %269, %cst_252 {dimension_numbers = #tpu.dot_dimension_numbers<[1], [0], [0], [1], [0, 0, 1, 1], [], []>} : vector<16x32xbf16>, vector<32x32xbf16>, vector<16x32xf32> -> vector<16x32xf32>
    %271 = arith.addf %263, %270 : vector<16x32xf32>
    %c3_253 = arith.constant 3 : index
    %c0_254 = arith.constant 0 : index
    %c0_255 = arith.constant 0 : index
    %272 = vector.load %arg11[%c3_253, %c0_254, %c0_255] : memref<9x16x16xbf16, #tpu.memory_space<vmem>>, vector<1x16x16xbf16>
    %273 = vector.shape_cast %272 : vector<1x16x16xbf16> to vector<16x16xbf16>
    %cst_256 = arith.constant dense<0.000000e+00> : vector<16x32xf32>
    %274 = tpu.matmul %273, %167, %cst_256 {dimension_numbers = #tpu.dot_dimension_numbers<[1], [0], [0], [1], [0, 0, 1, 1], [], []>} : vector<16x16xbf16>, vector<16x32xbf16>, vector<16x32xf32> -> vector<16x32xf32>
    %275 = arith.truncf %274 : vector<16x32xf32> to vector<16x32xbf16>
    %c3_257 = arith.constant 3 : index
    %c0_258 = arith.constant 0 : index
    %c0_259 = arith.constant 0 : index
    %276 = vector.load %arg12[%c3_257, %c0_258, %c0_259] : memref<9x32x32xbf16, #tpu.memory_space<vmem>>, vector<1x32x32xbf16>
    %277 = vector.shape_cast %276 : vector<1x32x32xbf16> to vector<32x32xbf16>
    %cst_260 = arith.constant dense<0.000000e+00> : vector<16x32xf32>
    %278 = tpu.matmul %275, %277, %cst_260 {dimension_numbers = #tpu.dot_dimension_numbers<[1], [0], [0], [1], [0, 0, 1, 1], [], []>} : vector<16x32xbf16>, vector<32x32xbf16>, vector<16x32xf32> -> vector<16x32xf32>
    %279 = arith.addf %271, %278 : vector<16x32xf32>
    %c4_261 = arith.constant 4 : index
    %c0_262 = arith.constant 0 : index
    %c0_263 = arith.constant 0 : index
    %280 = vector.load %arg11[%c4_261, %c0_262, %c0_263] : memref<9x16x16xbf16, #tpu.memory_space<vmem>>, vector<1x16x16xbf16>
    %281 = vector.shape_cast %280 : vector<1x16x16xbf16> to vector<16x16xbf16>
    %cst_264 = arith.constant dense<0.000000e+00> : vector<16x32xf32>
    %282 = tpu.matmul %281, %167, %cst_264 {dimension_numbers = #tpu.dot_dimension_numbers<[1], [0], [0], [1], [0, 0, 1, 1], [], []>} : vector<16x16xbf16>, vector<16x32xbf16>, vector<16x32xf32> -> vector<16x32xf32>
    %283 = arith.truncf %282 : vector<16x32xf32> to vector<16x32xbf16>
    %c4_265 = arith.constant 4 : index
    %c0_266 = arith.constant 0 : index
    %c0_267 = arith.constant 0 : index
    %284 = vector.load %arg12[%c4_265, %c0_266, %c0_267] : memref<9x32x32xbf16, #tpu.memory_space<vmem>>, vector<1x32x32xbf16>
    %285 = vector.shape_cast %284 : vector<1x32x32xbf16> to vector<32x32xbf16>
    %cst_268 = arith.constant dense<0.000000e+00> : vector<16x32xf32>
    %286 = tpu.matmul %283, %285, %cst_268 {dimension_numbers = #tpu.dot_dimension_numbers<[1], [0], [0], [1], [0, 0, 1, 1], [], []>} : vector<16x32xbf16>, vector<32x32xbf16>, vector<16x32xf32> -> vector<16x32xf32>
    %287 = arith.addf %279, %286 : vector<16x32xf32>
    %c5_269 = arith.constant 5 : index
    %c0_270 = arith.constant 0 : index
    %c0_271 = arith.constant 0 : index
    %288 = vector.load %arg11[%c5_269, %c0_270, %c0_271] : memref<9x16x16xbf16, #tpu.memory_space<vmem>>, vector<1x16x16xbf16>
    %289 = vector.shape_cast %288 : vector<1x16x16xbf16> to vector<16x16xbf16>
    %cst_272 = arith.constant dense<0.000000e+00> : vector<16x32xf32>
    %290 = tpu.matmul %289, %167, %cst_272 {dimension_numbers = #tpu.dot_dimension_numbers<[1], [0], [0], [1], [0, 0, 1, 1], [], []>} : vector<16x16xbf16>, vector<16x32xbf16>, vector<16x32xf32> -> vector<16x32xf32>
    %291 = arith.truncf %290 : vector<16x32xf32> to vector<16x32xbf16>
    %c5_273 = arith.constant 5 : index
    %c0_274 = arith.constant 0 : index
    %c0_275 = arith.constant 0 : index
    %292 = vector.load %arg12[%c5_273, %c0_274, %c0_275] : memref<9x32x32xbf16, #tpu.memory_space<vmem>>, vector<1x32x32xbf16>
    %293 = vector.shape_cast %292 : vector<1x32x32xbf16> to vector<32x32xbf16>
    %cst_276 = arith.constant dense<0.000000e+00> : vector<16x32xf32>
    %294 = tpu.matmul %291, %293, %cst_276 {dimension_numbers = #tpu.dot_dimension_numbers<[1], [0], [0], [1], [0, 0, 1, 1], [], []>} : vector<16x32xbf16>, vector<32x32xbf16>, vector<16x32xf32> -> vector<16x32xf32>
    %295 = arith.addf %287, %294 : vector<16x32xf32>
    %c6_277 = arith.constant 6 : index
    %c0_278 = arith.constant 0 : index
    %c0_279 = arith.constant 0 : index
    %296 = vector.load %arg11[%c6_277, %c0_278, %c0_279] : memref<9x16x16xbf16, #tpu.memory_space<vmem>>, vector<1x16x16xbf16>
    %297 = vector.shape_cast %296 : vector<1x16x16xbf16> to vector<16x16xbf16>
    %cst_280 = arith.constant dense<0.000000e+00> : vector<16x32xf32>
    %298 = tpu.matmul %297, %167, %cst_280 {dimension_numbers = #tpu.dot_dimension_numbers<[1], [0], [0], [1], [0, 0, 1, 1], [], []>} : vector<16x16xbf16>, vector<16x32xbf16>, vector<16x32xf32> -> vector<16x32xf32>
    %299 = arith.truncf %298 : vector<16x32xf32> to vector<16x32xbf16>
    %c6_281 = arith.constant 6 : index
    %c0_282 = arith.constant 0 : index
    %c0_283 = arith.constant 0 : index
    %300 = vector.load %arg12[%c6_281, %c0_282, %c0_283] : memref<9x32x32xbf16, #tpu.memory_space<vmem>>, vector<1x32x32xbf16>
    %301 = vector.shape_cast %300 : vector<1x32x32xbf16> to vector<32x32xbf16>
    %cst_284 = arith.constant dense<0.000000e+00> : vector<16x32xf32>
    %302 = tpu.matmul %299, %301, %cst_284 {dimension_numbers = #tpu.dot_dimension_numbers<[1], [0], [0], [1], [0, 0, 1, 1], [], []>} : vector<16x32xbf16>, vector<32x32xbf16>, vector<16x32xf32> -> vector<16x32xf32>
    %303 = arith.addf %295, %302 : vector<16x32xf32>
    %c7_285 = arith.constant 7 : index
    %c0_286 = arith.constant 0 : index
    %c0_287 = arith.constant 0 : index
    %304 = vector.load %arg11[%c7_285, %c0_286, %c0_287] : memref<9x16x16xbf16, #tpu.memory_space<vmem>>, vector<1x16x16xbf16>
    %305 = vector.shape_cast %304 : vector<1x16x16xbf16> to vector<16x16xbf16>
    %cst_288 = arith.constant dense<0.000000e+00> : vector<16x32xf32>
    %306 = tpu.matmul %305, %167, %cst_288 {dimension_numbers = #tpu.dot_dimension_numbers<[1], [0], [0], [1], [0, 0, 1, 1], [], []>} : vector<16x16xbf16>, vector<16x32xbf16>, vector<16x32xf32> -> vector<16x32xf32>
    %307 = arith.truncf %306 : vector<16x32xf32> to vector<16x32xbf16>
    %c7_289 = arith.constant 7 : index
    %c0_290 = arith.constant 0 : index
    %c0_291 = arith.constant 0 : index
    %308 = vector.load %arg12[%c7_289, %c0_290, %c0_291] : memref<9x32x32xbf16, #tpu.memory_space<vmem>>, vector<1x32x32xbf16>
    %309 = vector.shape_cast %308 : vector<1x32x32xbf16> to vector<32x32xbf16>
    %cst_292 = arith.constant dense<0.000000e+00> : vector<16x32xf32>
    %310 = tpu.matmul %307, %309, %cst_292 {dimension_numbers = #tpu.dot_dimension_numbers<[1], [0], [0], [1], [0, 0, 1, 1], [], []>} : vector<16x32xbf16>, vector<32x32xbf16>, vector<16x32xf32> -> vector<16x32xf32>
    %311 = arith.addf %303, %310 : vector<16x32xf32>
    %c8_293 = arith.constant 8 : index
    %c0_294 = arith.constant 0 : index
    %c0_295 = arith.constant 0 : index
    %312 = vector.load %arg11[%c8_293, %c0_294, %c0_295] : memref<9x16x16xbf16, #tpu.memory_space<vmem>>, vector<1x16x16xbf16>
    %313 = vector.shape_cast %312 : vector<1x16x16xbf16> to vector<16x16xbf16>
    %cst_296 = arith.constant dense<0.000000e+00> : vector<16x32xf32>
    %314 = tpu.matmul %313, %167, %cst_296 {dimension_numbers = #tpu.dot_dimension_numbers<[1], [0], [0], [1], [0, 0, 1, 1], [], []>} : vector<16x16xbf16>, vector<16x32xbf16>, vector<16x32xf32> -> vector<16x32xf32>
    %315 = arith.truncf %314 : vector<16x32xf32> to vector<16x32xbf16>
    %c8_297 = arith.constant 8 : index
    %c0_298 = arith.constant 0 : index
    %c0_299 = arith.constant 0 : index
    %316 = vector.load %arg12[%c8_297, %c0_298, %c0_299] : memref<9x32x32xbf16, #tpu.memory_space<vmem>>, vector<1x32x32xbf16>
    %317 = vector.shape_cast %316 : vector<1x32x32xbf16> to vector<32x32xbf16>
    %cst_300 = arith.constant dense<0.000000e+00> : vector<16x32xf32>
    %318 = tpu.matmul %315, %317, %cst_300 {dimension_numbers = #tpu.dot_dimension_numbers<[1], [0], [0], [1], [0, 0, 1, 1], [], []>} : vector<16x32xbf16>, vector<32x32xbf16>, vector<16x32xf32> -> vector<16x32xf32>
    %319 = arith.addf %311, %318 : vector<16x32xf32>
    %c0_301 = arith.constant 0 : index
    %c0_302 = arith.constant 0 : index
    %320 = vector.load %arg13[%c0_301, %c0_302] : memref<1x32xf32, #tpu.memory_space<vmem>>, vector<1x32xf32>
    %321 = vector.broadcast %320 : vector<1x32xf32> to vector<16x32xf32>
    %322 = arith.addf %319, %321 : vector<16x32xf32>
    %cst_303 = arith.constant 0.000000e+00 : f32
    %323 = vector.broadcast %cst_303 : f32 to vector<16x32xf32>
    %324 = arith.maximumf %322, %323 : vector<16x32xf32>
    %325 = arith.truncf %324 : vector<16x32xf32> to vector<16x32xbf16>
    %c0_304 = arith.constant 0 : index
    %c0_305 = arith.constant 0 : index
    %326 = vector.load %arg14[%c0_304, %c0_305] : memref<32x128xbf16, #tpu.memory_space<vmem>>, vector<32x128xbf16>
    %c0_306 = arith.constant 0 : index
    %c0_307 = arith.constant 0 : index
    %327 = vector.load %arg15[%c0_306, %c0_307] : memref<1x128xf32, #tpu.memory_space<vmem>>, vector<1x128xf32>
    %cst_308 = arith.constant dense<0.000000e+00> : vector<64x128xf32>
    %328 = tpu.matmul %246, %326, %cst_308 {dimension_numbers = #tpu.dot_dimension_numbers<[1], [0], [0], [1], [0, 0, 1, 1], [], []>} : vector<64x32xbf16>, vector<32x128xbf16>, vector<64x128xf32> -> vector<64x128xf32>
    %329 = vector.broadcast %327 : vector<1x128xf32> to vector<64x128xf32>
    %330 = arith.addf %328, %329 : vector<64x128xf32>
    %331 = tpu.iota {dimensions = array<i32: 1>} : vector<64x128xi32>
    %cst_309 = arith.constant 0.000000e+00 : f32
    %332 = vector.broadcast %cst_309 : f32 to vector<64x128xf32>
    %333 = arith.subf %332, %330 : vector<64x128xf32>
    %334 = math.exp %333 : vector<64x128xf32>
    %cst_310 = arith.constant 1.000000e+00 : f32
    %335 = vector.broadcast %cst_310 : f32 to vector<64x128xf32>
    %336 = arith.addf %335, %334 : vector<64x128xf32>
    %337 = tpu.reciprocal %336 {approx = true} : vector<64x128xf32> -> vector<64x128xf32>
    %c3_i32 = arith.constant 3 : i32
    %338 = vector.broadcast %c3_i32 : i32 to vector<64x128xi32>
    %339 = arith.cmpi slt, %331, %338 : vector<64x128xi32>
    %340 = arith.select %339, %337, %330 : vector<64x128xi1>, vector<64x128xf32>
    %341 = arith.truncf %340 : vector<64x128xf32> to vector<64x128xbf16>
    %c0_311 = arith.constant 0 : index
    %c0_312 = arith.constant 0 : index
    %c0_313 = arith.constant 0 : index
    %342 = vector.load %arg17[%c0_311, %c0_312, %c0_313] : memref<1x80x128xbf16, #tpu.memory_space<vmem>>, vector<1x64x128xbf16>
    %343 = vector.shape_cast %342 : vector<1x64x128xbf16> to vector<64x128xbf16>
    %344 = vector.shape_cast %341 : vector<64x128xbf16> to vector<1x64x128xbf16>
    tpu.vector_store %arg17[%c0_311, %c0_312, %c0_313], %344 {strides = array<i32>} : memref<1x80x128xbf16, #tpu.memory_space<vmem>>, vector<1x64x128xbf16>,
    %cst_314 = arith.constant dense<0.000000e+00> : vector<16x128xf32>
    %345 = tpu.matmul %325, %326, %cst_314 {dimension_numbers = #tpu.dot_dimension_numbers<[1], [0], [0], [1], [0, 0, 1, 1], [], []>} : vector<16x32xbf16>, vector<32x128xbf16>, vector<16x128xf32> -> vector<16x128xf32>
    %346 = vector.broadcast %327 : vector<1x128xf32> to vector<16x128xf32>
    %347 = arith.addf %345, %346 : vector<16x128xf32>
    %348 = tpu.iota {dimensions = array<i32: 1>} : vector<16x128xi32>
    %cst_315 = arith.constant 0.000000e+00 : f32
    %349 = vector.broadcast %cst_315 : f32 to vector<16x128xf32>
    %350 = arith.subf %349, %347 : vector<16x128xf32>
    %351 = math.exp %350 : vector<16x128xf32>
    %cst_316 = arith.constant 1.000000e+00 : f32
    %352 = vector.broadcast %cst_316 : f32 to vector<16x128xf32>
    %353 = arith.addf %352, %351 : vector<16x128xf32>
    %354 = tpu.reciprocal %353 {approx = true} : vector<16x128xf32> -> vector<16x128xf32>
    %c3_i32_317 = arith.constant 3 : i32
    %355 = vector.broadcast %c3_i32_317 : i32 to vector<16x128xi32>
    %356 = arith.cmpi slt, %348, %355 : vector<16x128xi32>
    %357 = arith.select %356, %354, %347 : vector<16x128xi1>, vector<16x128xf32>
    %358 = arith.truncf %357 : vector<16x128xf32> to vector<16x128xbf16>
    %c0_318 = arith.constant 0 : index
    %c64 = arith.constant 64 : index
    %c0_319 = arith.constant 0 : index
    %359 = vector.load %arg17[%c0_318, %c64, %c0_319] : memref<1x80x128xbf16, #tpu.memory_space<vmem>>, vector<1x16x128xbf16>
    %360 = vector.shape_cast %359 : vector<1x16x128xbf16> to vector<16x128xbf16>
    %361 = vector.shape_cast %358 : vector<16x128xbf16> to vector<1x16x128xbf16>
    tpu.vector_store %arg17[%c0_318, %c64, %c0_319], %361 {strides = array<i32>} : memref<1x80x128xbf16, #tpu.memory_space<vmem>>, vector<1x16x128xbf16>,
    return
  }
  func.func @transform_0(%arg0: i32) -> (i32, i32) {
    %c0_i32 = arith.constant 0 : i32
    %c0_i32_0 = arith.constant 0 : i32
    return %arg0, %c0_i32 : i32, i32
  }
  func.func @transform_1(%arg0: i32) -> (i32, i32) {
    %c0_i32 = arith.constant 0 : i32
    %c0_i32_0 = arith.constant 0 : i32
    %c0_i32_1 = arith.constant 0 : i32
    return %c0_i32, %c0_i32_0 : i32, i32
  }
  func.func @transform_2(%arg0: i32) -> (i32, i32) {
    %c0_i32 = arith.constant 0 : i32
    %c0_i32_0 = arith.constant 0 : i32
    %c0_i32_1 = arith.constant 0 : i32
    return %c0_i32, %c0_i32_0 : i32, i32
  }
  func.func @transform_3(%arg0: i32) -> (i32, i32, i32) {
    %c0_i32 = arith.constant 0 : i32
    %c0_i32_0 = arith.constant 0 : i32
    %c0_i32_1 = arith.constant 0 : i32
    %c0_i32_2 = arith.constant 0 : i32
    return %c0_i32, %c0_i32_0, %c0_i32_1 : i32, i32, i32
  }
  func.func @transform_4(%arg0: i32) -> (i32, i32, i32) {
    %c0_i32 = arith.constant 0 : i32
    %c0_i32_0 = arith.constant 0 : i32
    %c0_i32_1 = arith.constant 0 : i32
    %c0_i32_2 = arith.constant 0 : i32
    return %c0_i32, %c0_i32_0, %c0_i32_1 : i32, i32, i32
  }
  func.func @transform_5(%arg0: i32) -> (i32, i32) {
    %c0_i32 = arith.constant 0 : i32
    %c0_i32_0 = arith.constant 0 : i32
    %c0_i32_1 = arith.constant 0 : i32
    return %c0_i32, %c0_i32_0 : i32, i32
  }
  func.func @transform_6(%arg0: i32) -> (i32, i32, i32) {
    %c0_i32 = arith.constant 0 : i32
    %c0_i32_0 = arith.constant 0 : i32
    %c0_i32_1 = arith.constant 0 : i32
    %c0_i32_2 = arith.constant 0 : i32
    return %c0_i32, %c0_i32_0, %c0_i32_1 : i32, i32, i32
  }
  func.func @transform_7(%arg0: i32) -> (i32, i32, i32) {
    %c0_i32 = arith.constant 0 : i32
    %c0_i32_0 = arith.constant 0 : i32
    %c0_i32_1 = arith.constant 0 : i32
    %c0_i32_2 = arith.constant 0 : i32
    return %c0_i32, %c0_i32_0, %c0_i32_1 : i32, i32, i32
  }
  func.func @transform_8(%arg0: i32) -> (i32, i32) {
    %c0_i32 = arith.constant 0 : i32
    %c0_i32_0 = arith.constant 0 : i32
    %c0_i32_1 = arith.constant 0 : i32
    return %c0_i32, %c0_i32_0 : i32, i32
  }
  func.func @transform_9(%arg0: i32) -> (i32, i32, i32) {
    %c0_i32 = arith.constant 0 : i32
    %c0_i32_0 = arith.constant 0 : i32
    %c0_i32_1 = arith.constant 0 : i32
    %c0_i32_2 = arith.constant 0 : i32
    return %c0_i32, %c0_i32_0, %c0_i32_1 : i32, i32, i32
  }
  func.func @transform_10(%arg0: i32) -> (i32, i32, i32) {
    %c0_i32 = arith.constant 0 : i32
    %c0_i32_0 = arith.constant 0 : i32
    %c0_i32_1 = arith.constant 0 : i32
    %c0_i32_2 = arith.constant 0 : i32
    return %c0_i32, %c0_i32_0, %c0_i32_1 : i32, i32, i32
  }
  func.func @transform_11(%arg0: i32) -> (i32, i32, i32) {
    %c0_i32 = arith.constant 0 : i32
    %c0_i32_0 = arith.constant 0 : i32
    %c0_i32_1 = arith.constant 0 : i32
    %c0_i32_2 = arith.constant 0 : i32
    return %c0_i32, %c0_i32_0, %c0_i32_1 : i32, i32, i32
  }
  func.func @transform_12(%arg0: i32) -> (i32, i32) {
    %c0_i32 = arith.constant 0 : i32
    %c0_i32_0 = arith.constant 0 : i32
    %c0_i32_1 = arith.constant 0 : i32
    return %c0_i32, %c0_i32_0 : i32, i32
  }
  func.func @transform_13(%arg0: i32) -> (i32, i32) {
    %c0_i32 = arith.constant 0 : i32
    %c0_i32_0 = arith.constant 0 : i32
    %c0_i32_1 = arith.constant 0 : i32
    return %c0_i32, %c0_i32_0 : i32, i32
  }
  func.func @transform_14(%arg0: i32) -> (i32, i32) {
    %c0_i32 = arith.constant 0 : i32
    %c0_i32_0 = arith.constant 0 : i32
    %c0_i32_1 = arith.constant 0 : i32
    return %c0_i32, %c0_i32_0 : i32, i32
  }
  func.func @transform_15(%arg0: i32) -> (i32, i32) {
    %c0_i32 = arith.constant 0 : i32
    %c0_i32_0 = arith.constant 0 : i32
    return %arg0, %c0_i32 : i32, i32
  }
  func.func @transform_16(%arg0: i32) -> (i32, i32, i32) {
    %c0_i32 = arith.constant 0 : i32
    %c0_i32_0 = arith.constant 0 : i32
    %c0_i32_1 = arith.constant 0 : i32
    return %arg0, %c0_i32, %c0_i32_0 : i32, i32, i32
  }
}

module attributes {stable_mosaic.version = 11 : i64} {
  func.func @_box_head_kernel(%arg0: memref<16x8xf32, #tpu.memory_space<vmem>>, %arg1: memref<128x32xbf16, #tpu.memory_space<vmem>>, %arg2: memref<32x64xbf16, #tpu.memory_space<vmem>>, %arg3: memref<1x64xf32, #tpu.memory_space<vmem>>, %arg4: memref<64x64xbf16, #tpu.memory_space<vmem>>, %arg5: memref<1x64xf32, #tpu.memory_space<vmem>>, %arg6: memref<64x128xbf16, #tpu.memory_space<vmem>>, %arg7: memref<1x128xf32, #tpu.memory_space<vmem>>, %arg8: memref<16x128xf32, #tpu.memory_space<vmem>>) attributes {dimension_semantics = [], scalar_prefetch = 0 : i64, scratch_operands = 0 : i64, tpu.core_type = #tpu.core_type<tc>} {
    %c0 = arith.constant 0 : index
    %c0_0 = arith.constant 0 : index
    %0 = vector.load %arg0[%c0, %c0_0] : memref<16x8xf32, #tpu.memory_space<vmem>>, vector<16x8xf32>
    %1 = vector.extract_strided_slice %0 {offsets = [0, 0], sizes = [16, 1], strides = [1, 1]} : vector<16x8xf32> to vector<16x1xf32>
    %2 = vector.extract_strided_slice %0 {offsets = [0, 1], sizes = [16, 1], strides = [1, 1]} : vector<16x8xf32> to vector<16x1xf32>
    %3 = vector.extract_strided_slice %0 {offsets = [0, 2], sizes = [16, 1], strides = [1, 1]} : vector<16x8xf32> to vector<16x1xf32>
    %4 = vector.extract_strided_slice %0 {offsets = [0, 3], sizes = [16, 1], strides = [1, 1]} : vector<16x8xf32> to vector<16x1xf32>
    %5 = vector.extract_strided_slice %0 {offsets = [0, 4], sizes = [16, 1], strides = [1, 1]} : vector<16x8xf32> to vector<16x1xf32>
    %6 = tpu.iota {dimensions = array<i32: 1>} : vector<1x128xi32>
    %c6_i32 = arith.constant 6 : i32
    %7 = vector.broadcast %c6_i32 : i32 to vector<1x128xi32>
    %8 = arith.shrsi %6, %7 : vector<1x128xi32>
    %9 = arith.sitofp %8 : vector<1x128xi32> to vector<1x128xf32>
    %c3_i32 = arith.constant 3 : i32
    %10 = vector.broadcast %c3_i32 : i32 to vector<1x128xi32>
    %11 = arith.shrsi %6, %10 : vector<1x128xi32>
    %c7_i32 = arith.constant 7 : i32
    %12 = vector.broadcast %c7_i32 : i32 to vector<1x128xi32>
    %13 = arith.andi %11, %12 : vector<1x128xi32>
    %14 = arith.sitofp %13 : vector<1x128xi32> to vector<1x128xf32>
    %c7_i32_1 = arith.constant 7 : i32
    %15 = vector.broadcast %c7_i32_1 : i32 to vector<1x128xi32>
    %16 = arith.andi %6, %15 : vector<1x128xi32>
    %17 = arith.sitofp %16 : vector<1x128xi32> to vector<1x128xf32>
    %18 = vector.broadcast %9 : vector<1x128xf32> to vector<16x128xf32>
    %19 = vector.broadcast %1 : vector<16x1xf32> to vector<16x128xf32>
    %20 = arith.cmpf oeq, %18, %19 : vector<16x128xf32>
    %21 = vector.broadcast %17 : vector<1x128xf32> to vector<16x128xf32>
    %22 = vector.broadcast %2 : vector<16x1xf32> to vector<16x128xf32>
    %23 = arith.cmpf oge, %21, %22 : vector<16x128xf32>
    %24 = arith.andi %20, %23 : vector<16x128xi1>
    %25 = vector.broadcast %17 : vector<1x128xf32> to vector<16x128xf32>
    %26 = vector.broadcast %4 : vector<16x1xf32> to vector<16x128xf32>
    %27 = arith.cmpf ole, %25, %26 : vector<16x128xf32>
    %28 = arith.andi %24, %27 : vector<16x128xi1>
    %29 = vector.broadcast %14 : vector<1x128xf32> to vector<16x128xf32>
    %30 = vector.broadcast %3 : vector<16x1xf32> to vector<16x128xf32>
    %31 = arith.cmpf oge, %29, %30 : vector<16x128xf32>
    %32 = arith.andi %28, %31 : vector<16x128xi1>
    %33 = vector.broadcast %14 : vector<1x128xf32> to vector<16x128xf32>
    %34 = vector.broadcast %5 : vector<16x1xf32> to vector<16x128xf32>
    %35 = arith.cmpf ole, %33, %34 : vector<16x128xf32>
    %36 = arith.andi %32, %35 : vector<16x128xi1>
    %37 = arith.extui %36 : vector<16x128xi1> to vector<16x128xi32>
    %38 = arith.sitofp %37 : vector<16x128xi32> to vector<16x128xf32>
    %cst = arith.constant dense<0.000000e+00> : vector<16xf32>
    %39 = vector.multi_reduction <add>, %38, %cst [1] : vector<16x128xf32> to vector<16xf32>
    %40 = vector.shape_cast %39 : vector<16xf32> to vector<16x1xf32>
    %cst_2 = arith.constant 1.000000e+00 : f32
    %41 = vector.broadcast %cst_2 : f32 to vector<16x1xf32>
    %42 = arith.maximumf %40, %41 : vector<16x1xf32>
    %43 = tpu.reciprocal %42 {approx = true} : vector<16x1xf32> -> vector<16x1xf32>
    %44 = vector.broadcast %43 : vector<16x1xf32> to vector<16x128xf32>
    %45 = arith.mulf %38, %44 : vector<16x128xf32>
    %46 = arith.truncf %45 : vector<16x128xf32> to vector<16x128xbf16>
    %c0_3 = arith.constant 0 : index
    %c0_4 = arith.constant 0 : index
    %47 = vector.load %arg1[%c0_3, %c0_4] : memref<128x32xbf16, #tpu.memory_space<vmem>>, vector<128x32xbf16>
    %cst_5 = arith.constant dense<0.000000e+00> : vector<16x32xf32>
    %48 = tpu.matmul %46, %47, %cst_5 {dimension_numbers = #tpu.dot_dimension_numbers<[1], [0], [0], [1], [0, 0, 1, 1], [], []>} : vector<16x128xbf16>, vector<128x32xbf16>, vector<16x32xf32> -> vector<16x32xf32>
    %49 = arith.truncf %48 : vector<16x32xf32> to vector<16x32xbf16>
    %c0_6 = arith.constant 0 : index
    %c0_7 = arith.constant 0 : index
    %50 = vector.load %arg2[%c0_6, %c0_7] : memref<32x64xbf16, #tpu.memory_space<vmem>>, vector<32x64xbf16>
    %cst_8 = arith.constant dense<0.000000e+00> : vector<16x64xf32>
    %51 = tpu.matmul %49, %50, %cst_8 {dimension_numbers = #tpu.dot_dimension_numbers<[1], [0], [0], [1], [0, 0, 1, 1], [], []>} : vector<16x32xbf16>, vector<32x64xbf16>, vector<16x64xf32> -> vector<16x64xf32>
    %c0_9 = arith.constant 0 : index
    %c0_10 = arith.constant 0 : index
    %52 = vector.load %arg3[%c0_9, %c0_10] : memref<1x64xf32, #tpu.memory_space<vmem>>, vector<1x64xf32>
    %53 = vector.broadcast %52 : vector<1x64xf32> to vector<16x64xf32>
    %54 = arith.addf %51, %53 : vector<16x64xf32>
    %cst_11 = arith.constant 0.000000e+00 : f32
    %55 = vector.broadcast %cst_11 : f32 to vector<16x64xf32>
    %56 = arith.maximumf %54, %55 : vector<16x64xf32>
    %57 = arith.truncf %56 : vector<16x64xf32> to vector<16x64xbf16>
    %c0_12 = arith.constant 0 : index
    %c0_13 = arith.constant 0 : index
    %58 = vector.load %arg4[%c0_12, %c0_13] : memref<64x64xbf16, #tpu.memory_space<vmem>>, vector<64x64xbf16>
    %cst_14 = arith.constant dense<0.000000e+00> : vector<16x64xf32>
    %59 = tpu.matmul %57, %58, %cst_14 {dimension_numbers = #tpu.dot_dimension_numbers<[1], [0], [0], [1], [0, 0, 1, 1], [], []>} : vector<16x64xbf16>, vector<64x64xbf16>, vector<16x64xf32> -> vector<16x64xf32>
    %c0_15 = arith.constant 0 : index
    %c0_16 = arith.constant 0 : index
    %60 = vector.load %arg5[%c0_15, %c0_16] : memref<1x64xf32, #tpu.memory_space<vmem>>, vector<1x64xf32>
    %61 = vector.broadcast %60 : vector<1x64xf32> to vector<16x64xf32>
    %62 = arith.addf %59, %61 : vector<16x64xf32>
    %cst_17 = arith.constant 0.000000e+00 : f32
    %63 = vector.broadcast %cst_17 : f32 to vector<16x64xf32>
    %64 = arith.maximumf %62, %63 : vector<16x64xf32>
    %65 = arith.truncf %64 : vector<16x64xf32> to vector<16x64xbf16>
    %c0_18 = arith.constant 0 : index
    %c0_19 = arith.constant 0 : index
    %66 = vector.load %arg6[%c0_18, %c0_19] : memref<64x128xbf16, #tpu.memory_space<vmem>>, vector<64x128xbf16>
    %cst_20 = arith.constant dense<0.000000e+00> : vector<16x128xf32>
    %67 = tpu.matmul %65, %66, %cst_20 {dimension_numbers = #tpu.dot_dimension_numbers<[1], [0], [0], [1], [0, 0, 1, 1], [], []>} : vector<16x64xbf16>, vector<64x128xbf16>, vector<16x128xf32> -> vector<16x128xf32>
    %c0_21 = arith.constant 0 : index
    %c0_22 = arith.constant 0 : index
    %68 = vector.load %arg7[%c0_21, %c0_22] : memref<1x128xf32, #tpu.memory_space<vmem>>, vector<1x128xf32>
    %69 = vector.broadcast %68 : vector<1x128xf32> to vector<16x128xf32>
    %70 = arith.addf %67, %69 : vector<16x128xf32>
    %71 = tpu.iota {dimensions = array<i32: 1>} : vector<16x128xi32>
    %c5_i32 = arith.constant 5 : i32
    %72 = vector.broadcast %c5_i32 : i32 to vector<16x128xi32>
    %73 = arith.cmpi slt, %71, %72 : vector<16x128xi32>
    %cst_23 = arith.constant -1.000000e+30 : f32
    %74 = vector.broadcast %cst_23 : f32 to vector<16x128xf32>
    %75 = arith.select %73, %70, %74 : vector<16x128xi1>, vector<16x128xf32>
    %cst_24 = arith.constant dense<0xFF800000> : vector<16xf32>
    %76 = vector.multi_reduction <maximumf>, %75, %cst_24 [1] : vector<16x128xf32> to vector<16xf32>
    %77 = vector.shape_cast %76 : vector<16xf32> to vector<16x1xf32>
    %78 = vector.broadcast %77 : vector<16x1xf32> to vector<16x128xf32>
    %79 = arith.subf %75, %78 : vector<16x128xf32>
    %80 = math.exp %79 : vector<16x128xf32>
    %cst_25 = arith.constant 0.000000e+00 : f32
    %81 = vector.broadcast %cst_25 : f32 to vector<16x128xf32>
    %82 = arith.select %73, %80, %81 : vector<16x128xi1>, vector<16x128xf32>
    %cst_26 = arith.constant dense<0.000000e+00> : vector<16xf32>
    %83 = vector.multi_reduction <add>, %82, %cst_26 [1] : vector<16x128xf32> to vector<16xf32>
    %84 = vector.shape_cast %83 : vector<16xf32> to vector<16x1xf32>
    %85 = tpu.reciprocal %84 {approx = true} : vector<16x1xf32> -> vector<16x1xf32>
    %86 = vector.broadcast %85 : vector<16x1xf32> to vector<16x128xf32>
    %87 = arith.mulf %82, %86 : vector<16x128xf32>
    %88 = arith.select %73, %87, %70 : vector<16x128xi1>, vector<16x128xf32>
    %c0_27 = arith.constant 0 : index
    %c0_28 = arith.constant 0 : index
    %89 = vector.load %arg8[%c0_27, %c0_28] : memref<16x128xf32, #tpu.memory_space<vmem>>, vector<16x128xf32>
    tpu.vector_store %arg8[%c0_27, %c0_28], %88 {strides = array<i32>} : memref<16x128xf32, #tpu.memory_space<vmem>>, vector<16x128xf32>,
    return
  }
}

</mosaic_0001>

<bundles_post_ra>
// kernel: generalized_rcnn_forward.3
= control target key start
LH: loop header
LB: loop body
LE: loop exit
PB: predicated region body
PF: predicated region fallthrough
CT: control target
= control target key end

     0   :  { %v501_v0 = vmov 1   ;;  %v502_v1 = vmov 0   ;;  %v503_v3 = vmov 3   ;;  %v504_v5 = vmov 2   ;;  %s647_s0 = inlined_call_operand.vmem [shape: f32[16,8], index: 0, kind: input, shape index: {}]   ;;  %s648_s1 = inlined_call_operand.vmem [shape: bf16[128,32], index: 1, kind: input, shape index: {}]   ;;  %s649_s3 = inlined_call_operand.vmem [shape: f32[1,64], index: 3, kind: input, shape index: {}]   ;;  %s650_s2 = inlined_call_operand.vmem [shape: bf16[32,64], index: 2, kind: input, shape index: {}]   ;;  %s651_s5 = inlined_call_operand.vmem [shape: f32[1,64], index: 5, kind: input, shape index: {}]   ;;  %s652_s4 = inlined_call_operand.vmem [shape: bf16[64,64], index: 4, kind: input, shape index: {}]   ;;  %s653_s7 = inlined_call_operand.vmem [shape: f32[1,128], index: 7, kind: input, shape index: {}]   ;;  %s654_s6 = inlined_call_operand.vmem [shape: bf16[64,128], index: 6, kind: input, shape index: {}]   ;;  %s655_s8 = inlined_call_operand.vmem [shape: f32[16,128], index: 8, kind: output, shape index: {}]  }
   0x1   :  { %479 = vset.pattern.permute.xlu1 %v501_v0  ;;  %478 = vset.pattern.permute.xlu0 %v502_v1  ;;  %v30_v2 = vld [vmem:[%s647_s0] sm:$0xff]  ;;  %v31_v4 = vld [vmem:[%s647_s0 + $0x8] sm:$0xff]  ;;  %v505_v6 = vmov 4   ;;  %v32_v8 = vlaneseq  ;;  %v461_v9 = vld [vmem:[%s648_s1 + $0x38] sm:$0xff]  ;;  %v506_v28 = vmov 0.0  }
   0x2   :  { %54 = vperm.xlu1 %479, %v30_v2   ;;  %43 = vperm.xlu0 %478, %v30_v2   ;;  %v460_v12 = vld [vmem:[%s648_s1 + $0x30] sm:$0xff]  ;;  %v459_v14 = vld [vmem:[%s648_s1 + $0x28] sm:$0xff]  ;;  %v458_v32 = vld [vmem:[%s648_s1 + $0x20] sm:$0xff] }
   0x3   :  { %480 = vset.pattern.permute.xlu2 %v503_v3  ;;  %180 = vmatpush.bf16.msra.mxu0 %v461_v9  ;;  %v564_v13 = vand.u32 127, %v32_v8  ;;  %v457_v33 = vld [vmem:[%s648_s1 + $0x18] sm:$0xff]  ;;  %v456_v34 = vld [vmem:[%s648_s1 + $0x10] sm:$0xff]  ;;  %v455_v35 = vld [vmem:[%s648_s1 + $0x8] sm:$0xff] }
   0x4   :  { %66 = vperm.xlu2 %480, %v30_v2   ;;  %v454_v36 = vld [vmem:[%s648_s1] sm:$0xff]  ;;  %v463_v46 = vld [vmem:[%s650_s2 + $0x8] sm:$0xff]  ;;  %v467_v51 = vld [vmem:[%s652_s4 + $0x18] sm:$0xff] }
   0x5   :  { %v39_v15 = vand.u32 7, %v564_v13  ;;  %v34_v16 = vshra.s32 %v564_v13, 6  ;;  %v36_v18 = vshra.s32 %v564_v13, 3  ;;  %225 = vmatpush.bf16.msra.mxu1 %v463_v46  ;;  %v462_v47 = vld [vmem:[%s650_s2] sm:$0xff]  ;;  %280 = vmatpush.bf16.msra.mxu2 %v467_v51  ;;  %v466_v52 = vld [vmem:[%s652_s4 + $0x10] sm:$0xff]  ;;  %v465_v53 = vld [vmem:[%s652_s4 + $0x8] sm:$0xff] }
   0x6   :  { %v464_v54 = vld [vmem:[%s652_s4] sm:$0xff]  ;;  %v471_v63 = vld [vmem:[%s654_s6 + $0x18] sm:$0xff]  ;;  %v470_v0 = vld [vmem:[%s654_s6 + $0x10] sm:$0xff] }
   0x7   :  { %181 = vmatpush.bf16.msra.mxu0 %v460_v12  ;;  %v40_v21 = vcvt.s32.f32 %v39_v15  ;;  %v35_v22 = vcvt.s32.f32 %v34_v16  ;;  %v37_v23 = vand.u32 7, %v36_v18  ;;  %v486_v56 = vld [vmem:[%s649_s3] ss:$0 sm:$0xff]  ;;  %336 = vmatpush.bf16.msra.mxu3 %v471_v63  ;;  %v469_v1 = vld [vmem:[%s654_s6 + $0x8] sm:$0xff] }
   0x9   :  { %v38_v24 = vcvt.s32.f32 %v37_v23  ;;  %226 = vmatpush.bf16.msra.mxu1 %v462_v47  ;;  %281 = vmatpush.bf16.msra.mxu2 %v466_v52 }
   0xa   :  { %58 = vperm.xlu1 %479, %v31_v4   ;;  %48 = vperm.xlu0 %478, %v31_v4  }
   0xb   :  { %182 = vmatpush.bf16.msra.mxu0 %v459_v14  ;;  %337 = vmatpush.bf16.msra.mxu3 %v470_v0 }
   0xc   :  { %70 = vperm.xlu2 %480, %v31_v4  }
   0xd   :  { %282 = vmatpush.bf16.msra.mxu2 %v465_v53 }
   0xf   :  { %183 = vmatpush.bf16.msra.mxu0 %v458_v32  ;;  %338 = vmatpush.bf16.msra.mxu3 %v469_v1 }
  0x11   :  { %283 = vmatpush.bf16.msra.mxu2 %v464_v54 }
  0x12   :  { %482 = vset.pattern.permute.xlu1 %v504_v5  ;;  %481 = vset.pattern.permute.xlu0 %v504_v5 }
  0x13   :  { %82 = vperm.xlu1 %482, %v31_v4   ;;  %78 = vperm.xlu0 %481, %v30_v2  }
  0x14   :  { %483 = vset.pattern.permute.xlu2 %v505_v6  ;;  %184 = vmatpush.bf16.msra.mxu0 %v457_v33 }
  0x15   :  { %90 = vperm.xlu2 %483, %v30_v2   ;;  %v468_v2 = vld [vmem:[%s654_s6] sm:$0xff] }
  0x16   :  { %339 = vmatpush.bf16.msra.mxu3 %v468_v2 }
  0x18   :  { %185 = vmatpush.bf16.msra.mxu0 %v456_v34 }
  0x1b   :  { %484 = vset.pattern.permute.xlu1 %v505_v6  ;;  %485 = vset.pattern.permute.xlu0 %v505_v6 }
  0x1c   :  { %94 = vperm.xlu1 %484, %v31_v4   ;;  %186 = vmatpush.bf16.msra.mxu0 %v455_v35  ;;  %v487_v4 = vld [vmem:[%s651_s5] ss:$0 sm:$0xff] }
  0x20   :  { %187 = vmatpush.bf16.msra.mxu0 %v454_v36 }
  0x5e   :  { %v67_v7 = vpop.permute.xlu2 %66 }
  0x5f   :  { %vm73_vm3 = vcmp.le.f32.partialorder %v40_v21, %v67_v7 }
  0x66   :  { %v71_v17 = vpop.permute.xlu2 %70 }
  0x67   :  { %vm74_vm12 = vcmp.le.f32.partialorder %v40_v21, %v71_v17 }
  0x6f   :  { %v91_v25 = vpop.permute.xlu2 %90 }
  0x70   :  { %vm97_vm5 = vcmp.le.f32.partialorder %v38_v24, %v91_v25 }
  0x74   :  { %v55_v10 = vpop.permute.xlu1 %54  ;;  %v44_v11 = vpop.permute.xlu0 %43 }
  0x75   :  { %vm61_vm0 = vcmp.ge.f32.partialorder %v40_v21, %v55_v10  ;;  %vm51_vm1 = vcmp.eq.f32.partialorder %v35_v22, %v44_v11  ;;  %v488_v11 = vld [vmem:[%s653_s7] ss:$0 sm:$0xff] }
  0x76   :  { %vm63_vm2 = vmand %vm51_vm1, %vm61_vm0 }
  0x77   :  { %vm75_vm6 = vmand %vm63_vm2, %vm73_vm3  ;;  %vm215_vm2 = vcmask 261120   ;;  %vm272_vm3 = vcmask 523264  }
  0x7c   :  { %v59_v19 = vpop.permute.xlu1 %58  ;;  %v49_v20 = vpop.permute.xlu0 %48 }
  0x7d   :  { %vm62_vm7 = vcmp.ge.f32.partialorder %v40_v21, %v59_v19  ;;  %vm52_vm8 = vcmp.eq.f32.partialorder %v35_v22, %v49_v20 }
  0x7e   :  { %vm64_vm11 = vmand %vm52_vm8, %vm62_vm7 }
  0x7f   :  { %vm76_vm14 = vmand %vm64_vm11, %vm74_vm12 }
  0x85   :  { %v83_v26 = vpop.permute.xlu1 %82  ;;  %v79_v27 = vpop.permute.xlu0 %78 }
  0x86   :  { %vm85_vm4 = vcmp.ge.f32.partialorder %v38_v24, %v79_v27  ;;  %vm86_vm13 = vcmp.ge.f32.partialorder %v38_v24, %v83_v26 }
  0x87   :  { %vm87_vm9 = vmand %vm75_vm6, %vm85_vm4  ;;  %vm346_vm4 = vcmp.lt.s32.totalorder %v564_v13, 5 }
  0x88   :  { %vm99_vm10 = vmand %vm87_vm9, %vm97_vm5 }
  0x89   :  { %v377_v29 = vsel %vm99_vm10, 1.0, %v506_v28  ;;  %vm88_vm15 = vmand %vm76_vm14, %vm86_vm13 }
  0x8a   :  { %105 = vadd.xlane.f32.xlu2 %v377_v29 }
  0x8e   :  { %v95_v30 = vpop.permute.xlu1 %94 }
  0x8f   :  { %vm98_vm0 = vcmp.le.f32.partialorder %v38_v24, %v95_v30 }
  0x90   :  { %vm100_vm1 = vmand %vm88_vm15, %vm98_vm0 }
  0x91   :  { %v378_v31 = vsel %vm100_vm1, 1.0, %v506_v28 }
  0x92   :  { %107 = vadd.xlane.f32.xlu0 %v378_v31 }
  0xfd   :  { %v106_v37 = vpop.xlane.xlu2 %105 }
  0xfe   :  { %v109_v38 = vmax.f32 %v106_v37, 1.0 }
 0x100   :  { %489 = vrcp.f32 %v109_v38 }
 0x105   :  { %v108_v39 = vpop.xlane.xlu0 %107 }
 0x106   :  { %v110_v40 = vmax.f32 %v108_v39, 1.0  ;;  %v490_v41 = vpop.eup %489 }
 0x107   :  { %v113_v43 = vmul.f32 %v490_v41, %v377_v29 }
 0x108   :  { %491 = vrcp.f32 %v110_v40 }
 0x10e   :  { %v492_v42 = vpop.eup %491 }
 0x10f   :  { %v114_v44 = vmul.f32 %v492_v42, %v378_v31 }
 0x111   :  { %v115_v45 = vpack.c.bf16 %v114_v44, %v113_v43 }
 0x113   :  { %188 = vmatmul.bf16.vlgmr.msra.gmra.mxu0 %v115_v45 }
 0x190   :  { %v189_v48 = vpop.f32.mrf.mxu0 }
 0x198   :  { %v191_v49 = vpop.f32.mrf.mxu0 }
 0x199   :  { %v194_v50 = vpack.c.bf16 %v191_v49, %v189_v48 }
 0x19b   :  { %419 = vmatmul.msk.bf16.vlgmr.msra.gmra.mxu1 %vm215_vm2, %v194_v50 }
 0x218   :  { %v228_v55 = vpop.f32.mrf.mxu1 }
 0x219   :  { %v229_v57 = vadd.f32 %v486_v56, %v228_v55 }
 0x21b   :  { %v233_v60 = vmax.f32 %v229_v57, 0.0 }
 0x220   :  { %v230_v58 = vpop.f32.mrf.mxu1 }
 0x221   :  { %v231_v59 = vadd.f32 %v486_v56, %v230_v58 }
 0x223   :  { %v234_v61 = vmax.f32 %v231_v59, 0.0 }
 0x225   :  { %v235_v62 = vpack.c.bf16 %v234_v61, %v233_v60 }
 0x227   :  { %436 = vmatmul.msk.bf16.vlgmr.msra.gmra.mxu2 %vm272_vm3, %v235_v62 }
 0x2aa   :  { %v285_v3 = vpop.f32.mrf.mxu2 }
 0x2ab   :  { %v286_v5 = vadd.f32 %v487_v4, %v285_v3 }
 0x2ad   :  { %v290_v8 = vmax.f32 %v286_v5, 0.0 }
 0x2b2   :  { %v287_v6 = vpop.f32.mrf.mxu2 }
 0x2b3   :  { %v288_v7 = vadd.f32 %v487_v4, %v287_v6 }
 0x2b5   :  { %v291_v9 = vmax.f32 %v288_v7, 0.0 }
 0x2b7   :  { %v292_v10 = vpack.c.bf16 %v291_v9, %v290_v8 }
 0x2b9   :  { %453 = vmatmul.msk.bf16.vlgmr.msra.gmra.mxu3 %vm272_vm3, %v292_v10 }
 0x33c   :  { %v341_v12 = vpop.f32.mrf.mxu3 }
 0x33d   :  { %v342_v14 = vadd.f32 %v488_v11, %v341_v12 }
 0x33f   :  { %v347_v15 = vsel %vm346_vm4, %v342_v14, -1e+30 }
 0x340   :  { %349 = vmax.xlane.f32.xlu1 %v347_v15 }
 0x344   :  { %v343_v16 = vpop.f32.mrf.mxu3 }
 0x345   :  { %v344_v17 = vadd.f32 %v488_v11, %v343_v16 }
 0x347   :  { %v348_v18 = vsel %vm346_vm4, %v344_v17, -1e+30 }
 0x348   :  { %351 = vmax.xlane.f32.xlu2 %v348_v18 }
 0x3b3   :  { %v350_v19 = vpop.xlane.xlu1 %349 }
 0x3b4   :  { %v353_v20 = vsub.f32 %v347_v15, %v350_v19 }
 0x3b6   :  { %v355_v21 = vmul.f32 1.442695, %v353_v20 }
 0x3b8   :  { %493 = vpow2.f32 %v355_v21 }
 0x3bb   :  { %v352_v22 = vpop.xlane.xlu2 %351 }
 0x3bc   :  { %v354_v23 = vsub.f32 %v348_v18, %v352_v22 }
 0x3be   :  { %v494_v24 = vpop.eup %493  ;;  %v357_v25 = vmul.f32 1.442695, %v354_v23 }
 0x3bf   :  { %v359_v26 = vsel %vm346_vm4, %v494_v24, 0.0 }
 0x3c0   :  { %495 = vpow2.f32 %v357_v25  ;;  %361 = vadd.xlane.f32.xlu2 %v359_v26 }
 0x3c6   :  { %v496_v27 = vpop.eup %495 }
 0x3c7   :  { %v360_v28 = vsel %vm346_vm4, %v496_v27, 0.0 }
 0x3c8   :  { %363 = vadd.xlane.f32.xlu0 %v360_v28 }
 0x433   :  { %v362_v29 = vpop.xlane.xlu2 %361 }
 0x434   :  { %497 = vrcp.f32 %v362_v29 }
 0x43a   :  { %v498_v30 = vpop.eup %497 }
 0x43b   :  { %v367_v31 = vmul.f32 %v498_v30, %v359_v26  ;;  %v364_v32 = vpop.xlane.xlu0 %363 }
 0x43c   :  { %499 = vrcp.f32 %v364_v32 }
 0x43d   :  { %v369_v33 = vsel %vm346_vm4, %v367_v31, %v342_v14 }
 0x43e   :  { %371 = vst [vmem:[%s655_s8] sm:$0xff] %v369_v33 }
 0x442   :  { %v500_v34 = vpop.eup %499 }
 0x443   :  { %v368_v35 = vmul.f32 %v500_v34, %v360_v28 }
 0x445   :  { %v370_v36 = vsel %vm346_vm4, %v368_v35, %v344_v17 }
 0x446   :  { %372 = vst [vmem:[%s655_s8 + $0x8] sm:$0xff] %v370_v36 }

// kernel: generalized_rcnn_forward.2
= control target key start
LH: loop header
LB: loop body
LE: loop exit
PB: predicated region body
PF: predicated region fallthrough
CT: control target
= control target key end

     0   :  { %s6478_s21 = smov 0   ;;  %s8261_s0 = inlined_call_operand.vmem [shape: bf16[512,27], index: 0, kind: input, shape index: {}]   ;;  %s8262_s1 = inlined_call_operand.vmem [shape: bf16[27,16], index: 1, kind: input, shape index: {}]   ;;  %s8263_s2 = inlined_call_operand.vmem [shape: f32[1,16], index: 2, kind: input, shape index: {}]   ;;  %s8264_s3 = inlined_call_operand.vmem [shape: bf16[9,64,256], index: 3, kind: input, shape index: {}]   ;;  %s8265_s4 = inlined_call_operand.vmem [shape: bf16[9,16,32], index: 4, kind: input, shape index: {}]   ;;  %s8266_s5 = inlined_call_operand.vmem [shape: f32[1,32], index: 5, kind: input, shape index: {}]   ;;  %s8267_s6 = inlined_call_operand.vmem [shape: bf16[9,16,64], index: 6, kind: input, shape index: {}]   ;;  %s8268_s7 = inlined_call_operand.vmem [shape: bf16[9,32,32], index: 7, kind: input, shape index: {}]   ;;  %s8269_s8 = inlined_call_operand.vmem [shape: f32[1,32], index: 8, kind: input, shape index: {}]   ;;  %s8270_s9 = inlined_call_operand.vmem [shape: bf16[9,64,64], index: 9, kind: input, shape index: {}]   ;;  %s8271_s10 = inlined_call_operand.vmem [shape: bf16[9,16,16], index: 10, kind: input, shape index: {}]   ;;  %s8272_s11 = inlined_call_operand.vmem [shape: bf16[9,32,32], index: 11, kind: input, shape index: {}]   ;;  %s8273_s12 = inlined_call_operand.vmem [shape: f32[1,32], index: 12, kind: input, shape index: {}]   ;;  %s8274_s13 = inlined_call_operand.vmem [shape: bf16[32,128], index: 13, kind: input, shape index: {}]   ;;  %s8275_s14 = inlined_call_operand.vmem [shape: f32[1,128], index: 14, kind: input, shape index: {}]   ;;  %s8276_s15 = inlined_call_operand.vmem [shape: bf16[128,32], index: 15, kind: output, shape index: {0}]   ;;  %s8277_s16 = inlined_call_operand.vmem [shape: bf16[2,80,128], index: 16, kind: output, shape index: {1}]  }
   0x1   :  { %8278 = sst [smem:[#allocation2_spill]] %s8261_s0 }
   0x2 LB: > { %s6484_s22 = sadd.s32 4294967295, %s6390_s21   ;;  %p4916_p0 = scmp.ge.s32.totalorder %s6390_s21, 1  ;;  %s6390_s21 = sphi %s6478_s21, %s27_s21  }
   0x3   : > { %p466_p1 = scmp.lt.s32.totalorder %s6390_s21, 3 }
   0x5   : > { %p467_p2 = pnand %p4916_p0, %p466_p1 }
   0x6   : > { %s4917_s27 = sshll.u32 (!%p467_p2), %s6484_s22, 5  ;;  %s8279_s18 = sld [smem:[#allocation2_spill]] (!%p467_p2) }
   0x7   : > { %470 = sbr.rel (%p467_p2) target bundleno = 2927 (0xb6f), region = 80  ;;  %p522_p3 = scmp.lt.s32.totalorder (!%p467_p2), %s4917_s27, 63 }
   0x8   : > { %s4919_s0 = sshll.u32 (!%p467_p2), %s6484_s22, 3  ;;  %p533_p5 = scmp.lt.s32.totalorder (!%p467_p2), %s6484_s22, 1 }
   0x9   : > { %p528_p4 = scmp.lt.s32.totalorder (!%p467_p2), %s4919_s0, 15 }
   0xc   : > { %v4992_v0 = vld [vmem:[%s8262_s1 + $0x8] sm:$0xf]  ;;  %v6110_v1 = vld [vmem:[%s8262_s1 + $0x8] sm:$0x30]  ;;  %vm719_vm0 = vcmask 1044480   ;;  %vm720_vm1 = vcmask 1045504  }
   0xd   : > { %v4993_v2 = vor.u32 %v6110_v1, %v4992_v0  ;;  %v6392_v3 = vmov 65535   ;;  %s8281_s27 = smov (!%p522_p3, %s4917_s27), 63  ;;  %v6109_v7 = vld [vmem:[%s8262_s1] sm:$0xff]  ;;  %vm670_vm2 = vcmask 220160   ;;  %vm1095_vm3 = vcmask 130048   ;;  %s8283_s0 = smov (!%p528_p4, %s4919_s0), 15 }
   0xe   : > { %v721_v4 = vsel %vm719_vm0, 4294967295, %v6392_v3  ;;  %s4918_s30 = sshll.u32 %s8281_s27, 2  ;;  %v6523_v18 = vld [vmem:[%s8263_s2] ss:$0 sm:$0xff]  ;;  %vm2395_vm4 = vcmask 257024   ;;  %vm2435_vm5 = vcmask 523264  }
   0xf   : > { %v722_v5 = vsel %vm720_vm1, %v721_v4, 0  ;;  %s6501_s19 = scalar_lea.vmem %s8279_s18, %s4918_s30  ;;  %vm2501_vm6 = vcmask 261120   ;;  %s8285_s22 = smov (!%p533_p5, %s6484_s22), 1 }
  0x10   : > { %v724_v6 = vand.u32 %v4993_v2, %v722_v5  ;;  %v6093_v8 = vld [vmem:[%s6501_s19] sm:$0xff]  ;;  %v6094_v9 = vld [vmem:[%s6501_s19 + $0x8] sm:$0xff]  ;;  %v6095_v10 = vld [vmem:[%s6501_s19 + $0x10] sm:$0xff]  ;;  %s6329_s18 = smul.u32 40, %s8285_s22 }
  0x11   : > { %v6096_v11 = vld [vmem:[%s6501_s19 + $0x18] sm:$0xff]  ;;  %v6097_v12 = vld [vmem:[%s6501_s19 + $0x20] sm:$0xff]  ;;  %v6098_v13 = vld [vmem:[%s6501_s19 + $0x28] sm:$0xff] }
  0x12   : > { %732 = vmatpush.bf16.msra.mxu0 %v724_v6  ;;  %v6099_v14 = vld [vmem:[%s6501_s19 + $0x30] sm:$0xff]  ;;  %v6100_v15 = vld [vmem:[%s6501_s19 + $0x38] sm:$0xff]  ;;  %v6101_v16 = vld [vmem:[%s6501_s19 + $0x40] sm:$0xff]  ;;  %s8222_s23 = scalar_lea.vmem %s8277_s16, %s6329_s18 }
  0x13   : > { %v6102_v25 = vld [vmem:[%s6501_s19 + $0x48] sm:$0xff]  ;;  %v6103_v33 = vld [vmem:[%s6501_s19 + $0x50] sm:$0xff]  ;;  %v6104_v41 = vld [vmem:[%s6501_s19 + $0x58] sm:$0xff] }
  0x14   : > { %v6105_v49 = vld [vmem:[%s6501_s19 + $0x60] sm:$0xff]  ;;  %v6106_v52 = vld [vmem:[%s6501_s19 + $0x68] sm:$0xff]  ;;  %v6107_v55 = vld [vmem:[%s6501_s19 + $0x70] sm:$0xff] }
  0x15   : > { %v6108_v58 = vld [vmem:[%s6501_s19 + $0x78] sm:$0xff]  ;;  %s4920_s19 = sshll.u32 %s8283_s0, 2 }
  0x16   : > { %733 = vmatpush.bf16.msra.mxu0 %v6109_v7  ;;  %s7461_s24 = scalar_lea.vmem %s8276_s15, %s4920_s19 }
  0x19   : > { %4994 = vmatmul.msk.bf16.vlgmr.msra.gmra.mxu0 %vm670_vm2, %v6093_v8 }
  0x29   : > { %4995 = vmatmul.msk.bf16.gmra.mxu0 %vm670_vm2, %v6094_v9 }
  0x39   : > { %4996 = vmatmul.msk.bf16.gmra.mxu0 %vm670_vm2, %v6095_v10 }
  0x49   : > { %4997 = vmatmul.msk.bf16.gmra.mxu0 %vm670_vm2, %v6096_v11 }
  0x59   : > { %4998 = vmatmul.msk.bf16.gmra.mxu0 %vm670_vm2, %v6097_v12 }
  0x69   : > { %4999 = vmatmul.msk.bf16.gmra.mxu0 %vm670_vm2, %v6098_v13 }
  0x79   : > { %5000 = vmatmul.msk.bf16.gmra.mxu0 %vm670_vm2, %v6099_v14 }
  0x89   : > { %5001 = vmatmul.msk.bf16.gmra.mxu0 %vm670_vm2, %v6100_v15 }
  0x96   : > { %v735_v17 = vpop.f32.mrf.mxu0 }
  0x97   : > { %v736_v19 = vadd.f32 %v6523_v18, %v735_v17 }
  0x99   : > { %5002 = vmatmul.msk.bf16.gmra.mxu0 %vm670_vm2, %v6101_v16  ;;  %v815_v22 = vmax.f32 %v736_v19, 0.0 }
  0x9e   : > { %v737_v20 = vpop.f32.mrf.mxu0 }
  0x9f   : > { %v738_v21 = vadd.f32 %v6523_v18, %v737_v20 }
  0xa1   : > { %v816_v23 = vmax.f32 %v738_v21, 0.0 }
  0xa3   : > { %v6528_v24 = vpack.c.bf16 %v816_v23, %v815_v22  ;;  %v5012_v22 = vld [vmem:[%s8264_s3] sm:$0xf]  ;;  %v6112_v23 = vld [vmem:[%s8264_s3 + $0x4] sm:$0xf0] }
  0xa6   : > { %v740_v26 = vpop.f32.mrf.mxu0 }
  0xa7   : > { %v741_v27 = vadd.f32 %v6523_v18, %v740_v26 }
  0xa9   : > { %5003 = vmatmul.msk.bf16.gmra.mxu0 %vm670_vm2, %v6102_v25  ;;  %v817_v30 = vmax.f32 %v741_v27, 0.0  ;;  %v5013_v25 = vor.u32 %v6112_v23, %v5012_v22 }
  0xae   : > { %v742_v28 = vpop.f32.mrf.mxu0 }
  0xaf   : > { %v743_v29 = vadd.f32 %v6523_v18, %v742_v28  ;;  %v5020_v28 = vld [vmem:[%s8264_s3 + $0x10] sm:$0xf] }
  0xb1   : > { %v818_v31 = vmax.f32 %v743_v29, 0.0  ;;  %v6114_v29 = vld [vmem:[%s8264_s3 + $0x14] sm:$0xf0] }
  0xb3   : > { %v6534_v32 = vpack.c.bf16 %v818_v31, %v817_v30  ;;  %v5021_v30 = vor.u32 %v6114_v29, %v5020_v28 }
  0xb6   : > { %v745_v34 = vpop.f32.mrf.mxu0 }
  0xb7   : > { %v746_v35 = vadd.f32 %v6523_v18, %v745_v34  ;;  %v5028_v34 = vld [vmem:[%s8264_s3 + $0x20] sm:$0xf] }
  0xb9   : > { %5004 = vmatmul.msk.bf16.gmra.mxu0 %vm670_vm2, %v6103_v33  ;;  %v819_v38 = vmax.f32 %v746_v35, 0.0  ;;  %v6116_v35 = vld [vmem:[%s8264_s3 + $0x24] sm:$0xf0] }
  0xbe   : > { %v747_v36 = vpop.f32.mrf.mxu0 }
  0xbf   : > { %v748_v37 = vadd.f32 %v6523_v18, %v747_v36  ;;  %v5029_v36 = vor.u32 %v6116_v35, %v5028_v34 }
  0xc1   : > { %v820_v39 = vmax.f32 %v748_v37, 0.0  ;;  %v5210_v37 = vld [vmem:[%s8264_s3 + $0x100] sm:$0xf] }
  0xc3   : > { %v6540_v40 = vpack.c.bf16 %v820_v39, %v819_v38  ;;  %v6148_v38 = vld [vmem:[%s8264_s3 + $0x104] sm:$0xf0] }
  0xc4   : > { %v5211_v39 = vor.u32 %v6148_v38, %v5210_v37 }
  0xc6   : > { %v750_v42 = vpop.f32.mrf.mxu0 }
  0xc7   : > { %v751_v43 = vadd.f32 %v6523_v18, %v750_v42 }
  0xc9   : > { %5005 = vmatmul.msk.bf16.gmra.mxu0 %vm670_vm2, %v6104_v41  ;;  %v821_v46 = vmax.f32 %v751_v43, 0.0  ;;  %v5036_v43 = vld [vmem:[%s8264_s3 + $0x30] sm:$0xf] }
  0xce   : > { %v752_v44 = vpop.f32.mrf.mxu0 }
  0xcf   : > { %v753_v45 = vadd.f32 %v6523_v18, %v752_v44  ;;  %v6118_v44 = vld [vmem:[%s8264_s3 + $0x34] sm:$0xf0] }
  0xd1   : > { %v822_v47 = vmax.f32 %v753_v45, 0.0  ;;  %v5037_v45 = vor.u32 %v6118_v44, %v5036_v43 }
  0xd3   : > { %v6546_v48 = vpack.c.bf16 %v822_v47, %v821_v46  ;;  %v5218_v46 = vld [vmem:[%s8264_s3 + $0x110] sm:$0xf]  ;;  %v6150_v47 = vld [vmem:[%s8264_s3 + $0x114] sm:$0xf0] }
  0xd6   : > { %v755_v50 = vpop.f32.mrf.mxu0 }
  0xd7   : > { %v756_v12 = vadd.f32 %v6523_v18, %v755_v50 }
  0xd9   : > { %5006 = vmatmul.msk.bf16.gmra.mxu0 %vm670_vm2, %v6105_v49  ;;  %v823_v16 = vmax.f32 %v756_v12, 0.0  ;;  %v5219_v49 = vor.u32 %v6150_v47, %v5218_v46 }
  0xde   : > { %v757_v51 = vpop.f32.mrf.mxu0 }
  0xdf   : > { %v758_v9 = vadd.f32 %v6523_v18, %v757_v51 }
  0xe1   : > { %v824_v14 = vmax.f32 %v758_v9, 0.0 }
  0xe3   : > { %v6583_v19 = vpack.c.bf16 %v824_v14, %v823_v16 }
  0xe6   : > { %v760_v53 = vpop.f32.mrf.mxu0 }
  0xe7   : > { %v761_v6 = vadd.f32 %v6523_v18, %v760_v53  ;;  %v6121_v53 = vld [vmem:[%s8264_s3 + $0x44] sm:$0xf0] }
  0xe9   : > { %5007 = vmatmul.msk.bf16.gmra.mxu0 %vm670_vm2, %v6106_v52  ;;  %v825_v13 = vmax.f32 %v761_v6, 0.0  ;;  %v5052_v52 = vld [vmem:[%s8264_s3 + $0x40] sm:$0xf] }
  0xee   : > { %v762_v54 = vpop.f32.mrf.mxu0 }
  0xef   : > { %v763_v3 = vadd.f32 %v6523_v18, %v762_v54  ;;  %v5053_v54 = vor.u32 %v6121_v53, %v5052_v52 }
  0xf1   : > { %v826_v10 = vmax.f32 %v763_v3, 0.0 }
  0xf3   : > { %v6576_v15 = vpack.c.bf16 %v826_v10, %v825_v13 }
  0xf6   : > { %v765_v56 = vpop.f32.mrf.mxu0 }
  0xf7   : > { %v766_v0 = vadd.f32 %v6523_v18, %v765_v56  ;;  %v6152_v56 = vld [vmem:[%s8264_s3 + $0x124] sm:$0xf0] }
  0xf9   : > { %5008 = vmatmul.msk.bf16.gmra.mxu0 %vm670_vm2, %v6107_v55  ;;  %v827_v7 = vmax.f32 %v766_v0, 0.0  ;;  %v5226_v55 = vld [vmem:[%s8264_s3 + $0x120] sm:$0xf]  ;;  %v6154_v0 = vld [vmem:[%s8264_s3 + $0x134] sm:$0xf0] }
  0xfe   : > { %v767_v57 = vpop.f32.mrf.mxu0 }
  0xff   : > { %v768_v62 = vadd.f32 %v6523_v18, %v767_v57  ;;  %v5227_v57 = vor.u32 %v6152_v56, %v5226_v55  ;;  %v6156_v55 = vld [vmem:[%s8264_s3 + $0x144] sm:$0xf]  ;;  %v5262_v56 = vld [vmem:[%s8264_s3 + $0x148] sm:$0xf0] }
 0x101   : > { %v828_v4 = vmax.f32 %v768_v62, 0.0 }
 0x103   : > { %v6570_v11 = vpack.c.bf16 %v828_v4, %v827_v7 }
 0x106   : > { %v770_v59 = vpop.f32.mrf.mxu0 }
 0x107   : > { %v771_v60 = vadd.f32 %v6523_v18, %v770_v59 }
 0x109   : > { %5009 = vmatmul.msk.bf16.gmra.mxu0 %vm670_vm2, %v6108_v58  ;;  %v829_v1 = vmax.f32 %v771_v60, 0.0  ;;  %v5060_v60 = vld [vmem:[%s8264_s3 + $0x50] sm:$0xf] }
 0x10e   : > { %v772_v61 = vpop.f32.mrf.mxu0 }
 0x10f   : > { %v773_v63 = vadd.f32 %v6523_v18, %v772_v61  ;;  %v6123_v61 = vld [vmem:[%s8264_s3 + $0x54] sm:$0xf0] }
 0x110   : > { %v5061_v62 = vor.u32 %v6123_v61, %v5060_v60  ;;  %v5265_v61 = vor.u32 %v6156_v55, %v5262_v56  ;;  %v5134_v56 = vld [vmem:[%s8264_s3 + $0xb0] sm:$0xf] }
 0x111   : > { %v830_v2 = vmax.f32 %v773_v63, 0.0  ;;  %v5234_v63 = vld [vmem:[%s8264_s3 + $0x130] sm:$0xf] }
 0x113   : > { %v6561_v5 = vpack.c.bf16 %v830_v2, %v829_v1  ;;  %v5235_v1 = vor.u32 %v6154_v0, %v5234_v63  ;;  %v6125_v63 = vld [vmem:[%s8264_s3 + $0x64] sm:$0xf0] }
 0x115   : > { %911 = vmatpush.bf16.msra.mxu1 %v6561_v5  ;;  %6313 = vmatpush.bf16.msra.mxu3 %v6561_v5 }
 0x116   : > { %1571 = vmatpush.bf16.msrb.mxu0 %v6561_v5  ;;  %v6567_v8 = vpop.f32.mrf.mxu0 }
 0x119   : > { %912 = vmatpush.bf16.msra.mxu1 %v6570_v11  ;;  %6314 = vmatpush.bf16.msra.mxu3 %v6570_v11 }
 0x11a   : > { %1572 = vmatpush.bf16.msrb.mxu0 %v6570_v11 }
 0x11d   : > { %913 = vmatpush.bf16.msra.mxu1 %v6576_v15  ;;  %6315 = vmatpush.bf16.msra.mxu3 %v6576_v15 }
 0x11e   : > { %1573 = vmatpush.bf16.msrb.mxu0 %v6576_v15  ;;  %v6581_v17 = vpop.f32.mrf.mxu0 }
 0x121   : > { %914 = vmatpush.bf16.msra.mxu1 %v6583_v19  ;;  %6316 = vmatpush.bf16.msra.mxu3 %v6583_v19 }
 0x122   : > { %1574 = vmatpush.bf16.msrb.mxu0 %v6583_v19 }
 0x125   : > { %915 = vmatpush.bf16.msra.mxu1 %v6546_v48  ;;  %6317 = vmatpush.bf16.msra.mxu3 %v6546_v48 }
 0x126   : > { %1575 = vmatpush.bf16.msrb.mxu0 %v6546_v48  ;;  %v6591_v20 = vpop.f32.mrf.mxu0 }
 0x129   : > { %916 = vmatpush.bf16.msra.mxu1 %v6540_v40  ;;  %6318 = vmatpush.bf16.msra.mxu3 %v6540_v40 }
 0x12a   : > { %1576 = vmatpush.bf16.msrb.mxu0 %v6540_v40 }
 0x12d   : > { %917 = vmatpush.bf16.msra.mxu1 %v6534_v32  ;;  %6319 = vmatpush.bf16.msra.mxu3 %v6534_v32 }
 0x12e   : > { %1577 = vmatpush.bf16.msrb.mxu0 %v6534_v32  ;;  %v6599_v21 = vpop.f32.mrf.mxu0 }
 0x131   : > { %918 = vmatpush.bf16.msra.mxu1 %v6528_v24  ;;  %6320 = vmatpush.bf16.msra.mxu3 %v6528_v24 }
 0x132   : > { %1578 = vmatpush.bf16.msrb.mxu0 %v6528_v24 }
 0x134   : > { %919 = vmatmul.bf16.vlgmr.msra.gmra.mxu1 %v5013_v25 }
 0x135   : > { %1024 = vmatpush.bf16.msrb.mxu1 %v6561_v5  ;;  %1579 = vmatmul.bf16.vlgmr.msrb.gmra.mxu0 %v5211_v39 }
 0x136   : > { %v6611_v26 = vpop.f32.mrf.mxu0 }
 0x139   : > { %1025 = vmatpush.bf16.msrb.mxu1 %v6570_v11 }
 0x13d   : > { %1026 = vmatpush.bf16.msrb.mxu1 %v6576_v15 }
 0x13e   : > { %v6615_v27 = vpop.f32.mrf.mxu0 }
 0x141   : > { %1027 = vmatpush.bf16.msrb.mxu1 %v6583_v19 }
 0x144   : > { %924 = vmatmul.bf16.gmra.mxu1 %v5021_v30 }
 0x145   : > { %1028 = vmatpush.bf16.msrb.mxu1 %v6546_v48  ;;  %1584 = vmatmul.bf16.gmra.mxu0 %v5219_v49 }
 0x146   : > { %v6625_v31 = vpop.f32.mrf.mxu0 }
 0x147   : > { %v791_v38 = vadd.f32 %v6523_v18, %v6625_v31  ;;  %v783_v31 = vadd.f32 %v6523_v18, %v6599_v21  ;;  %v776_v21 = vadd.f32 %v6523_v18, %v6567_v8  ;;  %v6120_v8 = vld [vmem:[%s8264_s3 + $0x44] sm:$0xf] }
 0x149   : > { %1029 = vmatpush.bf16.msrb.mxu1 %v6540_v40  ;;  %v837_v44 = vmax.f32 %v791_v38, 0.0  ;;  %v834_v49 = vmax.f32 %v783_v31, 0.0  ;;  %v831_v53 = vmax.f32 %v776_v21, 0.0  ;;  %v6132_v21 = vld [vmem:[%s8264_s3 + $0x94] sm:$0xf0] }
 0x14d   : > { %1030 = vmatpush.bf16.msrb.mxu1 %v6534_v32 }
 0x14e   : > { %v6629_v33 = vpop.f32.mrf.mxu0 }
 0x14f   : > { %v793_v35 = vadd.f32 %v6523_v18, %v6629_v33  ;;  %v786_v33 = vadd.f32 %v6523_v18, %v6611_v26  ;;  %v778_v26 = vadd.f32 %v6523_v18, %v6581_v17  ;;  %v6111_v17 = vld [vmem:[%s8264_s3 + $0x4] sm:$0xf] }
 0x151   : > { %1031 = vmatpush.bf16.msrb.mxu1 %v6528_v24  ;;  %v835_v47 = vmax.f32 %v786_v33, 0.0  ;;  %v6130_v33 = vld [vmem:[%s8264_s3 + $0x84] sm:$0xf0] }
 0x154   : > { %929 = vmatmul.bf16.gmra.mxu1 %v5029_v36 }
 0x155   : > { %1589 = vmatmul.bf16.gmra.mxu0 %v5227_v57 }
 0x156   : > { %v795_v41 = vpop.f32.mrf.mxu0 }
 0x157   : > { %v796_v30 = vadd.f32 %v6523_v18, %v795_v41  ;;  %v788_v41 = vadd.f32 %v6523_v18, %v6615_v27  ;;  %v781_v27 = vadd.f32 %v6523_v18, %v6591_v20  ;;  %v832_v20 = vmax.f32 %v778_v26, 0.0  ;;  %v5078_v26 = vld [vmem:[%s8264_s3 + $0x78] sm:$0xf0] }
 0x159   : > { %v839_v39 = vmax.f32 %v796_v30, 0.0  ;;  %v6757_v57 = vpack.c.bf16 %v832_v20, %v831_v53  ;;  %v5070_v30 = vld [vmem:[%s8264_s3 + $0x68] sm:$0xf0] }
 0x15e   : > { %v797_v42 = vpop.f32.mrf.mxu0 }
 0x15f   : > { %v798_v25 = vadd.f32 %v6523_v18, %v797_v42  ;;  %v838_v42 = vmax.f32 %v793_v35, 0.0 }
 0x161   : > { %v840_v36 = vmax.f32 %v798_v25, 0.0  ;;  %v6718_v46 = vpack.c.bf16 %v838_v42, %v837_v44  ;;  %v5110_v42 = vld [vmem:[%s8264_s3 + $0x80] sm:$0xf] }
 0x162   : > { %v5111_v31 = vor.u32 %v6130_v33, %v5110_v42  ;;  %v6164_v33 = vld [vmem:[%s8265_s4 + $0x28] sm:$0xff] }
 0x163   : > { %v6709_v43 = vpack.c.bf16 %v840_v36, %v839_v39  ;;  %v6128_v36 = vld [vmem:[%s8265_s4 + $0x8] sm:$0xff]  ;;  %v6117_v39 = vld [vmem:[%s8264_s3 + $0x34] sm:$0xf] }
 0x164   : > { %934 = vmatmul.bf16.gmra.mxu1 %v5037_v45  ;;  %v836_v45 = vmax.f32 %v788_v41, 0.0  ;;  %v5038_v41 = vld [vmem:[%s8264_s3 + $0x38] sm:$0xf0] }
 0x165   : > { %1594 = vmatmul.bf16.gmra.mxu0 %v5235_v1  ;;  %v5041_v44 = vor.u32 %v6117_v39, %v5038_v41 }
 0x166   : > { %v800_v50 = vpop.f32.mrf.mxu0 }
 0x167   : > { %v801_v22 = vadd.f32 %v6523_v18, %v800_v50  ;;  %v6727_v50 = vpack.c.bf16 %v836_v45, %v835_v47  ;;  %v6126_v47 = vld [vmem:[%s8264_s3 + $0x74] sm:$0xf] }
 0x169   : > { %v841_v34 = vmax.f32 %v801_v22, 0.0  ;;  %v6115_v22 = vld [vmem:[%s8264_s3 + $0x24] sm:$0xf] }
 0x16e   : > { %v802_v51 = vpop.f32.mrf.mxu0 }
 0x16f   : > { %v803_v13 = vadd.f32 %v6523_v18, %v802_v51  ;;  %v833_v51 = vmax.f32 %v781_v27, 0.0 }
 0x171   : > { %v842_v28 = vmax.f32 %v803_v13, 0.0  ;;  %v6734_v52 = vpack.c.bf16 %v834_v49, %v833_v51  ;;  %v6127_v13 = vld [vmem:[%s8264_s3 + $0x74] sm:$0xf0]  ;;  %v5118_v49 = vld [vmem:[%s8264_s3 + $0x90] sm:$0xf]  ;;  %v5081_v51 = vor.u32 %v6126_v47, %v5078_v26 }
 0x172   : > { %v5119_v20 = vor.u32 %v6132_v21, %v5118_v49  ;;  %v5184_v26 = vld [vmem:[%s8264_s3 + $0xf0] sm:$0xf]  ;;  %v6145_v49 = vld [vmem:[%s8264_s3 + $0xf4] sm:$0xf0] }
 0x173   : > { %v6700_v37 = vpack.c.bf16 %v842_v28, %v841_v34  ;;  %v6124_v28 = vld [vmem:[%s8264_s3 + $0x64] sm:$0xf] }
 0x174   : > { %1032 = vmatmul.bf16.vlgmr.msrb.gmra.mxu1 %v5053_v54  ;;  %v5054_v54 = vld [vmem:[%s8264_s3 + $0x48] sm:$0xf0]  ;;  %v5073_v35 = vor.u32 %v6124_v28, %v5070_v30  ;;  %v5176_v28 = vld [vmem:[%s8264_s3 + $0xe0] sm:$0xf]  ;;  %v6143_v30 = vld [vmem:[%s8264_s3 + $0xe4] sm:$0xf0] }
 0x175   : > { %v5057_v60 = vor.u32 %v6120_v8, %v5054_v54  ;;  %v5177_v41 = vor.u32 %v6143_v30, %v5176_v28 }
 0x176   : > { %v805_v58 = vpop.f32.mrf.mxu0 }
 0x177   : > { %v806_v9 = vadd.f32 %v6523_v18, %v805_v58  ;;  %v6173_v58 = vld [vmem:[%s8265_s4 + $0x30] sm:$0xff] }
 0x179   : > { %v843_v23 = vmax.f32 %v806_v9, 0.0 }
 0x17e   : > { %v807_v59 = vpop.f32.mrf.mxu0 }
 0x17f   : > { %v808_v6 = vadd.f32 %v6523_v18, %v807_v59 }
 0x181   : > { %v844_v14 = vmax.f32 %v808_v6, 0.0  ;;  %v5062_v6 = vld [vmem:[%s8264_s3 + $0x58] sm:$0xf0] }
 0x183   : > { %v6692_v29 = vpack.c.bf16 %v844_v14, %v843_v23  ;;  %v5030_v23 = vld [vmem:[%s8264_s3 + $0x28] sm:$0xf0] }
 0x184   : > { %1037 = vmatmul.bf16.gmra.mxu1 %v5061_v62  ;;  %v5068_v62 = vld [vmem:[%s8264_s3 + $0x60] sm:$0xf]  ;;  %v5033_v34 = vor.u32 %v6115_v22, %v5030_v23 }
 0x185   : > { %v5069_v0 = vor.u32 %v6125_v63, %v5068_v62  ;;  %v5160_v62 = vld [vmem:[%s8264_s3 + $0xc0] sm:$0xf]  ;;  %v6139_v63 = vld [vmem:[%s8264_s3 + $0xc4] sm:$0xf0] }
 0x186   : > { %v810_v2 = vpop.f32.mrf.mxu0 }
 0x187   : > { %v811_v3 = vadd.f32 %v6523_v18, %v810_v2  ;;  %1042 = vmatmul.bf16.vlgmr.msra.gmra.mxu3 %v5069_v0  ;;  %v6113_v2 = vld [vmem:[%s8264_s3 + $0x14] sm:$0xf]  ;;  %v5161_v0 = vor.u32 %v6139_v63, %v5160_v62  ;;  %v5212_v62 = vld [vmem:[%s8264_s3 + $0x108] sm:$0xf0] }
 0x189   : > { %v845_v10 = vmax.f32 %v811_v3, 0.0  ;;  %v5022_v3 = vld [vmem:[%s8264_s3 + $0x18] sm:$0xf0] }
 0x18e   : > { %v812_v4 = vpop.f32.mrf.mxu0 }
 0x18f   : > { %v813_v7 = vadd.f32 %v6523_v18, %v812_v4  ;;  %v5014_v18 = vld [vmem:[%s8264_s3 + $0x8] sm:$0xf0]  ;;  %v6122_v4 = vld [vmem:[%s8264_s3 + $0x54] sm:$0xf] }
 0x190   : > { %v5017_v59 = vor.u32 %v6111_v17, %v5014_v18  ;;  %v5065_v9 = vor.u32 %v6122_v4, %v5062_v6  ;;  %v5126_v17 = vld [vmem:[%s8264_s3 + $0xa0] sm:$0xf]  ;;  %v6134_v18 = vld [vmem:[%s8264_s3 + $0xa4] sm:$0xf0]  ;;  %v5168_v4 = vld [vmem:[%s8264_s3 + $0xd0] sm:$0xf] }
 0x191   : > { %v846_v12 = vmax.f32 %v813_v7, 0.0  ;;  %v5025_v7 = vor.u32 %v6113_v2, %v5022_v3  ;;  %v5127_v54 = vor.u32 %v6134_v18, %v5126_v17  ;;  %v6119_v2 = vld [vmem:[%s8265_s4] sm:$0xff]  ;;  %v6141_v6 = vld [vmem:[%s8264_s3 + $0xd4] sm:$0xf0]  ;;  %v5185_v18 = vor.u32 %v6145_v49, %v5184_v26  ;;  %v5128_v49 = vld [vmem:[%s8264_s3 + $0xa8] sm:$0xf0] }
 0x192   : > { %1162 = vmatpush.bf16.msrb.mxu3 %v6119_v2  ;;  %v6133_v26 = vld [vmem:[%s8264_s3 + $0xa4] sm:$0xf] }
 0x193   : > { %v6685_v16 = vpack.c.bf16 %v846_v12, %v845_v10  ;;  %v5076_v12 = vld [vmem:[%s8264_s3 + $0x70] sm:$0xf] }
 0x194   : > { %v5077_v14 = vor.u32 %v6127_v13, %v5076_v12 }
 0x195   : > { %940 = vmatpush.bf16.msra.mxu2 %v6685_v16  ;;  %1053 = vmatpush.bf16.msra.mxu1 %v6685_v16 }
 0x196   : > { %1769 = vmatpush.bf16.msra.mxu0 %v6685_v16 }
 0x197   : > { %1047 = vmatmul.bf16.gmra.mxu3 %v5077_v14 }
 0x199   : > { %941 = vmatpush.bf16.msra.mxu2 %v6692_v29  ;;  %1054 = vmatpush.bf16.msra.mxu1 %v6692_v29 }
 0x19a   : > { %1770 = vmatpush.bf16.msra.mxu0 %v6692_v29 }
 0x19d   : > { %942 = vmatpush.bf16.msra.mxu2 %v6700_v37  ;;  %1055 = vmatpush.bf16.msra.mxu1 %v6700_v37 }
 0x19e   : > { %1771 = vmatpush.bf16.msra.mxu0 %v6700_v37 }
 0x1a1   : > { %943 = vmatpush.bf16.msra.mxu2 %v6709_v43  ;;  %1056 = vmatpush.bf16.msra.mxu1 %v6709_v43 }
 0x1a2   : > { %1772 = vmatpush.bf16.msra.mxu0 %v6709_v43 }
 0x1a5   : > { %944 = vmatpush.bf16.msra.mxu2 %v6718_v46  ;;  %1057 = vmatpush.bf16.msra.mxu1 %v6718_v46 }
 0x1a6   : > { %1773 = vmatpush.bf16.msra.mxu0 %v6718_v46 }
 0x1a9   : > { %945 = vmatpush.bf16.msra.mxu2 %v6727_v50  ;;  %1058 = vmatpush.bf16.msra.mxu1 %v6727_v50 }
 0x1aa   : > { %1774 = vmatpush.bf16.msra.mxu0 %v6727_v50 }
 0x1ad   : > { %946 = vmatpush.bf16.msra.mxu2 %v6734_v52  ;;  %1059 = vmatpush.bf16.msra.mxu1 %v6734_v52 }
 0x1ae   : > { %1775 = vmatpush.bf16.msra.mxu0 %v6734_v52 }
 0x1b1   : > { %947 = vmatpush.bf16.msra.mxu2 %v6757_v57  ;;  %1060 = vmatpush.bf16.msra.mxu1 %v6757_v57  ;;  %v6776_v1 = vpop.f32.mrf.mxu1 }
 0x1b2   : > { %1776 = vmatpush.bf16.msra.mxu0 %v6757_v57 }
 0x1b4   : > { %948 = vmatmul.bf16.vlgmr.msra.gmra.mxu2 %v5017_v59  ;;  %1061 = vmatmul.bf16.vlgmr.msra.gmra.mxu1 %v5057_v60 }
 0x1b5   : > { %6321 = vmatpush.bf16.msrb.mxu2 %v6685_v16  ;;  %1233 = vmatpush.bf16.msrb.mxu1 %v6561_v5 }
 0x1b6   : > { %1999 = vmatpush.bf16.msrb.mxu0 %v6173_v58  ;;  %v6136_v58 = vld [vmem:[%s8264_s3 + $0xb4] sm:$0xf0] }
 0x1b7   : > { %1777 = vmatmul.bf16.vlgmr.msra.gmra.mxu0 %v5265_v61  ;;  %v5135_v59 = vor.u32 %v6136_v58, %v5134_v56 }
 0x1b9   : > { %6322 = vmatpush.bf16.msrb.mxu2 %v6692_v29  ;;  %1234 = vmatpush.bf16.msrb.mxu1 %v6570_v11  ;;  %v6799_v10 = vpop.f32.mrf.mxu1 }
 0x1ba   : > { %2247 = vmatpush.bf16.msra.mxu0 %v6561_v5 }
 0x1bd   : > { %6323 = vmatpush.bf16.msrb.mxu2 %v6700_v37  ;;  %1235 = vmatpush.bf16.msrb.mxu1 %v6576_v15 }
 0x1be   : > { %2248 = vmatpush.bf16.msra.mxu0 %v6570_v11 }
 0x1c1   : > { %6324 = vmatpush.bf16.msrb.mxu2 %v6709_v43  ;;  %1236 = vmatpush.bf16.msrb.mxu1 %v6583_v19  ;;  %v6819_v25 = vpop.f32.mrf.mxu1 }
 0x1c2   : > { %2249 = vmatpush.bf16.msra.mxu0 %v6576_v15 }
 0x1c4   : > { %953 = vmatmul.bf16.gmra.mxu2 %v5025_v7  ;;  %1066 = vmatmul.bf16.gmra.mxu1 %v5065_v9  ;;  %v5169_v9 = vor.u32 %v6141_v6, %v5168_v4 }
 0x1c5   : > { %6325 = vmatpush.bf16.msrb.mxu2 %v6718_v46  ;;  %1237 = vmatpush.bf16.msrb.mxu1 %v6546_v48 }
 0x1c6   : > { %2250 = vmatpush.bf16.msra.mxu0 %v6583_v19 }
 0x1c9   : > { %6326 = vmatpush.bf16.msrb.mxu2 %v6727_v50  ;;  %1238 = vmatpush.bf16.msrb.mxu1 %v6540_v40  ;;  %v6836_v38 = vpop.f32.mrf.mxu1 }
 0x1ca   : > { %2251 = vmatpush.bf16.msra.mxu0 %v6546_v48 }
 0x1cd   : > { %6327 = vmatpush.bf16.msrb.mxu2 %v6734_v52  ;;  %1239 = vmatpush.bf16.msrb.mxu1 %v6534_v32 }
 0x1ce   : > { %2252 = vmatpush.bf16.msra.mxu0 %v6540_v40 }
 0x1d1   : > { %6328 = vmatpush.bf16.msrb.mxu2 %v6757_v57  ;;  %1240 = vmatpush.bf16.msrb.mxu1 %v6528_v24  ;;  %v6853_v45 = vpop.f32.mrf.mxu1 }
 0x1d2   : > { %2253 = vmatpush.bf16.msra.mxu0 %v6534_v32 }
 0x1d4   : > { %958 = vmatmul.bf16.gmra.mxu2 %v5033_v34  ;;  %1071 = vmatmul.bf16.gmra.mxu1 %v5073_v35 }
 0x1d5   : > { %1402 = vmatpush.bf16.msra.mxu1 %v6561_v5  ;;  %1115 = vmatpush.bf16.msra.mxu2 %v6128_v36 }
 0x1d6   : > { %2254 = vmatpush.bf16.msra.mxu0 %v6528_v24 }
 0x1d9   : > { %1403 = vmatpush.bf16.msra.mxu1 %v6570_v11  ;;  %v6857_v27 = vpop.f32.mrf.mxu1 }
 0x1dd   : > { %1404 = vmatpush.bf16.msra.mxu1 %v6576_v15 }
 0x1e1   : > { %1405 = vmatpush.bf16.msra.mxu1 %v6583_v19  ;;  %v6875_v53 = vpop.f32.mrf.mxu1 }
 0x1e4   : > { %963 = vmatmul.bf16.gmra.mxu2 %v5041_v44  ;;  %1241 = vmatmul.bf16.vlgmr.msrb.gmra.mxu1 %v5111_v31 }
 0x1e5   : > { %1406 = vmatpush.bf16.msra.mxu1 %v6546_v48 }
 0x1e9   : > { %1407 = vmatpush.bf16.msra.mxu1 %v6540_v40  ;;  %v6888_v8 = vpop.f32.mrf.mxu1 }
 0x1ed   : > { %1408 = vmatpush.bf16.msra.mxu1 %v6534_v32 }
 0x1f1   : > { %1409 = vmatpush.bf16.msra.mxu1 %v6528_v24  ;;  %v1033_v55 = vpop.f32.mrf.mxu1 }
 0x1f4   : > { %1076 = vmatmul.bf16.vlgmr.msrb.gmra.mxu2 %v5081_v51  ;;  %1246 = vmatmul.bf16.gmra.mxu1 %v5119_v20 }
 0x1f5   : > { %1600 = vmatpush.bf16.msrb.mxu1 %v6685_v16  ;;  %1262 = vmatpush.bf16.msrb.mxu2 %v6685_v16 }
 0x1f9   : > { %1601 = vmatpush.bf16.msrb.mxu1 %v6692_v29  ;;  %1263 = vmatpush.bf16.msrb.mxu2 %v6692_v29  ;;  %v1035_v60 = vpop.f32.mrf.mxu1 }
 0x1fd   : > { %1602 = vmatpush.bf16.msrb.mxu1 %v6700_v37  ;;  %1264 = vmatpush.bf16.msrb.mxu2 %v6700_v37 }
 0x201   : > { %1603 = vmatpush.bf16.msrb.mxu1 %v6709_v43  ;;  %1265 = vmatpush.bf16.msrb.mxu2 %v6709_v43  ;;  %v1038_v61 = vpop.f32.mrf.mxu1 }
 0x204   : > { %1251 = vmatmul.bf16.gmra.mxu1 %v5127_v54 }
 0x205   : > { %1604 = vmatpush.bf16.msrb.mxu1 %v6718_v46  ;;  %1266 = vmatpush.bf16.msrb.mxu2 %v6718_v46 }
 0x209   : > { %1605 = vmatpush.bf16.msrb.mxu1 %v6727_v50  ;;  %1267 = vmatpush.bf16.msrb.mxu2 %v6727_v50  ;;  %v1040_v3 = vpop.f32.mrf.mxu1 }
 0x20a   : > { %v1043_v21 = vpop.f32.mrf.mxu3 }
 0x20d   : > { %1606 = vmatpush.bf16.msrb.mxu1 %v6734_v52  ;;  %1268 = vmatpush.bf16.msrb.mxu2 %v6734_v52 }
 0x211   : > { %1607 = vmatpush.bf16.msrb.mxu1 %v6757_v57  ;;  %1269 = vmatpush.bf16.msrb.mxu2 %v6757_v57 }
 0x212   : > { %v1045_v58 = vpop.f32.mrf.mxu3 }
 0x214   : > { %1256 = vmatmul.bf16.gmra.mxu1 %v5135_v59 }
 0x224   : > { %1410 = vmatmul.bf16.vlgmr.msra.gmra.mxu1 %v5161_v0 }
 0x225   : > { %1830 = vmatpush.bf16.msra.mxu1 %v6164_v33 }
 0x231   : > { %v1062_v7 = vpop.f32.mrf.mxu1 }
 0x232   : > { %v1063_v14 = vadd.f32 %v1062_v7, %v1033_v55 }
 0x234   : > { %1415 = vmatmul.bf16.gmra.mxu1 %v5169_v9 }
 0x237   : > { %v949_v12 = vpop.f32.mrf.mxu2 }
 0x238   : > { %v950_v35 = vadd.f32 %v949_v12, %v6776_v1 }
 0x239   : > { %v1064_v13 = vpop.f32.mrf.mxu1 }
 0x23a   : > { %v1065_v22 = vadd.f32 %v1064_v13, %v1035_v60 }
 0x23c   : > { %v1082_v23 = vpack.c.bf16 %v1065_v22, %v1063_v14  ;;  %v1048_v22 = vpop.f32.mrf.mxu3 }
 0x23e   : > { %5088 = vmatmul.msk.bf16.vlgmr.msra.gmra.mxu2 %vm1095_vm3, %v1082_v23 }
 0x23f   : > { %1431 = vmatpush.bf16.msra.mxu2 %v6685_v16  ;;  %v951_v34 = vpop.f32.mrf.mxu2 }
 0x240   : > { %v952_v36 = vadd.f32 %v951_v34, %v6799_v10 }
 0x241   : > { %v1067_v39 = vpop.f32.mrf.mxu1 }
 0x242   : > { %v969_v42 = vpack.c.bf16 %v952_v36, %v950_v35  ;;  %v1068_v1 = vadd.f32 %v1067_v39, %v1038_v61  ;;  %v6129_v39 = vld [vmem:[%s8264_s3 + $0x84] sm:$0xf] }
 0x243   : > { %1432 = vmatpush.bf16.msra.mxu2 %v6692_v29 }
 0x244   : > { %5096 = vmatmul.msk.bf16.vlgmr.msrb.gmra.mxu3 %vm1095_vm3, %v969_v42  ;;  %1420 = vmatmul.bf16.gmra.mxu1 %v5177_v41  ;;  %v5112_v41 = vld [vmem:[%s8264_s3 + $0x88] sm:$0xf0] }
 0x245   : > { %v5115_v42 = vor.u32 %v6129_v39, %v5112_v41 }
 0x247   : > { %1433 = vmatpush.bf16.msra.mxu2 %v6700_v37  ;;  %v954_v44 = vpop.f32.mrf.mxu2 }
 0x248   : > { %v955_v20 = vadd.f32 %v954_v44, %v6819_v25 }
 0x249   : > { %v1069_v31 = vpop.f32.mrf.mxu1 }
 0x24a   : > { %v1070_v47 = vadd.f32 %v1069_v31, %v1040_v3  ;;  %v6131_v31 = vld [vmem:[%s8264_s3 + $0x94] sm:$0xf] }
 0x24b   : > { %1434 = vmatpush.bf16.msra.mxu2 %v6709_v43 }
 0x24c   : > { %v1083_v10 = vpack.c.bf16 %v1070_v47, %v1068_v1  ;;  %v5120_v1 = vld [vmem:[%s8264_s3 + $0x98] sm:$0xf0] }
 0x24d   : > { %v5123_v47 = vor.u32 %v6131_v31, %v5120_v1  ;;  %v6153_v1 = vld [vmem:[%s8264_s3 + $0x134] sm:$0xf] }
 0x24e   : > { %5089 = vmatmul.msk.bf16.gmra.mxu2 %vm1095_vm3, %v1083_v10 }
 0x24f   : > { %1435 = vmatpush.bf16.msra.mxu2 %v6718_v46  ;;  %v956_v51 = vpop.f32.mrf.mxu2 }
 0x250   : > { %v957_v17 = vadd.f32 %v956_v51, %v6836_v38  ;;  %v6147_v38 = vld [vmem:[%s8264_s3 + $0x104] sm:$0xf]  ;;  %v5131_v51 = vor.u32 %v6133_v26, %v5128_v49 }
 0x251   : > { %v1072_v55 = vpop.f32.mrf.mxu1  ;;  %v5215_v3 = vor.u32 %v6147_v38, %v5212_v62  ;;  %v5220_v38 = vld [vmem:[%s8264_s3 + $0x118] sm:$0xf0] }
 0x252   : > { %v970_v54 = vpack.c.bf16 %v957_v17, %v955_v20  ;;  %v1073_v59 = vadd.f32 %v1072_v55, %v1043_v21  ;;  %v6155_v20 = vld [vmem:[%s8265_s4 + $0x20] sm:$0xff] }
 0x253   : > { %1436 = vmatpush.bf16.msra.mxu2 %v6727_v50 }
 0x254   : > { %5097 = vmatmul.msk.bf16.gmra.mxu3 %vm1095_vm3, %v970_v54  ;;  %1425 = vmatmul.bf16.gmra.mxu1 %v5185_v18  ;;  %v6135_v18 = vld [vmem:[%s8264_s3 + $0xb4] sm:$0xf]  ;;  %v5136_v54 = vld [vmem:[%s8264_s3 + $0xb8] sm:$0xf0] }
 0x255   : > { %v5139_v55 = vor.u32 %v6135_v18, %v5136_v54 }
 0x257   : > { %1437 = vmatpush.bf16.msra.mxu2 %v6734_v52  ;;  %v959_v56 = vpop.f32.mrf.mxu2 }
 0x258   : > { %v960_v0 = vadd.f32 %v959_v56, %v6853_v45 }
 0x259   : > { %v1074_v60 = vpop.f32.mrf.mxu1 }
 0x25a   : > { %v1075_v61 = vadd.f32 %v1074_v60, %v1045_v58 }
 0x25b   : > { %1438 = vmatpush.bf16.msra.mxu2 %v6757_v57 }
 0x25c   : > { %v1084_v25 = vpack.c.bf16 %v1075_v61, %v1073_v59 }
 0x25e   : > { %5090 = vmatmul.msk.bf16.gmra.mxu2 %vm1095_vm3, %v1084_v25  ;;  %v6149_v25 = vld [vmem:[%s8264_s3 + $0x114] sm:$0xf] }
 0x25f   : > { %v961_v63 = vpop.f32.mrf.mxu2  ;;  %v5223_v62 = vor.u32 %v6149_v25, %v5220_v38  ;;  %v5186_v25 = vld [vmem:[%s8264_s3 + $0xf8] sm:$0xf0]  ;;  %v1580_v38 = vpop.f32.mrf.mxu0 }
 0x260   : > { %v962_v2 = vadd.f32 %v961_v63, %v6857_v27  ;;  %v6138_v63 = vld [vmem:[%s8264_s3 + $0xc4] sm:$0xf] }
 0x261   : > { %v6960_v6 = vpop.f32.mrf.mxu1 }
 0x262   : > { %v971_v4 = vpack.c.bf16 %v962_v2, %v960_v0  ;;  %v5162_v0 = vld [vmem:[%s8264_s3 + $0xc8] sm:$0xf0] }
 0x264   : > { %5098 = vmatmul.msk.bf16.gmra.mxu3 %vm1095_vm3, %v971_v4  ;;  %1608 = vmatmul.bf16.vlgmr.msrb.gmra.mxu1 %v5215_v3  ;;  %v5165_v4 = vor.u32 %v6138_v63, %v5162_v0 }
 0x265   : > { %2078 = vmatpush.bf16.msrb.mxu1 %v6561_v5 }
 0x267   : > { %v964_v7 = vpop.f32.mrf.mxu2 }
 0x268   : > { %v965_v45 = vadd.f32 %v964_v7, %v6875_v53  ;;  %v1050_v53 = vpop.f32.mrf.mxu3 }
 0x269   : > { %2079 = vmatpush.bf16.msrb.mxu1 %v6570_v11  ;;  %v6964_v9 = vpop.f32.mrf.mxu1 }
 0x26d   : > { %2080 = vmatpush.bf16.msrb.mxu1 %v6576_v15 }
 0x26f   : > { %v966_v12 = vpop.f32.mrf.mxu2 }
 0x270   : > { %v967_v27 = vadd.f32 %v966_v12, %v6888_v8 }
 0x271   : > { %2081 = vmatpush.bf16.msrb.mxu1 %v6583_v19  ;;  %v6971_v14 = vpop.f32.mrf.mxu1 }
 0x272   : > { %v972_v13 = vpack.c.bf16 %v967_v27, %v965_v45  ;;  %v6151_v27 = vld [vmem:[%s8264_s3 + $0x124] sm:$0xf] }
 0x274   : > { %5099 = vmatmul.msk.bf16.gmra.mxu3 %vm1095_vm3, %v972_v13  ;;  %1613 = vmatmul.bf16.gmra.mxu1 %v5223_v62  ;;  %v5228_v13 = vld [vmem:[%s8264_s3 + $0x128] sm:$0xf0] }
 0x275   : > { %2082 = vmatpush.bf16.msrb.mxu1 %v6546_v48 }
 0x277   : > { %v1077_v23 = vpop.f32.mrf.mxu2 }
 0x278   : > { %v1078_v8 = vadd.f32 %v1077_v23, %v1048_v22  ;;  %v5231_v23 = vor.u32 %v6151_v27, %v5228_v13  ;;  %v1582_v13 = vpop.f32.mrf.mxu0 }
 0x279   : > { %2083 = vmatpush.bf16.msrb.mxu1 %v6540_v40  ;;  %v6975_v28 = vpop.f32.mrf.mxu1 }
 0x27d   : > { %2084 = vmatpush.bf16.msrb.mxu1 %v6534_v32 }
 0x27f   : > { %v1079_v30 = vpop.f32.mrf.mxu2 }
 0x280   : > { %v1080_v34 = vadd.f32 %v1079_v30, %v1050_v53  ;;  %v6140_v30 = vld [vmem:[%s8264_s3 + $0xd4] sm:$0xf] }
 0x281   : > { %2085 = vmatpush.bf16.msrb.mxu1 %v6528_v24  ;;  %v6980_v36 = vpop.f32.mrf.mxu1 }
 0x282   : > { %v1085_v35 = vpack.c.bf16 %v1080_v34, %v1078_v8  ;;  %v5170_v8 = vld [vmem:[%s8264_s3 + $0xd8] sm:$0xf0] }
 0x284   : > { %5091 = vmatmul.msk.bf16.gmra.mxu2 %vm1095_vm3, %v1085_v35  ;;  %1618 = vmatmul.bf16.gmra.mxu1 %v5231_v23  ;;  %v5173_v35 = vor.u32 %v6140_v30, %v5170_v8 }
 0x289   : > { %v6988_v33 = vpop.f32.mrf.mxu1 }
 0x291   : > { %v6990_v44 = vpop.f32.mrf.mxu1 }
 0x294   : > { %1270 = vmatmul.bf16.vlgmr.msrb.gmra.mxu2 %v5115_v42 }
 0x295   : > { %1661 = vmatpush.bf16.msrb.mxu2 %v6155_v20  ;;  %v5178_v20 = vld [vmem:[%s8264_s3 + $0xe8] sm:$0xf0] }
 0x299   : > { %v6998_v10 = vpop.f32.mrf.mxu1 }
 0x2a1   : > { %v7006_v21 = vpop.f32.mrf.mxu1 }
 0x2a4   : > { %1275 = vmatmul.bf16.gmra.mxu2 %v5123_v47  ;;  %v5236_v47 = vld [vmem:[%s8264_s3 + $0x138] sm:$0xf0] }
 0x2a5   : > { %v5239_v26 = vor.u32 %v6153_v1, %v5236_v47 }
 0x2a7   : > { %1623 = vmatmul.bf16.gmra.mxu1 %v5239_v26 }
 0x2a9   : > { %v7011_v17 = vpop.f32.mrf.mxu1 }
 0x2b1   : > { %v7019_v58 = vpop.f32.mrf.mxu1 }
 0x2b4   : > { %1280 = vmatmul.bf16.gmra.mxu2 %v5131_v51  ;;  %v6142_v51 = vld [vmem:[%s8264_s3 + $0xe4] sm:$0xf] }
 0x2b5   : > { %v5181_v18 = vor.u32 %v6142_v51, %v5178_v20 }
 0x2b9   : > { %v7037_v2 = vpop.f32.mrf.mxu1 }
 0x2c1   : > { %v1117_v56 = vpop.f32.mrf.mxu2  ;;  %v7042_v45 = vpop.f32.mrf.mxu1 }
 0x2c4   : > { %1285 = vmatmul.bf16.gmra.mxu2 %v5139_v55  ;;  %v6137_v55 = vld [vmem:[%s8265_s4 + $0x10] sm:$0xff] }
 0x2c5   : > { %1323 = vmatpush.bf16.msra.mxu3 %v6137_v55 }
 0x2c7   : > { %v1164_v59 = vpop.f32.mrf.mxu3 }
 0x2c8   : > { %v7021_v60 = vadd.f32 %v1164_v59, %v1117_v56  ;;  %v6144_v59 = vld [vmem:[%s8264_s3 + $0xf4] sm:$0xf] }
 0x2c9   : > { %v7023_v61 = vpop.f32.mrf.mxu2  ;;  %v7065_v39 = vpop.f32.mrf.mxu1  ;;  %v5189_v0 = vor.u32 %v6144_v59, %v5186_v25 }
 0x2ca   : > { %v1585_v59 = vpop.f32.mrf.mxu0 }
 0x2cf   : > { %v7039_v3 = vpop.f32.mrf.mxu3 }
 0x2d1   : > { %v1122_v7 = vpop.f32.mrf.mxu2  ;;  %v7077_v49 = vpop.f32.mrf.mxu1 }
 0x2d4   : > { %1439 = vmatmul.bf16.vlgmr.msra.gmra.mxu2 %v5165_v4  ;;  %v6146_v4 = vld [vmem:[%s8265_s4 + $0x18] sm:$0xff] }
 0x2d5   : > { %1909 = vmatpush.bf16.msra.mxu2 %v6561_v5  ;;  %1492 = vmatpush.bf16.msrb.mxu3 %v6146_v4 }
 0x2d7   : > { %v1169_v12 = vpop.f32.mrf.mxu3 }
 0x2d8   : > { %v7050_v22 = vadd.f32 %v1169_v12, %v1122_v7 }
 0x2d9   : > { %1910 = vmatpush.bf16.msra.mxu2 %v6570_v11  ;;  %v7053_v53 = vpop.f32.mrf.mxu2  ;;  %v7087_v54 = vpop.f32.mrf.mxu1 }
 0x2dd   : > { %1911 = vmatpush.bf16.msra.mxu2 %v6576_v15 }
 0x2df   : > { %v7062_v34 = vpop.f32.mrf.mxu3 }
 0x2e1   : > { %1912 = vmatpush.bf16.msra.mxu2 %v6583_v19  ;;  %v1127_v41 = vpop.f32.mrf.mxu2  ;;  %v1609_v63 = vpop.f32.mrf.mxu1 }
 0x2e2   : > { %v1610_v30 = vadd.f32 %v1609_v63, %v1580_v38 }
 0x2e4   : > { %1444 = vmatmul.bf16.gmra.mxu2 %v5173_v35 }
 0x2e5   : > { %1913 = vmatpush.bf16.msra.mxu2 %v6546_v48 }
 0x2e7   : > { %v1174_v42 = vpop.f32.mrf.mxu3 }
 0x2e8   : > { %v7068_v31 = vadd.f32 %v1174_v42, %v1127_v41 }
 0x2e9   : > { %1914 = vmatpush.bf16.msra.mxu2 %v6540_v40  ;;  %v7100_v62 = vpop.f32.mrf.mxu2  ;;  %v1611_v23 = vpop.f32.mrf.mxu1 }
 0x2ea   : > { %v1612_v8 = vadd.f32 %v1611_v23, %v1582_v13 }
 0x2ec   : > { %v1629_v41 = vpack.c.bf16 %v1612_v8, %v1610_v30 }
 0x2ed   : > { %1915 = vmatpush.bf16.msra.mxu2 %v6534_v32 }
 0x2ef   : > { %v7092_v56 = vpop.f32.mrf.mxu3 }
 0x2f1   : > { %1916 = vmatpush.bf16.msra.mxu2 %v6528_v24  ;;  %v1614_v25 = vpop.f32.mrf.mxu1 }
 0x2f2   : > { %v1615_v63 = vadd.f32 %v1614_v25, %v1585_v59 }
 0x2f4   : > { %1449 = vmatmul.bf16.gmra.mxu2 %v5181_v18 }
 0x2f7   : > { %v1179_v7 = vpop.f32.mrf.mxu3 }
 0x2f9   : > { %v1616_v4 = vpop.f32.mrf.mxu1 }
 0x304   : > { %1454 = vmatmul.bf16.gmra.mxu2 %v5189_v0  ;;  %v1587_v0 = vpop.f32.mrf.mxu0 }
 0x307   : > { %v1132_v12 = vpop.f32.mrf.mxu2 }
 0x308   : > { %v7105_v27 = vadd.f32 %v1179_v7, %v1132_v12  ;;  %v1619_v12 = vpop.f32.mrf.mxu1 }
 0x30c   : > { %v1590_v7 = vpop.f32.mrf.mxu0 }
 0x30d   : > { %v1620_v30 = vadd.f32 %v1619_v12, %v1590_v7  ;;  %v5268_v7 = vld [vmem:[%s8264_s3 + $0x150] sm:$0xf]  ;;  %v6159_v12 = vld [vmem:[%s8264_s3 + $0x154] sm:$0xf0] }
 0x30f   : > { %v7107_v35 = vpop.f32.mrf.mxu2 }
 0x314   : > { %5246 = vmatmul.msk.bf16.vlgmr.msrb.gmra.mxu2 %vm1095_vm3, %v1629_v41  ;;  %v1592_v8 = vpop.f32.mrf.mxu0  ;;  %v1621_v41 = vpop.f32.mrf.mxu1 }
 0x315   : > { %2107 = vmatpush.bf16.msrb.mxu2 %v6685_v16 }
 0x317   : > { %v1271_v42 = vpop.f32.mrf.mxu2 }
 0x318   : > { %v1272_v47 = vadd.f32 %v1271_v42, %v6960_v6  ;;  %v1622_v42 = vadd.f32 %v1621_v41, %v1592_v8  ;;  %v5310_v41 = vld [vmem:[%s8264_s3 + $0x180] sm:$0xf] }
 0x319   : > { %2108 = vmatpush.bf16.msrb.mxu2 %v6692_v29 }
 0x31d   : > { %2109 = vmatpush.bf16.msrb.mxu2 %v6700_v37 }
 0x31f   : > { %v1273_v1 = vpop.f32.mrf.mxu2 }
 0x320   : > { %v1274_v26 = vadd.f32 %v1273_v1, %v6964_v9  ;;  %v1631_v1 = vpack.c.bf16 %v1622_v42, %v1620_v30  ;;  %v5286_v30 = vld [vmem:[%s8264_s3 + $0x178] sm:$0xf0]  ;;  %v6166_v42 = vld [vmem:[%s8264_s3 + $0x184] sm:$0xf0] }
 0x321   : > { %2110 = vmatpush.bf16.msrb.mxu2 %v6709_v43 }
 0x322   : > { %v1291_v51 = vpack.c.bf16 %v1274_v26, %v1272_v47  ;;  %v1595_v26 = vpop.f32.mrf.mxu0 }
 0x324   : > { %5146 = vmatmul.msk.bf16.vlgmr.msra.gmra.mxu3 %vm1095_vm3, %v1291_v51  ;;  %v1624_v51 = vpop.f32.mrf.mxu1 }
 0x325   : > { %1740 = vmatpush.bf16.msra.mxu3 %v6561_v5  ;;  %2111 = vmatpush.bf16.msrb.mxu2 %v6718_v46 }
 0x327   : > { %v1276_v20 = vpop.f32.mrf.mxu2 }
 0x328   : > { %v1277_v9 = vadd.f32 %v1276_v20, %v6971_v14 }
 0x329   : > { %1741 = vmatpush.bf16.msra.mxu3 %v6570_v11  ;;  %2112 = vmatpush.bf16.msrb.mxu2 %v6727_v50 }
 0x32d   : > { %1742 = vmatpush.bf16.msra.mxu3 %v6576_v15  ;;  %2113 = vmatpush.bf16.msrb.mxu2 %v6734_v52 }
 0x32f   : > { %v1278_v6 = vpop.f32.mrf.mxu2 }
 0x330   : > { %v1279_v18 = vadd.f32 %v1278_v6, %v6975_v28  ;;  %v1625_v6 = vadd.f32 %v1624_v51, %v1595_v26  ;;  %v6161_v26 = vld [vmem:[%s8264_s3 + $0x164] sm:$0xf0] }
 0x331   : > { %1743 = vmatpush.bf16.msra.mxu3 %v6583_v19  ;;  %2114 = vmatpush.bf16.msrb.mxu2 %v6757_v57 }
 0x332   : > { %v1292_v5 = vpack.c.bf16 %v1279_v18, %v1277_v9  ;;  %v1597_v18 = vpop.f32.mrf.mxu0 }
 0x334   : > { %5147 = vmatmul.msk.bf16.gmra.mxu3 %vm1095_vm3, %v1292_v5  ;;  %v1626_v5 = vpop.f32.mrf.mxu1 }
 0x335   : > { %1744 = vmatpush.bf16.msra.mxu3 %v6546_v48 }
 0x337   : > { %v1281_v11 = vpop.f32.mrf.mxu2 }
 0x338   : > { %v1282_v55 = vadd.f32 %v1281_v11, %v6980_v36  ;;  %v1617_v36 = vadd.f32 %v1616_v4, %v1587_v0  ;;  %v1627_v11 = vadd.f32 %v1626_v5, %v1597_v18  ;;  %v6160_v0 = vld [vmem:[%s8264_s3 + $0x164] sm:$0xf]  ;;  %v5278_v4 = vld [vmem:[%s8264_s3 + $0x168] sm:$0xf0]  ;;  %v5284_v18 = vld [vmem:[%s8264_s3 + $0x170] sm:$0xf] }
 0x339   : > { %1745 = vmatpush.bf16.msra.mxu3 %v6540_v40  ;;  %v6163_v5 = vld [vmem:[%s8264_s3 + $0x174] sm:$0xf0] }
 0x33d   : > { %1746 = vmatpush.bf16.msra.mxu3 %v6534_v32 }
 0x33f   : > { %v1283_v15 = vpop.f32.mrf.mxu2 }
 0x340   : > { %v1284_v14 = vadd.f32 %v1283_v15, %v6988_v33  ;;  %v1630_v33 = vpack.c.bf16 %v1617_v36, %v1615_v63  ;;  %v1632_v15 = vpack.c.bf16 %v1627_v11, %v1625_v6  ;;  %v5260_v63 = vld [vmem:[%s8264_s3 + $0x140] sm:$0xf]  ;;  %v5281_v36 = vor.u32 %v6160_v0, %v5278_v4  ;;  %v6168_v6 = vld [vmem:[%s8264_s3 + $0x194] sm:$0xf0]  ;;  %v5320_v0 = vld [vmem:[%s8264_s3 + $0x198] sm:$0xf0] }
 0x341   : > { %1747 = vmatpush.bf16.msra.mxu3 %v6528_v24 }
 0x342   : > { %v1293_v19 = vpack.c.bf16 %v1284_v14, %v1282_v55  ;;  %5247 = vmatmul.msk.bf16.gmra.mxu2 %vm1095_vm3, %v1630_v33 }
 0x344   : > { %5148 = vmatmul.msk.bf16.gmra.mxu3 %vm1095_vm3, %v1293_v19 }
 0x347   : > { %v1286_v28 = vpop.f32.mrf.mxu2 }
 0x348   : > { %v1287_v48 = vadd.f32 %v1286_v28, %v6990_v44 }
 0x34f   : > { %v1288_v38 = vpop.f32.mrf.mxu2 }
 0x350   : > { %v1289_v40 = vadd.f32 %v1288_v38, %v6998_v10 }
 0x352   : > { %v1294_v32 = vpack.c.bf16 %v1289_v40, %v1287_v48  ;;  %5248 = vmatmul.msk.bf16.gmra.mxu2 %vm1095_vm3, %v1631_v1  ;;  %v6158_v48 = vld [vmem:[%s8264_s3 + $0x154] sm:$0xf]  ;;  %v5311_v1 = vor.u32 %v6166_v42, %v5310_v41 }
 0x354   : > { %5149 = vmatmul.msk.bf16.gmra.mxu3 %vm1095_vm3, %v1294_v32 }
 0x357   : > { %v1440_v24 = vpop.f32.mrf.mxu2 }
 0x358   : > { %v1441_v23 = vadd.f32 %v1440_v24, %v7006_v21 }
 0x35f   : > { %v1442_v13 = vpop.f32.mrf.mxu2 }
 0x360   : > { %v1443_v44 = vadd.f32 %v1442_v13, %v7011_v17 }
 0x362   : > { %v1460_v10 = vpack.c.bf16 %v1443_v44, %v1441_v23  ;;  %5249 = vmatmul.msk.bf16.gmra.mxu2 %vm1095_vm3, %v1632_v15  ;;  %v5269_v23 = vor.u32 %v6159_v12, %v5268_v7  ;;  %v6162_v44 = vld [vmem:[%s8264_s3 + $0x174] sm:$0xf] }
 0x364   : > { %5196 = vmatmul.msk.bf16.vlgmr.msrb.gmra.mxu3 %vm1095_vm3, %v1460_v10 }
 0x365   : > { %1938 = vmatpush.bf16.msrb.mxu3 %v6685_v16 }
 0x367   : > { %v1445_v47 = vpop.f32.mrf.mxu2 }
 0x368   : > { %v1446_v17 = vadd.f32 %v1445_v47, %v7019_v58  ;;  %v5276_v47 = vld [vmem:[%s8264_s3 + $0x160] sm:$0xf] }
 0x369   : > { %1939 = vmatpush.bf16.msrb.mxu3 %v6692_v29 }
 0x36d   : > { %1940 = vmatpush.bf16.msrb.mxu3 %v6700_v37 }
 0x36f   : > { %v1447_v21 = vpop.f32.mrf.mxu2 }
 0x370   : > { %v1448_v20 = vadd.f32 %v1447_v21, %v7037_v2 }
 0x371   : > { %1941 = vmatpush.bf16.msrb.mxu3 %v6709_v43 }
 0x372   : > { %v1461_v9 = vpack.c.bf16 %v1448_v20, %v1446_v17  ;;  %1917 = vmatmul.bf16.vlgmr.msra.gmra.mxu2 %v5311_v1  ;;  %v5318_v20 = vld [vmem:[%s8264_s3 + $0x190] sm:$0xf] }
 0x374   : > { %5197 = vmatmul.msk.bf16.gmra.mxu3 %vm1095_vm3, %v1461_v9  ;;  %v5319_v9 = vor.u32 %v6168_v6, %v5318_v20 }
 0x375   : > { %1942 = vmatpush.bf16.msrb.mxu3 %v6718_v46 }
 0x377   : > { %v1450_v55 = vpop.f32.mrf.mxu2 }
 0x378   : > { %v1451_v2 = vadd.f32 %v1450_v55, %v7042_v45  ;;  %v5270_v45 = vld [vmem:[%s8264_s3 + $0x158] sm:$0xf0] }
 0x379   : > { %1943 = vmatpush.bf16.msrb.mxu3 %v6727_v50 }
 0x37d   : > { %1944 = vmatpush.bf16.msrb.mxu3 %v6734_v52 }
 0x37f   : > { %v1452_v58 = vpop.f32.mrf.mxu2 }
 0x380   : > { %v1453_v14 = vadd.f32 %v1452_v58, %v7065_v39  ;;  %v5273_v39 = vor.u32 %v6158_v48, %v5270_v45  ;;  %v5326_v58 = vld [vmem:[%s8264_s3 + $0x1a0] sm:$0xf] }
 0x381   : > { %1945 = vmatpush.bf16.msrb.mxu3 %v6757_v57 }
 0x382   : > { %v1462_v19 = vpack.c.bf16 %v1453_v14, %v1451_v2  ;;  %1782 = vmatmul.bf16.gmra.mxu0 %v5273_v39  ;;  %1922 = vmatmul.bf16.gmra.mxu2 %v5319_v9  ;;  %v6170_v2 = vld [vmem:[%s8264_s3 + $0x1a4] sm:$0xf0] }
 0x384   : > { %5198 = vmatmul.msk.bf16.gmra.mxu3 %vm1095_vm3, %v1462_v19  ;;  %v5327_v19 = vor.u32 %v6170_v2, %v5326_v58 }
 0x387   : > { %v1455_v28 = vpop.f32.mrf.mxu2 }
 0x388   : > { %v1456_v25 = vadd.f32 %v1455_v28, %v7077_v49  ;;  %v6157_v49 = vld [vmem:[%s8264_s3 + $0x144] sm:$0xf0]  ;;  %v6165_v28 = vld [vmem:[%s8264_s3 + $0x184] sm:$0xf] }
 0x389   : > { %v5261_v32 = vor.u32 %v6157_v49, %v5260_v63  ;;  %v6172_v63 = vld [vmem:[%s8264_s3 + $0x1b4] sm:$0xf0] }
 0x38f   : > { %v1457_v59 = vpop.f32.mrf.mxu2 }
 0x390   : > { %v1458_v38 = vadd.f32 %v1457_v59, %v7087_v54  ;;  %v7173_v54 = vpop.f32.mrf.mxu3  ;;  %v5312_v59 = vld [vmem:[%s8264_s3 + $0x188] sm:$0xf0] }
 0x392   : > { %v1463_v40 = vpack.c.bf16 %v1458_v38, %v1456_v25  ;;  %1787 = vmatmul.bf16.gmra.mxu0 %v5281_v36  ;;  %1927 = vmatmul.bf16.gmra.mxu2 %v5327_v19  ;;  %v5315_v25 = vor.u32 %v6165_v28, %v5312_v59 }
 0x394   : > { %5199 = vmatmul.msk.bf16.gmra.mxu3 %vm1095_vm3, %v1463_v40  ;;  %v5334_v40 = vld [vmem:[%s8264_s3 + $0x1b0] sm:$0xf] }
 0x395   : > { %v5335_v49 = vor.u32 %v6172_v63, %v5334_v40 }
 0x397   : > { %v1663_v14 = vpop.f32.mrf.mxu2 }
 0x39f   : > { %v7241_v38 = vpop.f32.mrf.mxu2 }
 0x3a2   : > { %1932 = vmatmul.bf16.gmra.mxu2 %v5335_v49 }
 0x3a4   : > { %1748 = vmatmul.bf16.vlgmr.msra.gmra.mxu3 %v5261_v32  ;;  %v6167_v32 = vld [vmem:[%s8264_s3 + $0x194] sm:$0xf] }
 0x3a7   : > { %v1325_v33 = vpop.f32.mrf.mxu3 }
 0x3a8   : > { %v1345_v24 = vadd.f32 %v1325_v33, %v7021_v60  ;;  %v5289_v60 = vor.u32 %v6162_v44, %v5286_v30  ;;  %v5323_v33 = vor.u32 %v6167_v32, %v5320_v0  ;;  %v6169_v44 = vld [vmem:[%s8264_s3 + $0x1a4] sm:$0xf]  ;;  %v5328_v30 = vld [vmem:[%s8264_s3 + $0x1a8] sm:$0xf0] }
 0x3aa   : > { %1792 = vmatmul.bf16.gmra.mxu0 %v5289_v60 }
 0x3af   : > { %v7188_v13 = vpop.f32.mrf.mxu3 }
 0x3b4   : > { %1753 = vmatmul.bf16.gmra.mxu3 %v5269_v23 }
 0x3b7   : > { %v1330_v10 = vpop.f32.mrf.mxu3 }
 0x3b8   : > { %v1347_v8 = vadd.f32 %v1330_v10, %v7050_v22  ;;  %v5277_v22 = vor.u32 %v6161_v26, %v5276_v47  ;;  %v5331_v10 = vor.u32 %v6169_v44, %v5328_v30  ;;  %v6171_v26 = vld [vmem:[%s8264_s3 + $0x1b4] sm:$0xf] }
 0x3bf   : > { %v7209_v51 = vpop.f32.mrf.mxu3 }
 0x3c4   : > { %1758 = vmatmul.bf16.gmra.mxu3 %v5277_v22  ;;  %v5336_v22 = vld [vmem:[%s8264_s3 + $0x1b8] sm:$0xf0] }
 0x3c5   : > { %v1668_v36 = vpop.f32.mrf.mxu2  ;;  %v5339_v20 = vor.u32 %v6171_v26, %v5336_v22 }
 0x3c7   : > { %v1335_v21 = vpop.f32.mrf.mxu3 }
 0x3c8   : > { %v1349_v17 = vadd.f32 %v1335_v21, %v7068_v31  ;;  %v5285_v31 = vor.u32 %v6163_v5, %v5284_v18 }
 0x3cd   : > { %v7259_v12 = vpop.f32.mrf.mxu2 }
 0x3cf   : > { %v7224_v11 = vpop.f32.mrf.mxu3 }
 0x3d4   : > { %1763 = vmatmul.bf16.gmra.mxu3 %v5285_v31 }
 0x3d5   : > { %v1673_v41 = vpop.f32.mrf.mxu2 }
 0x3d7   : > { %v1340_v15 = vpop.f32.mrf.mxu3 }
 0x3d8   : > { %v1351_v55 = vadd.f32 %v1340_v15, %v7105_v27 }
 0x3dd   : > { %v7273_v47 = vpop.f32.mrf.mxu2 }
 0x3df   : > { %v7239_v27 = vpop.f32.mrf.mxu3 }
 0x3e4   : > { %1946 = vmatmul.bf16.vlgmr.msrb.gmra.mxu3 %v5315_v25 }
 0x3e5   : > { %v1678_v9 = vpop.f32.mrf.mxu2 }
 0x3e7   : > { %v1494_v48 = vpop.f32.mrf.mxu3 }
 0x3e8   : > { %v1514_v45 = vadd.f32 %v1494_v48, %v1345_v24 }
 0x3ea   : > { %v7243_v39 = vadd.f32 %v1663_v14, %v1514_v45 }
 0x3ef   : > { %v7257_v4 = vpop.f32.mrf.mxu3 }
 0x3f4   : > { %1951 = vmatmul.bf16.gmra.mxu3 %v5323_v33 }
 0x3f7   : > { %v1499_v24 = vpop.f32.mrf.mxu3 }
 0x3f8   : > { %v1516_v7 = vadd.f32 %v1499_v24, %v1347_v8 }
 0x3fa   : > { %v7261_v23 = vadd.f32 %v1668_v36, %v1516_v7 }
 0x3ff   : > { %v7269_v60 = vpop.f32.mrf.mxu3 }
 0x404   : > { %1956 = vmatmul.bf16.gmra.mxu3 %v5331_v10 }
 0x407   : > { %v1504_v42 = vpop.f32.mrf.mxu3 }
 0x408   : > { %v1518_v1 = vadd.f32 %v1504_v42, %v1349_v17  ;;  %v1778_v17 = vpop.f32.mrf.mxu0 }
 0x40a   : > { %v7271_v8 = vadd.f32 %v1673_v41, %v1518_v1 }
 0x40f   : > { %v7281_v21 = vpop.f32.mrf.mxu3 }
 0x410   : > { %v1780_v15 = vpop.f32.mrf.mxu0 }
 0x414   : > { %1961 = vmatmul.bf16.gmra.mxu3 %v5339_v20 }
 0x417   : > { %v1509_v6 = vpop.f32.mrf.mxu3 }
 0x418   : > { %v1520_v18 = vadd.f32 %v1509_v6, %v1351_v55  ;;  %v1783_v2 = vpop.f32.mrf.mxu0  ;;  %v6178_v6 = vld [vmem:[%s8264_s3 + $0x1e4] sm:$0xf] }
 0x41a   : > { %v7283_v5 = vadd.f32 %v1678_v9, %v1520_v18  ;;  %v5378_v9 = vld [vmem:[%s8264_s3 + $0x1e8] sm:$0xf0] }
 0x41b   : > { %v5381_v18 = vor.u32 %v6178_v6, %v5378_v9 }
 0x41f   : > { %v7285_v31 = vpop.f32.mrf.mxu3 }
 0x420   : > { %v1785_v48 = vpop.f32.mrf.mxu0 }
 0x427   : > { %v1749_v58 = vpop.f32.mrf.mxu3 }
 0x428   : > { %v1779_v19 = vadd.f32 %v1778_v17, %v1749_v58  ;;  %v1788_v63 = vpop.f32.mrf.mxu0  ;;  %v6175_v58 = vld [vmem:[%s8264_s3 + $0x1c4] sm:$0xf0] }
 0x42f   : > { %v1751_v14 = vpop.f32.mrf.mxu3 }
 0x430   : > { %v1781_v28 = vadd.f32 %v1780_v15, %v1751_v14  ;;  %v1790_v0 = vpop.f32.mrf.mxu0  ;;  %v5360_v15 = vld [vmem:[%s8264_s3 + $0x1c0] sm:$0xf] }
 0x432   : > { %v1798_v59 = vpack.c.bf16 %v1781_v28, %v1779_v19  ;;  %v5361_v28 = vor.u32 %v6175_v58, %v5360_v15  ;;  %v6184_v15 = vld [vmem:[%s8264_s3 + $0x204] sm:$0xf0]  ;;  %v6183_v58 = vld [vmem:[%s8264_s3 + $0x204] sm:$0xf] }
 0x434   : > { %5296 = vmatmul.msk.bf16.vlgmr.msra.gmra.mxu1 %vm1095_vm3, %v1798_v59 }
 0x435   : > { %2276 = vmatpush.bf16.msra.mxu1 %v6685_v16  ;;  %v6174_v16 = vld [vmem:[%s8264_s3 + $0x1c4] sm:$0xf] }
 0x437   : > { %v1754_v25 = vpop.f32.mrf.mxu3 }
 0x438   : > { %v1784_v45 = vadd.f32 %v1783_v2, %v1754_v25  ;;  %v1793_v7 = vpop.f32.mrf.mxu0 }
 0x439   : > { %2277 = vmatpush.bf16.msra.mxu1 %v6692_v29  ;;  %v5362_v29 = vld [vmem:[%s8264_s3 + $0x1c8] sm:$0xf0] }
 0x43d   : > { %2278 = vmatpush.bf16.msra.mxu1 %v6700_v37  ;;  %v5365_v37 = vor.u32 %v6174_v16, %v5362_v29 }
 0x43f   : > { %v1756_v55 = vpop.f32.mrf.mxu3  ;;  %2115 = vmatmul.bf16.vlgmr.msrb.gmra.mxu2 %v5365_v37 }
 0x440   : > { %v1786_v40 = vadd.f32 %v1785_v48, %v1756_v55  ;;  %v1795_v41 = vpop.f32.mrf.mxu0  ;;  %v6180_v55 = vld [vmem:[%s8264_s3 + $0x1f4] sm:$0xf] }
 0x441   : > { %2279 = vmatpush.bf16.msra.mxu1 %v6709_v43 }
 0x442   : > { %v1799_v49 = vpack.c.bf16 %v1786_v40, %v1784_v45  ;;  %v5386_v45 = vld [vmem:[%s8264_s3 + $0x1f8] sm:$0xf0] }
 0x443   : > { %v5389_v40 = vor.u32 %v6180_v55, %v5386_v45  ;;  %v6186_v55 = vld [vmem:[%s8264_s3 + $0x214] sm:$0xf0]  ;;  %v6185_v45 = vld [vmem:[%s8264_s3 + $0x214] sm:$0xf] }
 0x444   : > { %5297 = vmatmul.msk.bf16.gmra.mxu1 %vm1095_vm3, %v1799_v49  ;;  %v6177_v49 = vld [vmem:[%s8264_s3 + $0x1d4] sm:$0xf0] }
 0x445   : > { %2280 = vmatpush.bf16.msra.mxu1 %v6718_v46  ;;  %v7302_v46 = vpop.f32.mrf.mxu2 }
 0x447   : > { %v1759_v32 = vpop.f32.mrf.mxu3 }
 0x448   : > { %v1789_v36 = vadd.f32 %v1788_v63, %v1759_v32  ;;  %v5368_v63 = vld [vmem:[%s8264_s3 + $0x1d0] sm:$0xf] }
 0x449   : > { %2281 = vmatpush.bf16.msra.mxu1 %v6727_v50  ;;  %v6176_v50 = vld [vmem:[%s8264_s3 + $0x1d4] sm:$0xf]  ;;  %v5369_v37 = vor.u32 %v6177_v49, %v5368_v63 }
 0x44d   : > { %2282 = vmatpush.bf16.msra.mxu1 %v6734_v52  ;;  %v5370_v52 = vld [vmem:[%s8264_s3 + $0x1d8] sm:$0xf0]  ;;  %v1918_v30 = vpop.f32.mrf.mxu2 }
 0x44e   : > { %v5373_v10 = vor.u32 %v6176_v50, %v5370_v52 }
 0x44f   : > { %v1761_v43 = vpop.f32.mrf.mxu3 }
 0x450   : > { %v1791_v33 = vadd.f32 %v1790_v0, %v1761_v43  ;;  %2120 = vmatmul.bf16.gmra.mxu2 %v5373_v10 }
 0x451   : > { %2283 = vmatpush.bf16.msra.mxu1 %v6757_v57 }
 0x452   : > { %v1800_v24 = vpack.c.bf16 %v1791_v33, %v1789_v36 }
 0x454   : > { %5298 = vmatmul.msk.bf16.gmra.mxu1 %vm1095_vm3, %v1800_v24  ;;  %v5376_v24 = vld [vmem:[%s8264_s3 + $0x1e0] sm:$0xf] }
 0x455   : > { %v1920_v22 = vpop.f32.mrf.mxu2 }
 0x457   : > { %v1764_v44 = vpop.f32.mrf.mxu3 }
 0x458   : > { %v1794_v1 = vadd.f32 %v1793_v7, %v1764_v44  ;;  %v6179_v7 = vld [vmem:[%s8264_s3 + $0x1e4] sm:$0xf0] }
 0x45d   : > { %v1923_v17 = vpop.f32.mrf.mxu2 }
 0x45f   : > { %v1766_v42 = vpop.f32.mrf.mxu3 }
 0x460   : > { %v1796_v57 = vadd.f32 %v1795_v41, %v1766_v42  ;;  %2125 = vmatmul.bf16.gmra.mxu2 %v5381_v18 }
 0x462   : > { %v1801_v26 = vpack.c.bf16 %v1796_v57, %v1794_v1  ;;  %v5384_v1 = vld [vmem:[%s8264_s3 + $0x1f0] sm:$0xf]  ;;  %v6181_v57 = vld [vmem:[%s8264_s3 + $0x1f4] sm:$0xf0] }
 0x463   : > { %v5385_v9 = vor.u32 %v6181_v57, %v5384_v1 }
 0x464   : > { %5299 = vmatmul.msk.bf16.gmra.mxu1 %vm1095_vm3, %v1801_v26 }
 0x465   : > { %v1925_v25 = vpop.f32.mrf.mxu2 }
 0x467   : > { %v1947_v20 = vpop.f32.mrf.mxu3 }
 0x468   : > { %v1948_v14 = vadd.f32 %v1947_v20, %v1918_v30  ;;  %v5377_v30 = vor.u32 %v6179_v7, %v5376_v24 }
 0x46d   : > { %v1928_v0 = vpop.f32.mrf.mxu2 }
 0x46f   : > { %v1949_v2 = vpop.f32.mrf.mxu3 }
 0x470   : > { %v1950_v19 = vadd.f32 %v1949_v2, %v1920_v22  ;;  %2130 = vmatmul.bf16.gmra.mxu2 %v5389_v40  ;;  %v5412_v2 = vld [vmem:[%s8264_s3 + $0x208] sm:$0xf0] }
 0x472   : > { %v1967_v59 = vpack.c.bf16 %v1950_v19, %v1948_v14  ;;  %v5415_v19 = vor.u32 %v6183_v58, %v5412_v2 }
 0x474   : > { %5346 = vmatmul.msk.bf16.vlgmr.msrb.gmra.mxu0 %vm1095_vm3, %v1967_v59  ;;  %2086 = vmatmul.bf16.vlgmr.msrb.gmra.mxu1 %v5361_v28 }
 0x475   : > { %v1930_v33 = vpop.f32.mrf.mxu2 }
 0x477   : > { %v1952_v48 = vpop.f32.mrf.mxu3 }
 0x478   : > { %v1953_v16 = vadd.f32 %v1952_v48, %v1923_v17  ;;  %v5410_v17 = vld [vmem:[%s8264_s3 + $0x200] sm:$0xf]  ;;  %v5418_v48 = vld [vmem:[%s8264_s3 + $0x210] sm:$0xf] }
 0x479   : > { %v5411_v14 = vor.u32 %v6184_v15, %v5410_v17  ;;  %v5419_v40 = vor.u32 %v6186_v55, %v5418_v48 }
 0x47d   : > { %v1933_v41 = vpop.f32.mrf.mxu2 }
 0x47f   : > { %v1954_v32 = vpop.f32.mrf.mxu3 }
 0x480   : > { %v1955_v29 = vadd.f32 %v1954_v32, %v1925_v25 }
 0x482   : > { %v1968_v43 = vpack.c.bf16 %v1955_v29, %v1953_v16  ;;  %v5426_v29 = vld [vmem:[%s8264_s3 + $0x220] sm:$0xf] }
 0x484   : > { %5347 = vmatmul.msk.bf16.gmra.mxu0 %vm1095_vm3, %v1968_v43  ;;  %2091 = vmatmul.bf16.gmra.mxu1 %v5369_v37  ;;  %v6188_v37 = vld [vmem:[%s8264_s3 + $0x224] sm:$0xf0] }
 0x485   : > { %v1935_v26 = vpop.f32.mrf.mxu2  ;;  %v5427_v43 = vor.u32 %v6188_v37, %v5426_v29 }
 0x487   : > { %v1957_v36 = vpop.f32.mrf.mxu3 }
 0x488   : > { %v1958_v50 = vadd.f32 %v1957_v36, %v1928_v0  ;;  %v6187_v0 = vld [vmem:[%s8264_s3 + $0x224] sm:$0xf] }
 0x48f   : > { %v1959_v44 = vpop.f32.mrf.mxu3 }
 0x490   : > { %v1960_v52 = vadd.f32 %v1959_v44, %v1930_v33  ;;  %v6182_v44 = vld [vmem:[%s8265_s4 + $0x38] sm:$0xff] }
 0x491   : > { %2168 = vmatpush.bf16.msra.mxu3 %v6182_v44 }
 0x492   : > { %v1969_v10 = vpack.c.bf16 %v1960_v52, %v1958_v50  ;;  %v5434_v50 = vld [vmem:[%s8264_s3 + $0x230] sm:$0xf]  ;;  %v6190_v52 = vld [vmem:[%s8264_s3 + $0x234] sm:$0xf0] }
 0x494   : > { %5348 = vmatmul.msk.bf16.gmra.mxu0 %vm1095_vm3, %v1969_v10  ;;  %2096 = vmatmul.bf16.gmra.mxu1 %v5377_v30  ;;  %v5436_v30 = vld [vmem:[%s8264_s3 + $0x238] sm:$0xf0]  ;;  %v5435_v10 = vor.u32 %v6190_v52, %v5434_v50 }
 0x497   : > { %v1962_v42 = vpop.f32.mrf.mxu3 }
 0x498   : > { %v1963_v20 = vadd.f32 %v1962_v42, %v1933_v41 }
 0x49f   : > { %v1964_v22 = vpop.f32.mrf.mxu3 }
 0x4a0   : > { %v1965_v6 = vadd.f32 %v1964_v22, %v1935_v26 }
 0x4a2   : > { %v1970_v18 = vpack.c.bf16 %v1965_v6, %v1963_v20 }
 0x4a4   : > { %5349 = vmatmul.msk.bf16.gmra.mxu0 %vm1095_vm3, %v1970_v18  ;;  %2101 = vmatmul.bf16.gmra.mxu1 %v5385_v9 }
 0x4b1   : > { %v1832_v28 = vpop.f32.mrf.mxu1 }
 0x4b2   : > { %v1852_v59 = vadd.f32 %v1832_v28, %v7243_v39  ;;  %v5420_v39 = vld [vmem:[%s8264_s3 + $0x218] sm:$0xf0] }
 0x4b3   : > { %v5423_v63 = vor.u32 %v6185_v45, %v5420_v39 }
 0x4b4   : > { %2255 = vmatmul.bf16.vlgmr.msra.gmra.mxu0 %v5411_v14  ;;  %2284 = vmatmul.bf16.vlgmr.msra.gmra.mxu1 %v5415_v19 }
 0x4b9   : > { %v7366_v25 = vpop.f32.mrf.mxu1 }
 0x4c1   : > { %v1837_v49 = vpop.f32.mrf.mxu1 }
 0x4c2   : > { %v1854_v32 = vadd.f32 %v1837_v49, %v7261_v23  ;;  %v5428_v23 = vld [vmem:[%s8264_s3 + $0x228] sm:$0xf0]  ;;  %v2116_v42 = vpop.f32.mrf.mxu2  ;;  %v6191_v49 = vld [vmem:[%s8265_s4 + $0x40] sm:$0xff] }
 0x4c3   : > { %v5431_v36 = vor.u32 %v6187_v0, %v5428_v23  ;;  %2337 = vmatpush.bf16.msra.mxu2 %v6191_v49 }
 0x4c4   : > { %2260 = vmatmul.bf16.gmra.mxu0 %v5419_v40  ;;  %2289 = vmatmul.bf16.gmra.mxu1 %v5423_v63 }
 0x4c9   : > { %v7381_v16 = vpop.f32.mrf.mxu1 }
 0x4ca   : > { %v2118_v22 = vpop.f32.mrf.mxu2 }
 0x4d1   : > { %v1842_v33 = vpop.f32.mrf.mxu1 }
 0x4d2   : > { %v1856_v24 = vadd.f32 %v1842_v33, %v7271_v8  ;;  %v6189_v8 = vld [vmem:[%s8264_s3 + $0x234] sm:$0xf] }
 0x4d3   : > { %v5439_v41 = vor.u32 %v6189_v8, %v5436_v30  ;;  %v2121_v18 = vpop.f32.mrf.mxu2 }
 0x4d4   : > { %2265 = vmatmul.bf16.gmra.mxu0 %v5427_v43  ;;  %2294 = vmatmul.bf16.gmra.mxu1 %v5431_v36 }
 0x4d9   : > { %v7396_v7 = vpop.f32.mrf.mxu1 }
 0x4db   : > { %v2123_v19 = vpop.f32.mrf.mxu2 }
 0x4e1   : > { %v1847_v1 = vpop.f32.mrf.mxu1 }
 0x4e2   : > { %v1858_v57 = vadd.f32 %v1847_v1, %v7283_v5 }
 0x4e3   : > { %v2126_v55 = vpop.f32.mrf.mxu2 }
 0x4e4   : > { %2270 = vmatmul.bf16.gmra.mxu0 %v5435_v10  ;;  %2299 = vmatmul.bf16.gmra.mxu1 %v5439_v41 }
 0x4e9   : > { %v7414_v26 = vpop.f32.mrf.mxu1 }
 0x4f1   : > { %v2001_v20 = vpop.f32.mrf.mxu0  ;;  %v2087_v6 = vpop.f32.mrf.mxu1 }
 0x4f2   : > { %v7416_v9 = vadd.f32 %v2001_v20, %v1852_v59  ;;  %v2117_v58 = vadd.f32 %v2116_v42, %v2087_v6 }
 0x4f9   : > { %v7418_v17 = vpop.f32.mrf.mxu0  ;;  %v2089_v15 = vpop.f32.mrf.mxu1 }
 0x4fa   : > { %v2119_v2 = vadd.f32 %v2118_v22, %v2089_v15 }
 0x4fc   : > { %v2136_v14 = vpack.c.bf16 %v2119_v2, %v2117_v58 }
 0x4fe   : > { %5396 = vmatmul.msk.bf16.vlgmr.msra.gmra.mxu3 %vm1095_vm3, %v2136_v14 }
 0x501   : > { %v2006_v5 = vpop.f32.mrf.mxu0  ;;  %v2092_v28 = vpop.f32.mrf.mxu1 }
 0x502   : > { %v7421_v48 = vadd.f32 %v2006_v5, %v1854_v32  ;;  %v2122_v59 = vadd.f32 %v2121_v18, %v2092_v28  ;;  %v2128_v32 = vpop.f32.mrf.mxu2 }
 0x509   : > { %v7423_v45 = vpop.f32.mrf.mxu0  ;;  %v2094_v39 = vpop.f32.mrf.mxu1 }
 0x50a   : > { %v2124_v40 = vadd.f32 %v2123_v19, %v2094_v39  ;;  %v2131_v50 = vpop.f32.mrf.mxu2 }
 0x50c   : > { %v2137_v63 = vpack.c.bf16 %v2124_v40, %v2122_v59 }
 0x50e   : > { %5397 = vmatmul.msk.bf16.gmra.mxu3 %vm1095_vm3, %v2137_v63 }
 0x511   : > { %v2011_v29 = vpop.f32.mrf.mxu0  ;;  %v2097_v37 = vpop.f32.mrf.mxu1 }
 0x512   : > { %v7429_v0 = vadd.f32 %v2011_v29, %v1856_v24  ;;  %v2127_v36 = vadd.f32 %v2126_v55, %v2097_v37  ;;  %v2133_v10 = vpop.f32.mrf.mxu2 }
 0x519   : > { %v7431_v23 = vpop.f32.mrf.mxu0  ;;  %v2099_v43 = vpop.f32.mrf.mxu1 }
 0x51a   : > { %v2129_v33 = vadd.f32 %v2128_v32, %v2099_v43 }
 0x51c   : > { %v2138_v44 = vpack.c.bf16 %v2129_v33, %v2127_v36 }
 0x51e   : > { %5398 = vmatmul.msk.bf16.gmra.mxu3 %vm1095_vm3, %v2138_v44 }
 0x521   : > { %v2016_v52 = vpop.f32.mrf.mxu0  ;;  %v2102_v8 = vpop.f32.mrf.mxu1 }
 0x522   : > { %v7434_v30 = vadd.f32 %v2016_v52, %v1858_v57  ;;  %v2132_v24 = vadd.f32 %v2131_v50, %v2102_v8 }
 0x529   : > { %v7436_v41 = vpop.f32.mrf.mxu0  ;;  %v2104_v42 = vpop.f32.mrf.mxu1 }
 0x52a   : > { %v2134_v1 = vadd.f32 %v2133_v10, %v2104_v42 }
 0x52c   : > { %v2139_v22 = vpack.c.bf16 %v2134_v1, %v2132_v24  ;;  %v1167_v1 = vadd.f32 %v7039_v3, %v7023_v61 }
 0x52e   : > { %5399 = vmatmul.msk.bf16.gmra.mxu3 %vm1095_vm3, %v2139_v22  ;;  %v1346_v22 = vadd.f32 %v7188_v13, %v1167_v1 }
 0x531   : > { %v2256_v20 = vpop.f32.mrf.mxu0  ;;  %v2285_v6 = vpop.f32.mrf.mxu1 }
 0x532   : > { %v2286_v58 = vadd.f32 %v2285_v6, %v2256_v20  ;;  %v1515_v20 = vadd.f32 %v7257_v4, %v1346_v22 }
 0x539   : > { %v2258_v18 = vpop.f32.mrf.mxu0  ;;  %v2287_v15 = vpop.f32.mrf.mxu1 }
 0x53a   : > { %v2288_v2 = vadd.f32 %v2287_v15, %v2258_v18  ;;  %v7452_v18 = vld [vmem:[%s8266_s5] ss:$0 sm:$0xff] }
 0x53c   : > { %v2305_v14 = vpack.c.bf16 %v2288_v2, %v2286_v58  ;;  %v1684_v58 = vadd.f32 %v7241_v38, %v1515_v20 }
 0x53e   : > { %5446 = vmatmul.msk.bf16.vlgmr.msra.gmra.mxu2 %vm1095_vm3, %v2305_v14  ;;  %v1853_v61 = vadd.f32 %v7366_v25, %v1684_v58  ;;  %v1172_v25 = vadd.f32 %v7062_v34, %v7053_v53 }
 0x540   : > { %v2022_v13 = vadd.f32 %v7418_v17, %v1853_v61  ;;  %v1348_v17 = vadd.f32 %v7209_v51, %v1172_v25 }
 0x541   : > { %v2261_v57 = vpop.f32.mrf.mxu0  ;;  %v2290_v19 = vpop.f32.mrf.mxu1 }
 0x542   : > { %v2291_v55 = vadd.f32 %v2290_v19, %v2261_v57 }
 0x549   : > { %v2263_v5 = vpop.f32.mrf.mxu0  ;;  %v2292_v28 = vpop.f32.mrf.mxu1 }
 0x54a   : > { %v2293_v39 = vadd.f32 %v2292_v28, %v2263_v5 }
 0x54c   : > { %v2306_v59 = vpack.c.bf16 %v2293_v39, %v2291_v55  ;;  %v1517_v55 = vadd.f32 %v7269_v60, %v1348_v17 }
 0x54e   : > { %5447 = vmatmul.msk.bf16.gmra.mxu2 %vm1095_vm3, %v2306_v59 }
 0x551   : > { %v2266_v40 = vpop.f32.mrf.mxu0  ;;  %v2295_v63 = vpop.f32.mrf.mxu1 }
 0x552   : > { %v2296_v37 = vadd.f32 %v2295_v63, %v2266_v40 }
 0x559   : > { %v2268_v49 = vpop.f32.mrf.mxu0  ;;  %v2297_v29 = vpop.f32.mrf.mxu1 }
 0x55a   : > { %v2298_v32 = vadd.f32 %v2297_v29, %v2268_v49  ;;  %v1686_v49 = vadd.f32 %v7259_v12, %v1517_v55  ;;  %v1177_v12 = vadd.f32 %v7092_v56, %v7100_v62 }
 0x55c   : > { %v2307_v43 = vpack.c.bf16 %v2298_v32, %v2296_v37  ;;  %v1855_v51 = vadd.f32 %v7381_v16, %v1686_v49  ;;  %v1350_v16 = vadd.f32 %v7224_v11, %v1177_v12  ;;  %v6222_v12 = vld [vmem:[%s8270_s9 + $0x18] sm:$0xff] }
 0x55e   : > { %5448 = vmatmul.msk.bf16.gmra.mxu2 %vm1095_vm3, %v2307_v43  ;;  %v2024_v60 = vadd.f32 %v7423_v45, %v1855_v51  ;;  %v6196_v51 = vld [vmem:[%s8268_s7 + $0x10] sm:$0xff] }
 0x561   : > { %v2271_v36 = vpop.f32.mrf.mxu0  ;;  %v2300_v33 = vpop.f32.mrf.mxu1 }
 0x562   : > { %v2301_v52 = vadd.f32 %v2300_v33, %v2271_v36 }
 0x569   : > { %v2273_v44 = vpop.f32.mrf.mxu0  ;;  %v2302_v50 = vpop.f32.mrf.mxu1 }
 0x56a   : > { %v2303_v8 = vadd.f32 %v2302_v50, %v2273_v44 }
 0x56c   : > { %v2308_v10 = vpack.c.bf16 %v2303_v8, %v2301_v52  ;;  %v1519_v8 = vadd.f32 %v7281_v21, %v1350_v16  ;;  %v6231_v16 = vld [vmem:[%s8270_s9 + $0x40] sm:$0xff] }
 0x56e   : > { %5449 = vmatmul.msk.bf16.gmra.mxu2 %vm1095_vm3, %v2308_v10  ;;  %v1688_v22 = vadd.f32 %v7273_v47, %v1519_v8  ;;  %v1182_v47 = vadd.f32 %v7173_v54, %v7107_v35  ;;  %v6208_v8 = vld [vmem:[%s8268_s7 + $0x50] sm:$0xff] }
 0x570   : > { %v1857_v11 = vadd.f32 %v7396_v7, %v1688_v22  ;;  %v1352_v7 = vadd.f32 %v7239_v27, %v1182_v47 }
 0x581   : > { %v2170_v42 = vpop.f32.mrf.mxu3 }
 0x582   : > { %v2190_v6 = vadd.f32 %v2170_v42, %v7416_v9 }
 0x589   : > { %v2172_v24 = vpop.f32.mrf.mxu3 }
 0x58a   : > { %v2191_v9 = vadd.f32 %v2172_v24, %v2022_v13 }
 0x591   : > { %v2175_v14 = vpop.f32.mrf.mxu3 }
 0x592   : > { %v2192_v59 = vadd.f32 %v2175_v14, %v7421_v48 }
 0x599   : > { %v2177_v28 = vpop.f32.mrf.mxu3 }
 0x59a   : > { %v2193_v36 = vadd.f32 %v2177_v28, %v2024_v60  ;;  %v6207_v60 = vld [vmem:[%s8267_s6 + $0x28] sm:$0xff] }
 0x5a1   : > { %v2180_v48 = vpop.f32.mrf.mxu3 }
 0x5a2   : > { %v2194_v45 = vadd.f32 %v2180_v48, %v7429_v0  ;;  %v6219_v48 = vld [vmem:[%s8270_s9] sm:$0xff] }
 0x5a9   : > { %v2182_v24 = vpop.f32.mrf.mxu3 }
 0x5c1   : > { %v2339_v15 = vpop.f32.mrf.mxu2 }
 0x5c2   : > { %v2359_v2 = vadd.f32 %v2339_v15, %v2190_v6  ;;  %v2026_v15 = vadd.f32 %v7431_v23, %v1857_v11 }
 0x5c4   : > { %v2371_v3 = vadd.f32 %v7452_v18, %v2359_v2  ;;  %v2195_v58 = vadd.f32 %v2182_v24, %v2026_v15 }
 0x5c6   : > { %v2379_v4 = vmax.f32 %v2371_v3, 0.0  ;;  %v2185_v3 = vpop.f32.mrf.mxu3 }
 0x5c7   : > { %v2196_v23 = vadd.f32 %v2185_v3, %v7434_v30 }
 0x5c8   : > { %v2387_v38 = vpack.c.bf16 %v2379_v4, %v2379_v4  ;;  %v1521_v4 = vadd.f32 %v7285_v31, %v1352_v7  ;;  %v6198_v7 = vld [vmem:[%s8267_s6 + $0x10] sm:$0xff] }
 0x5c9   : > { %v2341_v57 = vpop.f32.mrf.mxu2 }
 0x5ca   : > { %2396 = vst.msk [vmem:[%s7461_s24] sm:$0xf] %vm2395_vm4, %v2387_v38  ;;  %v2360_v19 = vadd.f32 %v2341_v57, %v2191_v9  ;;  %v2419_v29 = vunpack.c.l.b16 %v2387_v38  ;;  %v1690_v25 = vadd.f32 %v7302_v46, %v1521_v4  ;;  %v6194_v4 = vld [vmem:[%s8268_s7 + $0x8] sm:$0xff] }
 0x5cb   : > { %2540 = vmatpush.bf16.msrb.mxu0 %v6194_v4 }
 0x5cc   : > { %v2372_v5 = vadd.f32 %v7452_v18, %v2360_v19  ;;  %v1859_v27 = vadd.f32 %v7414_v26, %v1690_v25  ;;  %v6226_v25 = vld [vmem:[%s8270_s9 + $0x28] sm:$0xff] }
 0x5ce   : > { %v2380_v39 = vmax.f32 %v2372_v5, 0.0  ;;  %v2187_v5 = vpop.f32.mrf.mxu3  ;;  %v2028_v30 = vadd.f32 %v7436_v41, %v1859_v27  ;;  %v6192_v41 = vld [vmem:[%s8267_s6] sm:$0xff]  ;;  %v6227_v27 = vld [vmem:[%s8270_s9 + $0x30] sm:$0xff] }
 0x5d0   : > { %v2388_v40 = vpack.c.bf16 %v2380_v39, %v2380_v39  ;;  %v2197_v55 = vadd.f32 %v2187_v5, %v2028_v30  ;;  %v6228_v5 = vld [vmem:[%s8270_s9 + $0x38] sm:$0xff] }
 0x5d1   : > { %v2344_v63 = vpop.f32.mrf.mxu2 }
 0x5d2   : > { %2397 = vst.msk [vmem:[%s7461_s24 + $0x4] sm:$0xf] %vm2395_vm4, %v2388_v40  ;;  %v2420_v53 = vunpack.c.l.b16 %v2388_v40  ;;  %v2361_v34 = vadd.f32 %v2344_v63, %v2192_v59 }
 0x5d4   : > { %v7475_v37 = vpack.c.b16 %v2420_v53, %v2419_v29  ;;  %v2373_v32 = vadd.f32 %v7452_v18, %v2361_v34  ;;  %v6197_v34 = vld [vmem:[%s8268_s7 + $0x18] sm:$0xff] }
 0x5d6   : > { %v2381_v43 = vmax.f32 %v2373_v32, 0.0  ;;  %v6195_v32 = vld [vmem:[%s8267_s6 + $0x8] sm:$0xff] }
 0x5d8   : > { %v2389_v33 = vpack.c.bf16 %v2381_v43, %v2381_v43  ;;  %v6213_v43 = vld [vmem:[%s8267_s6 + $0x38] sm:$0xff] }
 0x5d9   : > { %v2346_v44 = vpop.f32.mrf.mxu2 }
 0x5da   : > { %2398 = vst.msk [vmem:[%s7461_s24 + $0x8] sm:$0xf] %vm2395_vm4, %v2389_v33  ;;  %v2362_v50 = vadd.f32 %v2346_v44, %v2193_v36  ;;  %v2421_v20 = vunpack.c.l.b16 %v2389_v33  ;;  %v6220_v36 = vld [vmem:[%s8270_s9 + $0x8] sm:$0xff]  ;;  %v6221_v33 = vld [vmem:[%s8270_s9 + $0x10] sm:$0xff]  ;;  %v6203_v44 = vld [vmem:[%s8268_s7 + $0x38] sm:$0xff] }
 0x5db   : > { %2662 = vmatpush.bf16.msrb.mxu2 %v6203_v44  ;;  %v6212_v44 = vld [vmem:[%s8268_s7 + $0x68] sm:$0xff] }
 0x5dc   : > { %v2374_v52 = vadd.f32 %v7452_v18, %v2362_v50  ;;  %v6202_v50 = vld [vmem:[%s8268_s7 + $0x30] sm:$0xff] }
 0x5de   : > { %v2382_v10 = vmax.f32 %v2374_v52, 0.0  ;;  %v6209_v52 = vld [vmem:[%s8268_s7 + $0x58] sm:$0xff] }
 0x5df   : > { %2663 = vmatpush.bf16.msrb.mxu2 %v6202_v50 }
 0x5e0   : > { %v2390_v42 = vpack.c.bf16 %v2382_v10, %v2382_v10  ;;  %v6232_v10 = vld [vmem:[%s8270_s9 + $0x48] sm:$0xff] }
 0x5e1   : > { %v2349_v1 = vpop.f32.mrf.mxu2 }
 0x5e2   : > { %2399 = vst.msk [vmem:[%s7461_s24 + $0xc] sm:$0xf] %vm2395_vm4, %v2390_v42  ;;  %v2422_v56 = vunpack.c.l.b16 %v2390_v42  ;;  %v2363_v62 = vadd.f32 %v2349_v1, %v2194_v45  ;;  %v6215_v1 = vld [vmem:[%s8268_s7 + $0x78] sm:$0xff] }
 0x5e3   : > { %2786 = vmatpush.bf16.msra.mxu2 %v6209_v52  ;;  %v6245_v52 = vld [vmem:[%s8270_s9 + $0x90] sm:$0xff] }
 0x5e4   : > { %v7491_v6 = vpack.c.b16 %v2422_v56, %v2421_v20  ;;  %v2375_v21 = vadd.f32 %v7452_v18, %v2363_v62  ;;  %v6214_v20 = vld [vmem:[%s8268_s7 + $0x70] sm:$0xff] }
 0x5e5   : > { %v6233_v62 = vld [vmem:[%s8270_s9 + $0x50] sm:$0xff] }
 0x5e6   : > { %v2383_v0 = vmax.f32 %v2375_v21, 0.0 }
 0x5e7   : > { %2787 = vmatpush.bf16.msra.mxu2 %v6208_v8  ;;  %v6211_v8 = vld [vmem:[%s8268_s7 + $0x60] sm:$0xff] }
 0x5e8   : > { %v2391_v2 = vpack.c.bf16 %v2383_v0, %v2383_v0 }
 0x5e9   : > { %v2351_v14 = vpop.f32.mrf.mxu2 }
 0x5ea   : > { %2400 = vst.msk [vmem:[%s7461_s24 + $0x10] sm:$0xf] %vm2395_vm4, %v2391_v2  ;;  %v2364_v61 = vadd.f32 %v2351_v14, %v2195_v58  ;;  %v2423_v19 = vunpack.c.l.b16 %v2391_v2  ;;  %v6234_v14 = vld [vmem:[%s8270_s9 + $0x58] sm:$0xff] }
 0x5ec   : > { %v2376_v13 = vadd.f32 %v7452_v18, %v2364_v61 }
 0x5ee   : > { %v2384_v9 = vmax.f32 %v2376_v13, 0.0  ;;  %v6243_v13 = vld [vmem:[%s8270_s9 + $0x80] sm:$0xff] }
 0x5f0   : > { %v2392_v38 = vpack.c.bf16 %v2384_v9, %v2384_v9  ;;  %v6193_v9 = vld [vmem:[%s8268_s7] sm:$0xff] }
 0x5f1   : > { %v2354_v57 = vpop.f32.mrf.mxu2  ;;  %2541 = vmatpush.bf16.msrb.mxu0 %v6193_v9 }
 0x5f2   : > { %2401 = vst.msk [vmem:[%s7461_s24 + $0x14] sm:$0xf] %vm2395_vm4, %v2392_v38  ;;  %v2424_v35 = vunpack.c.l.b16 %v2392_v38  ;;  %v2365_v54 = vadd.f32 %v2354_v57, %v2196_v23  ;;  %v6225_v38 = vld [vmem:[%s8270_s9 + $0x20] sm:$0xff] }
 0x5f3   : > { %v6204_v57 = vld [vmem:[%s8267_s6 + $0x20] sm:$0xff] }
 0x5f4   : > { %v7507_v17 = vpack.c.b16 %v2424_v35, %v2423_v19  ;;  %v2377_v31 = vadd.f32 %v7452_v18, %v2365_v54  ;;  %v6210_v19 = vld [vmem:[%s8267_s6 + $0x30] sm:$0xff]  ;;  %v7691_v35 = vld [vmem:[%s8272_s11 + $0x18] sm:$0xff] }
 0x5f5   : > { %v7698_v54 = vld [vmem:[%s8272_s11 + $0x10] sm:$0xff] }
 0x5f6   : > { %v2385_v28 = vmax.f32 %v2377_v31, 0.0  ;;  %v6216_v31 = vld [vmem:[%s8267_s6 + $0x40] sm:$0xff] }
 0x5f8   : > { %v2393_v39 = vpack.c.bf16 %v2385_v28, %v2385_v28 }
 0x5f9   : > { %v2356_v59 = vpop.f32.mrf.mxu2 }
 0x5fa   : > { %2402 = vst.msk [vmem:[%s7461_s24 + $0x18] sm:$0xf] %vm2395_vm4, %v2393_v39  ;;  %v2366_v46 = vadd.f32 %v2356_v59, %v2197_v55  ;;  %v2425_v29 = vunpack.c.l.b16 %v2393_v39  ;;  %v6200_v39 = vld [vmem:[%s8268_s7 + $0x28] sm:$0xff] }
 0x5fb   : > { %2600 = vmatpush.bf16.msra.mxu0 %v6200_v39 }
 0x5fc   : > { %v2378_v40 = vadd.f32 %v7452_v18, %v2366_v46  ;;  %v6201_v18 = vld [vmem:[%s8267_s6 + $0x18] sm:$0xff]  ;;  %v6199_v46 = vld [vmem:[%s8268_s7 + $0x20] sm:$0xff] }
 0x5fe   : > { %v2386_v63 = vmax.f32 %v2378_v40, 0.0 }
 0x5ff   : > { %2601 = vmatpush.bf16.msra.mxu0 %v6199_v46 }
 0x600   : > { %v2394_v49 = vpack.c.bf16 %v2386_v63, %v2386_v63 }
 0x602   : > { %2403 = vst.msk [vmem:[%s7461_s24 + $0x1c] sm:$0xf] %vm2395_vm4, %v2394_v49  ;;  %v2426_v26 = vunpack.c.l.b16 %v2394_v49 }
 0x604   : > { %v7516_v53 = vpack.c.b16 %v2426_v26, %v2425_v29  ;;  %v6206_v26 = vld [vmem:[%s8268_s7 + $0x48] sm:$0xff] }
 0x606   : > { %2443 = vmatpush.bf16.msrb.mxu3 %v7516_v53  ;;  %2625 = vmatpush.bf16.msrb.mxu1 %v7516_v53 }
 0x60a   : > { %2444 = vmatpush.bf16.msrb.mxu3 %v7507_v17  ;;  %2626 = vmatpush.bf16.msrb.mxu1 %v7507_v17 }
 0x60e   : > { %2445 = vmatpush.bf16.msrb.mxu3 %v7491_v6  ;;  %2627 = vmatpush.bf16.msrb.mxu1 %v7491_v6 }
 0x612   : > { %2446 = vmatpush.bf16.msrb.mxu3 %v7475_v37  ;;  %2628 = vmatpush.bf16.msrb.mxu1 %v7475_v37 }
 0x615   : > { %5454 = vmatmul.msk.bf16.vlgmr.msrb.gmra.mxu3 %vm2435_vm5, %v6192_v41  ;;  %5510 = vmatmul.msk.bf16.vlgmr.msrb.gmra.mxu1 %vm2435_vm5, %v6201_v18 }
 0x616   : > { %2473 = vmatpush.bf16.msra.mxu3 %v7516_v53  ;;  %2749 = vmatpush.bf16.msra.mxu1 %v7516_v53 }
 0x61a   : > { %2474 = vmatpush.bf16.msra.mxu3 %v7507_v17  ;;  %2750 = vmatpush.bf16.msra.mxu1 %v7507_v17 }
 0x61e   : > { %2475 = vmatpush.bf16.msra.mxu3 %v7491_v6  ;;  %2751 = vmatpush.bf16.msra.mxu1 %v7491_v6 }
 0x622   : > { %2476 = vmatpush.bf16.msra.mxu3 %v7475_v37  ;;  %2752 = vmatpush.bf16.msra.mxu1 %v7475_v37 }
 0x625   : > { %5461 = vmatmul.msk.bf16.vlgmr.msra.gmra.mxu3 %vm2435_vm5, %v6195_v32  ;;  %5550 = vmatmul.msk.bf16.vlgmr.msra.gmra.mxu1 %vm2435_vm5, %v6207_v60  ;;  %v6244_v60 = vld [vmem:[%s8270_s9 + $0x88] sm:$0xff] }
 0x626   : > { %2511 = vmatpush.bf16.msrb.mxu3 %v6197_v34  ;;  %2873 = vmatpush.bf16.msrb.mxu1 %v7516_v53  ;;  %v6205_v34 = vld [vmem:[%s8268_s7 + $0x40] sm:$0xff] }
 0x62a   : > { %2512 = vmatpush.bf16.msrb.mxu3 %v6196_v51  ;;  %2874 = vmatpush.bf16.msrb.mxu1 %v7507_v17 }
 0x62e   : > { %2563 = vmatpush.bf16.msra.mxu3 %v7516_v53  ;;  %2875 = vmatpush.bf16.msrb.mxu1 %v7491_v6 }
 0x632   : > { %2564 = vmatpush.bf16.msra.mxu3 %v7507_v17  ;;  %2876 = vmatpush.bf16.msrb.mxu1 %v7475_v37 }
 0x635   : > { %5590 = vmatmul.msk.bf16.vlgmr.msrb.gmra.mxu1 %vm2435_vm5, %v6213_v43 }
 0x636   : > { %3035 = vmatpush.bf16.msra.mxu1 %v7516_v53  ;;  %2565 = vmatpush.bf16.msra.mxu3 %v7491_v6 }
 0x63a   : > { %3036 = vmatpush.bf16.msra.mxu1 %v7507_v17  ;;  %2566 = vmatpush.bf16.msra.mxu3 %v7475_v37 }
 0x63e   : > { %3037 = vmatpush.bf16.msra.mxu1 %v7491_v6 }
 0x642   : > { %3038 = vmatpush.bf16.msra.mxu1 %v7475_v37 }
 0x645   : > { %5640 = vmatmul.msk.bf16.vlgmr.msra.gmra.mxu1 %vm2435_vm5, %v6219_v48 }
 0x646   : > { %3298 = vmatpush.bf16.msrb.mxu1 %v7516_v53 }
 0x64a   : > { %3299 = vmatpush.bf16.msrb.mxu1 %v7507_v17 }
 0x64e   : > { %3300 = vmatpush.bf16.msrb.mxu1 %v7491_v6 }
 0x652   : > { %3301 = vmatpush.bf16.msrb.mxu1 %v7475_v37 }
 0x655   : > { %5641 = vmatmul.msk.bf16.gmra.mxu1 %vm2435_vm5, %v6220_v36 }
 0x656   : > { %3578 = vmatpush.bf16.msra.mxu1 %v7516_v53 }
 0x65a   : > { %3579 = vmatpush.bf16.msra.mxu1 %v7507_v17 }
 0x65e   : > { %3580 = vmatpush.bf16.msra.mxu1 %v7491_v6 }
 0x662   : > { %3581 = vmatpush.bf16.msra.mxu1 %v7475_v37 }
 0x665   : > { %5642 = vmatmul.msk.bf16.gmra.mxu1 %vm2435_vm5, %v6221_v33 }
 0x675   : > { %5643 = vmatmul.msk.bf16.gmra.mxu1 %vm2435_vm5, %v6222_v12 }
 0x685   : > { %5724 = vmatmul.msk.bf16.vlgmr.msrb.gmra.mxu1 %vm2435_vm5, %v6231_v16 }
 0x686   : > { %3858 = vmatpush.bf16.msrb.mxu1 %v7516_v53 }
 0x68a   : > { %3859 = vmatpush.bf16.msrb.mxu1 %v7507_v17 }
 0x68e   : > { %3860 = vmatpush.bf16.msrb.mxu1 %v7491_v6 }
 0x692   : > { %3861 = vmatpush.bf16.msrb.mxu1 %v7475_v37  ;;  %v2630_v45 = vpop.f32.mrf.mxu1 }
 0x695   : > { %5725 = vmatmul.msk.bf16.gmra.mxu1 %vm2435_vm5, %v6232_v10 }
 0x698   : > { %v2448_v42 = vpop.f32.mrf.mxu3 }
 0x69a   : > { %v2632_v24 = vpop.f32.mrf.mxu1 }
 0x69b   : > { %v2635_v22 = vpack.c.bf16 %v2632_v24, %v2630_v45 }
 0x69d   : > { %5523 = vmatmul.msk.bf16.vlgmr.msrb.gmra.mxu2 %vm2501_vm6, %v2635_v22  ;;  %v6218_v22 = vld [vmem:[%s8268_s7 + $0x88] sm:$0xff] }
 0x69e   : > { %2910 = vmatpush.bf16.msrb.mxu2 %v6215_v1 }
 0x6a0   : > { %v2450_v56 = vpop.f32.mrf.mxu3 }
 0x6a1   : > { %v2453_v23 = vpack.c.bf16 %v2450_v56, %v2448_v42 }
 0x6a2   : > { %v2754_v11 = vpop.f32.mrf.mxu1  ;;  %2911 = vmatpush.bf16.msrb.mxu2 %v6214_v20 }
 0x6a3   : > { %5483 = vmatmul.msk.bf16.vlgmr.msrb.gmra.mxu0 %vm2501_vm6, %v2453_v23  ;;  %v6255_v23 = vld [vmem:[%s8270_s9 + $0xc0] sm:$0xff] }
 0x6a4   : > { %2724 = vmatpush.bf16.msrb.mxu0 %v6206_v26 }
 0x6a5   : > { %5726 = vmatmul.msk.bf16.gmra.mxu1 %vm2435_vm5, %v6233_v62 }
 0x6a8   : > { %v2478_v21 = vpop.f32.mrf.mxu3  ;;  %2725 = vmatpush.bf16.msrb.mxu0 %v6205_v34  ;;  %v6256_v34 = vld [vmem:[%s8270_s9 + $0xc8] sm:$0xff] }
 0x6aa   : > { %v2756_v15 = vpop.f32.mrf.mxu1 }
 0x6ab   : > { %v2759_v0 = vpack.c.bf16 %v2756_v15, %v2754_v11  ;;  %v6246_v11 = vld [vmem:[%s8270_s9 + $0x98] sm:$0xff]  ;;  %v6217_v15 = vld [vmem:[%s8268_s7 + $0x80] sm:$0xff] }
 0x6ad   : > { %5563 = vmatmul.msk.bf16.vlgmr.msra.gmra.mxu2 %vm2501_vm6, %v2759_v0 }
 0x6ae   : > { %3113 = vmatpush.bf16.msra.mxu2 %v7516_v53 }
 0x6b0   : > { %v2480_v58 = vpop.f32.mrf.mxu3 }
 0x6b1   : > { %v2483_v2 = vpack.c.bf16 %v2480_v58, %v2478_v21  ;;  %v7789_v21 = vld [vmem:[%s8272_s11 + $0x28] sm:$0xff] }
 0x6b2   : > { %3114 = vmatpush.bf16.msra.mxu2 %v7507_v17  ;;  %v2878_v47 = vpop.f32.mrf.mxu1 }
 0x6b3   : > { %5474 = vmatmul.msk.bf16.vlgmr.msrb.gmra.mxu3 %vm2501_vm6, %v2483_v2 }
 0x6b4   : > { %2687 = vmatpush.bf16.msrb.mxu3 %v7516_v53 }
 0x6b5   : > { %5727 = vmatmul.msk.bf16.gmra.mxu1 %vm2435_vm5, %v6234_v14 }
 0x6b6   : > { %3115 = vmatpush.bf16.msra.mxu2 %v7491_v6 }
 0x6b8   : > { %2688 = vmatpush.bf16.msrb.mxu3 %v7507_v17 }
 0x6ba   : > { %3116 = vmatpush.bf16.msra.mxu2 %v7475_v37  ;;  %v2880_v61 = vpop.f32.mrf.mxu1 }
 0x6bb   : > { %v2883_v3 = vpack.c.bf16 %v2880_v61, %v2878_v47  ;;  %v7801_v47 = vld [vmem:[%s8272_s11 + $0x20] sm:$0xff] }
 0x6bc   : > { %2689 = vmatpush.bf16.msrb.mxu3 %v7491_v6 }
 0x6bd   : > { %5603 = vmatmul.msk.bf16.vlgmr.msrb.gmra.mxu2 %vm2501_vm6, %v2883_v3 }
 0x6be   : > { %3362 = vmatpush.bf16.msrb.mxu2 %v7789_v21 }
 0x6c0   : > { %2690 = vmatpush.bf16.msrb.mxu3 %v7475_v37 }
 0x6c2   : > { %v7719_v28 = vpop.f32.mrf.mxu1  ;;  %3363 = vmatpush.bf16.msrb.mxu2 %v7801_v47 }
 0x6c3   : > { %5490 = vmatmul.msk.bf16.vlgmr.msra.gmra.mxu3 %vm2435_vm5, %v6198_v7  ;;  %v7808_v7 = vld [vmem:[%s8272_s11 + $0x8] sm:$0xff] }
 0x6c4   : > { %2811 = vmatpush.bf16.msra.mxu3 %v7516_v53 }
 0x6c5   : > { %5812 = vmatmul.msk.bf16.vlgmr.msra.gmra.mxu1 %vm2435_vm5, %v6243_v13 }
 0x6c6   : > { %4138 = vmatpush.bf16.msra.mxu1 %v7516_v53 }
 0x6c8   : > { %2812 = vmatpush.bf16.msra.mxu3 %v7507_v17 }
 0x6ca   : > { %4139 = vmatpush.bf16.msra.mxu1 %v7507_v17  ;;  %v7726_v59 = vpop.f32.mrf.mxu1 }
 0x6cc   : > { %2813 = vmatpush.bf16.msra.mxu3 %v7491_v6 }
 0x6cd   : > { %5668 = vmatmul.msk.bf16.vlgmr.msra.gmra.mxu2 %vm2435_vm5, %v6225_v38  ;;  %v7819_v38 = vld [vmem:[%s8272_s11] sm:$0xff] }
 0x6ce   : > { %4140 = vmatpush.bf16.msra.mxu1 %v7491_v6 }
 0x6d0   : > { %2814 = vmatpush.bf16.msra.mxu3 %v7475_v37 }
 0x6d2   : > { %4141 = vmatpush.bf16.msra.mxu1 %v7475_v37  ;;  %v7733_v63 = vpop.f32.mrf.mxu1 }
 0x6d3   : > { %5530 = vmatmul.msk.bf16.vlgmr.msrb.gmra.mxu3 %vm2435_vm5, %v6204_v57 }
 0x6d4   : > { %2935 = vmatpush.bf16.msrb.mxu3 %v7516_v53 }
 0x6d5   : > { %5813 = vmatmul.msk.bf16.gmra.mxu1 %vm2435_vm5, %v6244_v60 }
 0x6d8   : > { %2936 = vmatpush.bf16.msrb.mxu3 %v7507_v17 }
 0x6da   : > { %v7742_v41 = vpop.f32.mrf.mxu1 }
 0x6dc   : > { %2937 = vmatpush.bf16.msrb.mxu3 %v7491_v6 }
 0x6dd   : > { %5669 = vmatmul.msk.bf16.gmra.mxu2 %vm2435_vm5, %v6226_v25 }
 0x6e0   : > { %2938 = vmatpush.bf16.msrb.mxu3 %v7475_v37 }
 0x6e2   : > { %v7751_v32 = vpop.f32.mrf.mxu1 }
 0x6e3   : > { %5570 = vmatmul.msk.bf16.vlgmr.msra.gmra.mxu3 %vm2435_vm5, %v6210_v19 }
 0x6e4   : > { %3177 = vmatpush.bf16.msra.mxu3 %v7691_v35 }
 0x6e5   : > { %5814 = vmatmul.msk.bf16.gmra.mxu1 %vm2435_vm5, %v6245_v52  ;;  %v6257_v52 = vld [vmem:[%s8270_s9 + $0xd0] sm:$0xff] }
 0x6e8   : > { %3178 = vmatpush.bf16.msra.mxu3 %v7698_v54 }
 0x6ea   : > { %v7759_v36 = vpop.f32.mrf.mxu1 }
 0x6ed   : > { %5670 = vmatmul.msk.bf16.gmra.mxu2 %vm2435_vm5, %v6227_v27 }
 0x6f2   : > { %v7765_v16 = vpop.f32.mrf.mxu1 }
 0x6f3   : > { %5610 = vmatmul.msk.bf16.vlgmr.msrb.gmra.mxu3 %vm2435_vm5, %v6216_v31 }
 0x6f4   : > { %3438 = vmatpush.bf16.msrb.mxu3 %v7516_v53 }
 0x6f5   : > { %5815 = vmatmul.msk.bf16.gmra.mxu1 %vm2435_vm5, %v6246_v11 }
 0x6f8   : > { %3439 = vmatpush.bf16.msrb.mxu3 %v7507_v17 }
 0x6fa   : > { %v7774_v24 = vpop.f32.mrf.mxu1 }
 0x6fc   : > { %3440 = vmatpush.bf16.msrb.mxu3 %v7491_v6 }
 0x6fd   : > { %5671 = vmatmul.msk.bf16.gmra.mxu2 %vm2435_vm5, %v6228_v5 }
 0x700   : > { %3441 = vmatpush.bf16.msrb.mxu3 %v7475_v37 }
 0x702   : > { %v3303_v62 = vpop.f32.mrf.mxu1 }
 0x705   : > { %5900 = vmatmul.msk.bf16.vlgmr.msrb.gmra.mxu1 %vm2435_vm5, %v6255_v23 }
 0x70a   : > { %v3305_v14 = vpop.f32.mrf.mxu1 }
 0x70b   : > { %v3323_v61 = vpack.c.bf16 %v3305_v14, %v3303_v62  ;;  %v6270_v62 = vld [vmem:[%s8270_s9 + $0x118] sm:$0xff] }
 0x70d   : > { %5740 = vmatmul.msk.bf16.vlgmr.msrb.gmra.mxu2 %vm2501_vm6, %v3323_v61 }
 0x712   : > { %v3308_v9 = vpop.f32.mrf.mxu1 }
 0x715   : > { %5901 = vmatmul.msk.bf16.gmra.mxu1 %vm2435_vm5, %v6256_v34 }
 0x71a   : > { %v3310_v27 = vpop.f32.mrf.mxu1 }
 0x71b   : > { %v3324_v31 = vpack.c.bf16 %v3310_v27, %v3308_v9 }
 0x71d   : > { %5741 = vmatmul.msk.bf16.gmra.mxu2 %vm2501_vm6, %v3324_v31 }
 0x720   : > { %v7717_v30 = vpop.f32.mrf.mxu2 }
 0x722   : > { %v3313_v26 = vpop.f32.mrf.mxu1 }
 0x725   : > { %5902 = vmatmul.msk.bf16.gmra.mxu1 %vm2435_vm5, %v6257_v52 }
 0x728   : > { %v7721_v55 = vpop.f32.mrf.mxu2 }
 0x730   : > { %v7731_v40 = vpop.f32.mrf.mxu2 }
 0x736   : > { %v7735_v49 = vpop.f32.mrf.mxu3 }
 0x738   : > { %v7737_v29 = vpop.f32.mrf.mxu2 }
 0x73e   : > { %v7744_v18 = vpop.f32.mrf.mxu3 }
 0x740   : > { %v7749_v51 = vpop.f32.mrf.mxu2 }
 0x746   : > { %v2568_v43 = vpop.f32.mrf.mxu3 }
 0x748   : > { %v7757_v48 = vpop.f32.mrf.mxu2 }
 0x74e   : > { %v2570_v33 = vpop.f32.mrf.mxu3 }
 0x74f   : > { %v2573_v12 = vpack.c.bf16 %v2570_v33, %v2568_v43  ;;  %v3315_v33 = vpop.f32.mrf.mxu1 }
 0x750   : > { %v3118_v50 = vpop.f32.mrf.mxu2 }
 0x751   : > { %5503 = vmatmul.msk.bf16.vlgmr.msra.gmra.mxu0 %vm2501_vm6, %v2573_v12  ;;  %v3060_v12 = vpack.c.bf16 %v7726_v59, %v7719_v28  ;;  %v3061_v28 = vpack.c.bf16 %v7742_v41, %v7733_v63  ;;  %v6258_v59 = vld [vmem:[%s8270_s9 + $0xd8] sm:$0xff]  ;;  %v6267_v63 = vld [vmem:[%s8270_s9 + $0x100] sm:$0xff]  ;;  %v3063_v41 = vpack.c.bf16 %v7774_v24, %v7765_v16  ;;  %v6269_v16 = vld [vmem:[%s8270_s9 + $0x110] sm:$0xff] }
 0x752   : > { %2848 = vmatpush.bf16.msra.mxu0 %v6212_v44  ;;  %v3325_v44 = vpack.c.bf16 %v3315_v33, %v3313_v26  ;;  %5903 = vmatmul.msk.bf16.gmra.mxu1 %vm2435_vm5, %v6258_v59 }
 0x754   : > { %5742 = vmatmul.msk.bf16.gmra.mxu2 %vm2501_vm6, %v3325_v44  ;;  %v6341_v44 = vld [vmem:[%s8269_s8] ss:$0 sm:$0xff] }
 0x756   : > { %v2692_v10 = vpop.f32.mrf.mxu3  ;;  %2849 = vmatpush.bf16.msra.mxu0 %v6211_v8  ;;  %v6237_v8 = vld [vmem:[%s8270_s9 + $0x60] sm:$0xff] }
 0x758   : > { %v3120_v45 = vpop.f32.mrf.mxu2 }
 0x759   : > { %v3138_v42 = vpack.c.bf16 %v3120_v45, %v3118_v50  ;;  %v3318_v50 = vpop.f32.mrf.mxu1 }
 0x75b   : > { %5684 = vmatmul.msk.bf16.vlgmr.msra.gmra.mxu3 %vm2501_vm6, %v3138_v42  ;;  %v6240_v42 = vld [vmem:[%s8270_s9 + $0x78] sm:$0xff] }
 0x75c   : > { %3718 = vmatpush.bf16.msra.mxu3 %v7516_v53 }
 0x75e   : > { %v2694_v1 = vpop.f32.mrf.mxu3 }
 0x75f   : > { %v2697_v20 = vpack.c.bf16 %v2694_v1, %v2692_v10 }
 0x760   : > { %3719 = vmatpush.bf16.msra.mxu3 %v7507_v17  ;;  %v3123_v56 = vpop.f32.mrf.mxu2 }
 0x761   : > { %5543 = vmatmul.msk.bf16.vlgmr.msrb.gmra.mxu0 %vm2501_vm6, %v2697_v20  ;;  %v3320_v10 = vpop.f32.mrf.mxu1 }
 0x762   : > { %2972 = vmatpush.bf16.msrb.mxu0 %v6218_v22  ;;  %v3326_v45 = vpack.c.bf16 %v3320_v10, %v3318_v50  ;;  %5988 = vmatmul.msk.bf16.vlgmr.msra.gmra.mxu1 %vm2435_vm5, %v6267_v63  ;;  %v6249_v22 = vld [vmem:[%s8270_s9 + $0xa0] sm:$0xff] }
 0x764   : > { %3720 = vmatpush.bf16.msra.mxu3 %v7491_v6  ;;  %5743 = vmatmul.msk.bf16.gmra.mxu2 %vm2501_vm6, %v3326_v45  ;;  %v6252_v45 = vld [vmem:[%s8270_s9 + $0xb8] sm:$0xff] }
 0x766   : > { %v2816_v0 = vpop.f32.mrf.mxu3  ;;  %2973 = vmatpush.bf16.msrb.mxu0 %v6217_v15 }
 0x768   : > { %3721 = vmatpush.bf16.msra.mxu3 %v7475_v37  ;;  %v3125_v58 = vpop.f32.mrf.mxu2 }
 0x769   : > { %v3139_v2 = vpack.c.bf16 %v3125_v58, %v3123_v56 }
 0x76b   : > { %5685 = vmatmul.msk.bf16.gmra.mxu3 %vm2501_vm6, %v3139_v2 }
 0x76e   : > { %v2818_v3 = vpop.f32.mrf.mxu3 }
 0x76f   : > { %v2821_v13 = vpack.c.bf16 %v2818_v3, %v2816_v0  ;;  %v6250_v0 = vld [vmem:[%s8270_s9 + $0xa8] sm:$0xff] }
 0x770   : > { %v3128_v4 = vpop.f32.mrf.mxu2 }
 0x771   : > { %5583 = vmatmul.msk.bf16.vlgmr.msra.gmra.mxu0 %vm2501_vm6, %v2821_v13 }
 0x772   : > { %3230 = vmatpush.bf16.msra.mxu0 %v7808_v7 }
 0x776   : > { %v2940_v57 = vpop.f32.mrf.mxu3  ;;  %3231 = vmatpush.bf16.msra.mxu0 %v7819_v38 }
 0x778   : > { %v3130_v25 = vpop.f32.mrf.mxu2 }
 0x779   : > { %v3140_v19 = vpack.c.bf16 %v3130_v25, %v3128_v4  ;;  %v6251_v25 = vld [vmem:[%s8270_s9 + $0xb0] sm:$0xff] }
 0x77b   : > { %5686 = vmatmul.msk.bf16.gmra.mxu3 %vm2501_vm6, %v3140_v19  ;;  %v3583_v19 = vpop.f32.mrf.mxu1 }
 0x77e   : > { %v2942_v5 = vpop.f32.mrf.mxu3 }
 0x77f   : > { %v2945_v39 = vpack.c.bf16 %v2942_v5, %v2940_v57 }
 0x780   : > { %v3133_v46 = vpop.f32.mrf.mxu2 }
 0x781   : > { %5623 = vmatmul.msk.bf16.vlgmr.msrb.gmra.mxu0 %vm2501_vm6, %v2945_v39 }
 0x788   : > { %v3135_v60 = vpop.f32.mrf.mxu2 }
 0x789   : > { %v3141_v43 = vpack.c.bf16 %v3135_v60, %v3133_v46  ;;  %v3585_v60 = vpop.f32.mrf.mxu1 }
 0x78b   : > { %5687 = vmatmul.msk.bf16.gmra.mxu3 %vm2501_vm6, %v3141_v43  ;;  %v7931_v43 = vld [vmem:[%s8272_s11 + $0x40] sm:$0xff] }
 0x790   : > { %v3365_v34 = vpop.f32.mrf.mxu2 }
 0x791   : > { %5696 = vmatmul.msk.bf16.vlgmr.msra.gmra.mxu0 %vm2501_vm6, %v3060_v12  ;;  %v3603_v12 = vpack.c.bf16 %v3585_v60, %v3583_v19 }
 0x79b   : > { %5768 = vmatmul.msk.bf16.vlgmr.msrb.gmra.mxu3 %vm2435_vm5, %v6237_v8 }
 0x79c   : > { %3998 = vmatpush.bf16.msrb.mxu3 %v7516_v53  ;;  %v6238_v53 = vld [vmem:[%s8270_s9 + $0x68] sm:$0xff] }
 0x7a0   : > { %3999 = vmatpush.bf16.msrb.mxu3 %v7507_v17  ;;  %v3062_v17 = vpack.c.bf16 %v7759_v36, %v7751_v32  ;;  %v6268_v32 = vld [vmem:[%s8270_s9 + $0x108] sm:$0xff] }
 0x7a1   : > { %5697 = vmatmul.msk.bf16.gmra.mxu0 %vm2501_vm6, %v3061_v28  ;;  %5989 = vmatmul.msk.bf16.gmra.mxu1 %vm2435_vm5, %v6268_v32 }
 0x7a4   : > { %4000 = vmatpush.bf16.msrb.mxu3 %v7491_v6  ;;  %v6239_v6 = vld [vmem:[%s8270_s9 + $0x70] sm:$0xff] }
 0x7a8   : > { %4001 = vmatpush.bf16.msrb.mxu3 %v7475_v37  ;;  %v2543_v37 = vpop.f32.mrf.mxu0 }
 0x7a9   : > { %v2544_v14 = vadd.f32 %v2543_v37, %v7735_v49  ;;  %v7913_v49 = vld [vmem:[%s8272_s11 + $0x38] sm:$0xff] }
 0x7aa   : > { %3502 = vmatpush.bf16.msrb.mxu0 %v7913_v49 }
 0x7ab   : > { %5769 = vmatmul.msk.bf16.gmra.mxu3 %vm2435_vm5, %v6238_v53 }
 0x7b0   : > { %v2545_v36 = vpop.f32.mrf.mxu0 }
 0x7b1   : > { %5698 = vmatmul.msk.bf16.gmra.mxu0 %vm2501_vm6, %v3062_v17  ;;  %5990 = vmatmul.msk.bf16.gmra.mxu1 %vm2435_vm5, %v6269_v16  ;;  %v2546_v3 = vadd.f32 %v2545_v36, %v7744_v18  ;;  %v7951_v17 = vpop.f32.mrf.mxu2 }
 0x7b9   : > { %v3370_v16 = vpop.f32.mrf.mxu2 }
 0x7bb   : > { %5770 = vmatmul.msk.bf16.gmra.mxu3 %vm2435_vm5, %v6239_v6 }
 0x7c1   : > { %5699 = vmatmul.msk.bf16.gmra.mxu0 %vm2501_vm6, %v3063_v41  ;;  %5991 = vmatmul.msk.bf16.gmra.mxu1 %vm2435_vm5, %v6270_v62  ;;  %v6277_v41 = vld [vmem:[%s8271_s10 + $0x20] sm:$0xff] }
 0x7cb   : > { %5771 = vmatmul.msk.bf16.gmra.mxu3 %vm2435_vm5, %v6240_v42 }
 0x7ce   : > { %v2603_v1 = vpop.f32.mrf.mxu0 }
 0x7cf   : > { %v2608_v61 = vadd.f32 %v2603_v1, %v2544_v14 }
 0x7d1   : > { %v2670_v4 = vadd.f32 %v7717_v30, %v2608_v61 }
 0x7d6   : > { %v2605_v24 = vpop.f32.mrf.mxu0 }
 0x7d7   : > { %v2609_v13 = vadd.f32 %v2605_v24, %v2546_v3 }
 0x7d9   : > { %v2671_v27 = vadd.f32 %v7721_v55, %v2609_v13  ;;  %v7923_v55 = vld [vmem:[%s8272_s11 + $0x48] sm:$0xff] }
 0x7da   : > { %3642 = vmatpush.bf16.msra.mxu2 %v7923_v55 }
 0x7db   : > { %5856 = vmatmul.msk.bf16.vlgmr.msra.gmra.mxu3 %vm2435_vm5, %v6249_v22 }
 0x7de   : > { %v2727_v20 = vpop.f32.mrf.mxu0  ;;  %v3180_v56 = vpop.f32.mrf.mxu3  ;;  %3643 = vmatpush.bf16.msra.mxu2 %v7931_v43 }
 0x7df   : > { %v2732_v57 = vadd.f32 %v2727_v20, %v2670_v4  ;;  %v6261_v20 = vld [vmem:[%s8270_s9 + $0xe0] sm:$0xff] }
 0x7e1   : > { %v2794_v31 = vadd.f32 %v7731_v40, %v2732_v57  ;;  %5828 = vmatmul.msk.bf16.vlgmr.msra.gmra.mxu2 %vm2501_vm6, %v3603_v12  ;;  %v8011_v12 = vld [vmem:[%s8272_s11 + $0x68] sm:$0xff] }
 0x7e2   : > { %3922 = vmatpush.bf16.msrb.mxu2 %v8011_v12 }
 0x7e6   : > { %v2729_v11 = vpop.f32.mrf.mxu0  ;;  %v7893_v15 = vpop.f32.mrf.mxu3 }
 0x7e7   : > { %v2733_v18 = vadd.f32 %v2729_v11, %v2671_v27 }
 0x7e9   : > { %v2795_v46 = vadd.f32 %v7737_v29, %v2733_v18 }
 0x7eb   : > { %5857 = vmatmul.msk.bf16.gmra.mxu3 %vm2435_vm5, %v6250_v0 }
 0x7ee   : > { %v2851_v58 = vpop.f32.mrf.mxu0  ;;  %v7899_v2 = vpop.f32.mrf.mxu3 }
 0x7ef   : > { %v2856_v30 = vadd.f32 %v2851_v58, %v2794_v31  ;;  %v7976_v58 = vpop.f32.mrf.mxu2 }
 0x7f1   : > { %v2918_v40 = vadd.f32 %v7749_v51, %v2856_v30  ;;  %v7943_v51 = vld [vmem:[%s8272_s11 + $0x30] sm:$0xff] }
 0x7f2   : > { %3503 = vmatpush.bf16.msrb.mxu0 %v7943_v51 }
 0x7f6   : > { %v2853_v9 = vpop.f32.mrf.mxu0  ;;  %v7904_v23 = vpop.f32.mrf.mxu3 }
 0x7f7   : > { %v2857_v26 = vadd.f32 %v2853_v9, %v2795_v46 }
 0x7f9   : > { %v2919_v29 = vadd.f32 %v7757_v48, %v2857_v26  ;;  %v3588_v48 = vpop.f32.mrf.mxu1 }
 0x7fb   : > { %5858 = vmatmul.msk.bf16.gmra.mxu3 %vm2435_vm5, %v6251_v25 }
 0x7fe   : > { %v2975_v5 = vpop.f32.mrf.mxu0  ;;  %v7918_v39 = vpop.f32.mrf.mxu3 }
 0x7ff   : > { %v2980_v33 = vadd.f32 %v2975_v5, %v2918_v40  ;;  %v6263_v40 = vld [vmem:[%s8270_s9 + $0xf0] sm:$0xff] }
 0x801   : > { %v2986_v8 = vadd.f32 %v6341_v44, %v2980_v33  ;;  %v3590_v42 = vpop.f32.mrf.mxu1 }
 0x802   : > { %v3604_v1 = vpack.c.bf16 %v3590_v42, %v3588_v48 }
 0x803   : > { %v2988_v59 = vmax.f32 %v2986_v8, 0.0  ;;  %v8021_v8 = vld [vmem:[%s8272_s11 + $0x78] sm:$0xff] }
 0x804   : > { %5829 = vmatmul.msk.bf16.gmra.mxu2 %vm2501_vm6, %v3604_v1 }
 0x806   : > { %v2977_v50 = vpop.f32.mrf.mxu0  ;;  %v7938_v52 = vpop.f32.mrf.mxu3 }
 0x807   : > { %v2981_v10 = vadd.f32 %v2977_v50, %v2919_v29  ;;  %v8016_v29 = vld [vmem:[%s8272_s11 + $0x50] sm:$0xff] }
 0x809   : > { %v2987_v28 = vadd.f32 %v6341_v44, %v2981_v10  ;;  %v6259_v10 = vld [vmem:[%s8272_s11 + $0x60] sm:$0xff] }
 0x80a   : > { %3923 = vmatpush.bf16.msrb.mxu2 %v6259_v10 }
 0x80b   : > { %v2989_v53 = vmax.f32 %v2987_v28, 0.0  ;;  %5859 = vmatmul.msk.bf16.gmra.mxu3 %vm2435_vm5, %v6252_v45 }
 0x80d   : > { %v7953_v63 = vpack.c.bf16 %v2989_v53, %v2988_v59 }
 0x80e   : > { %v3195_v6 = vpop.f32.mrf.mxu3  ;;  %v3233_v37 = vpop.f32.mrf.mxu0 }
 0x80f   : > { %v3234_v32 = vadd.f32 %v3233_v37, %v3180_v56  ;;  %4274 = vmatpush.bf16.msra.mxu3 %v7953_v63  ;;  %4450 = vmatpush.bf16.msrb.mxu1 %v7953_v63  ;;  %v3593_v56 = vpop.f32.mrf.mxu1  ;;  %v8038_v37 = vld [vmem:[%s8272_s11 + $0x70] sm:$0xff] }
 0x811   : > { %v7961_v36 = vadd.f32 %v3365_v34, %v3234_v32 }
 0x812   : > { %6044 = vmatmul.msk.bf16.vlgmr.msrb.gmra.mxu1 %vm1095_vm3, %v6277_v41 }
 0x813   : > { %4540 = vmatpush.bf16.msra.mxu1 %v7953_v63 }
 0x816   : > { %v7965_v24 = vpop.f32.mrf.mxu3  ;;  %v7967_v22 = vpop.f32.mrf.mxu0 }
 0x817   : > { %4630 = vmatpush.bf16.msrb.mxu1 %v7953_v63  ;;  %v3595_v61 = vpop.f32.mrf.mxu1 }
 0x818   : > { %v3605_v3 = vpack.c.bf16 %v3595_v61, %v3593_v56  ;;  %v6273_v56 = vld [vmem:[%s8271_s10] sm:$0xff] }
 0x81a   : > { %5830 = vmatmul.msk.bf16.gmra.mxu2 %vm2501_vm6, %v3605_v3 }
 0x81b   : > { %5944 = vmatmul.msk.bf16.vlgmr.msrb.gmra.mxu3 %vm2435_vm5, %v6261_v20 }
 0x81c   : > { %4317 = vmatpush.bf16.msrb.mxu3 %v7691_v35  ;;  %v6262_v35 = vld [vmem:[%s8270_s9 + $0xe8] sm:$0xff] }
 0x81e   : > { %v3238_v62 = vpop.f32.mrf.mxu0  ;;  %v3443_v11 = vpop.f32.mrf.mxu3 }
 0x81f   : > { %v3239_v0 = vadd.f32 %v3238_v62, %v7899_v2  ;;  %v3375_v2 = vpop.f32.mrf.mxu2  ;;  %v3598_v57 = vpop.f32.mrf.mxu1 }
 0x820   : > { %4318 = vmatpush.bf16.msrb.mxu3 %v7698_v54 }
 0x821   : > { %v7979_v14 = vadd.f32 %v3370_v16, %v3239_v0 }
 0x826   : > { %v7981_v13 = vpop.f32.mrf.mxu0  ;;  %v3445_v4 = vpop.f32.mrf.mxu3 }
 0x827   : > { %v3463_v9 = vpack.c.bf16 %v3445_v4, %v3443_v11  ;;  %v3600_v18 = vpop.f32.mrf.mxu1  ;;  %v7992_v31 = vpop.f32.mrf.mxu2 }
 0x828   : > { %v3606_v30 = vpack.c.bf16 %v3600_v18, %v3598_v57 }
 0x829   : > { %5784 = vmatmul.msk.bf16.vlgmr.msrb.gmra.mxu0 %vm2501_vm6, %v3463_v9 }
 0x82a   : > { %5831 = vmatmul.msk.bf16.gmra.mxu2 %vm2501_vm6, %v3606_v30  ;;  %v8058_v30 = vld [vmem:[%s8272_s11 + $0x88] sm:$0xff] }
 0x82b   : > { %5945 = vmatmul.msk.bf16.gmra.mxu3 %vm2435_vm5, %v6262_v35  ;;  %4202 = vmatpush.bf16.msra.mxu2 %v8058_v30 }
 0x82e   : > { %v3243_v54 = vpop.f32.mrf.mxu0  ;;  %v3448_v25 = vpop.f32.mrf.mxu3 }
 0x82f   : > { %v3244_v19 = vadd.f32 %v3243_v54, %v7918_v39  ;;  %v8004_v39 = vld [vmem:[%s8272_s11 + $0x58] sm:$0xff]  ;;  %v3863_v34 = vpop.f32.mrf.mxu1  ;;  %v3380_v60 = vpop.f32.mrf.mxu2 }
 0x830   : > { %3782 = vmatpush.bf16.msra.mxu0 %v8004_v39 }
 0x831   : > { %v7990_v27 = vadd.f32 %v3375_v2, %v3244_v19 }
 0x834   : > { %3783 = vmatpush.bf16.msra.mxu0 %v8016_v29 }
 0x836   : > { %v7994_v5 = vpop.f32.mrf.mxu0  ;;  %v3450_v46 = vpop.f32.mrf.mxu3 }
 0x837   : > { %v3464_v26 = vpack.c.bf16 %v3450_v46, %v3448_v25  ;;  %v3865_v28 = vpop.f32.mrf.mxu1  ;;  %v8064_v46 = vld [vmem:[%s8272_s11 + $0x80] sm:$0xff] }
 0x838   : > { %4062 = vmatpush.bf16.msrb.mxu0 %v8021_v8  ;;  %v3883_v48 = vpack.c.bf16 %v3865_v28, %v3863_v34  ;;  %4203 = vmatpush.bf16.msra.mxu2 %v8064_v46 }
 0x839   : > { %5785 = vmatmul.msk.bf16.gmra.mxu0 %vm2501_vm6, %v3464_v26  ;;  %v8066_v26 = vpop.f32.mrf.mxu2 }
 0x83a   : > { %5916 = vmatmul.msk.bf16.vlgmr.msrb.gmra.mxu2 %vm2501_vm6, %v3883_v48 }
 0x83b   : > { %5946 = vmatmul.msk.bf16.gmra.mxu3 %vm2435_vm5, %v6263_v40 }
 0x83c   : > { %4063 = vmatpush.bf16.msrb.mxu0 %v8038_v37  ;;  %4467 = vmatpush.bf16.msrb.mxu2 %v7923_v55 }
 0x83e   : > { %v3248_v33 = vpop.f32.mrf.mxu0  ;;  %v3453_v44 = vpop.f32.mrf.mxu3 }
 0x83f   : > { %v3249_v50 = vadd.f32 %v3248_v33, %v3195_v6  ;;  %v6264_v6 = vld [vmem:[%s8270_s9 + $0xf8] sm:$0xff]  ;;  %v3868_v41 = vpop.f32.mrf.mxu1 }
 0x840   : > { %4468 = vmatpush.bf16.msrb.mxu2 %v7931_v43 }
 0x841   : > { %v8028_v45 = vadd.f32 %v3380_v60, %v3249_v50 }
 0x846   : > { %v3455_v59 = vpop.f32.mrf.mxu3 }
 0x847   : > { %v3465_v53 = vpack.c.bf16 %v3455_v59, %v3453_v44  ;;  %v3870_v42 = vpop.f32.mrf.mxu1 }
 0x848   : > { %v3884_v1 = vpack.c.bf16 %v3870_v42, %v3868_v41  ;;  %v3250_v42 = vpop.f32.mrf.mxu0 }
 0x849   : > { %5786 = vmatmul.msk.bf16.gmra.mxu0 %vm2501_vm6, %v3465_v53 }
 0x84a   : > { %5917 = vmatmul.msk.bf16.gmra.mxu2 %vm2501_vm6, %v3884_v1 }
 0x84b   : > { %5947 = vmatmul.msk.bf16.gmra.mxu3 %vm2435_vm5, %v6264_v6 }
 0x84e   : > { %v3458_v32 = vpop.f32.mrf.mxu3 }
 0x84f   : > { %v3873_v62 = vpop.f32.mrf.mxu1 }
 0x856   : > { %v3460_v16 = vpop.f32.mrf.mxu3 }
 0x857   : > { %v3466_v20 = vpack.c.bf16 %v3460_v16, %v3458_v32  ;;  %v3875_v0 = vpop.f32.mrf.mxu1 }
 0x858   : > { %v3885_v61 = vpack.c.bf16 %v3875_v0, %v3873_v62 }
 0x859   : > { %5787 = vmatmul.msk.bf16.gmra.mxu0 %vm2501_vm6, %v3466_v20 }
 0x85a   : > { %5918 = vmatmul.msk.bf16.gmra.mxu2 %vm2501_vm6, %v3885_v61 }
 0x85b   : > { %6012 = vmatmul.msk.bf16.vlgmr.msra.gmra.mxu3 %vm1095_vm3, %v6273_v56 }
 0x85c   : > { %4360 = vmatpush.bf16.msra.mxu3 %v7953_v63 }
 0x85e   : > { %v3723_v11 = vpop.f32.mrf.mxu3 }
 0x85f   : > { %v3878_v9 = vpop.f32.mrf.mxu1 }
 0x864   : > { %v3645_v44 = vpop.f32.mrf.mxu2 }
 0x866   : > { %v3725_v3 = vpop.f32.mrf.mxu3 }
 0x867   : > { %v3743_v4 = vpack.c.bf16 %v3725_v3, %v3723_v11  ;;  %v3880_v2 = vpop.f32.mrf.mxu1  ;;  %v3236_v11 = vadd.f32 %v7967_v22, %v7893_v15 }
 0x868   : > { %v3886_v57 = vpack.c.bf16 %v3880_v2, %v3878_v9 }
 0x869   : > { %5872 = vmatmul.msk.bf16.vlgmr.msra.gmra.mxu0 %vm2501_vm6, %v3743_v4  ;;  %v3386_v4 = vadd.f32 %v7951_v17, %v3236_v11 }
 0x86a   : > { %4300 = vmatpush.bf16.msra.mxu0 %v7953_v63  ;;  %5919 = vmatmul.msk.bf16.gmra.mxu2 %vm2501_vm6, %v3886_v57 }
 0x86c   : > { %v8074_v48 = vpop.f32.mrf.mxu2 }
 0x86e   : > { %v3728_v35 = vpop.f32.mrf.mxu3 }
 0x86f   : > { %v4143_v19 = vpop.f32.mrf.mxu1 }
 0x876   : > { %v3730_v54 = vpop.f32.mrf.mxu3 }
 0x877   : > { %v3744_v25 = vpack.c.bf16 %v3730_v54, %v3728_v35  ;;  %v4145_v40 = vpop.f32.mrf.mxu1 }
 0x878   : > { %v4163_v34 = vpack.c.bf16 %v4145_v40, %v4143_v19 }
 0x879   : > { %5873 = vmatmul.msk.bf16.gmra.mxu0 %vm2501_vm6, %v3744_v25 }
 0x87a   : > { %6004 = vmatmul.msk.bf16.vlgmr.msra.gmra.mxu2 %vm2501_vm6, %v4163_v34 }
 0x87b   : > { %4557 = vmatpush.bf16.msra.mxu2 %v8011_v12 }
 0x87e   : > { %v3733_v18 = vpop.f32.mrf.mxu3 }
 0x87f   : > { %v4148_v50 = vpop.f32.mrf.mxu1  ;;  %4558 = vmatpush.bf16.msra.mxu2 %v6259_v10 }
 0x886   : > { %v3735_v60 = vpop.f32.mrf.mxu3 }
 0x887   : > { %v3745_v33 = vpack.c.bf16 %v3735_v60, %v3733_v18  ;;  %v4150_v59 = vpop.f32.mrf.mxu1  ;;  %v3650_v41 = vpop.f32.mrf.mxu2 }
 0x888   : > { %v4164_v53 = vpack.c.bf16 %v4150_v59, %v4148_v50 }
 0x889   : > { %5874 = vmatmul.msk.bf16.gmra.mxu0 %vm2501_vm6, %v3745_v33 }
 0x88a   : > { %6005 = vmatmul.msk.bf16.gmra.mxu2 %vm2501_vm6, %v4164_v53 }
 0x88e   : > { %v3738_v28 = vpop.f32.mrf.mxu3 }
 0x88f   : > { %v4153_v32 = vpop.f32.mrf.mxu1  ;;  %v8078_v1 = vpop.f32.mrf.mxu2 }
 0x896   : > { %v3740_v6 = vpop.f32.mrf.mxu3 }
 0x897   : > { %v3746_v55 = vpack.c.bf16 %v3740_v6, %v3738_v28  ;;  %v4155_v16 = vpop.f32.mrf.mxu1 }
 0x898   : > { %v4165_v12 = vpack.c.bf16 %v4155_v16, %v4153_v32 }
 0x899   : > { %5875 = vmatmul.msk.bf16.gmra.mxu0 %vm2501_vm6, %v3746_v55 }
 0x89a   : > { %6006 = vmatmul.msk.bf16.gmra.mxu2 %vm2501_vm6, %v4165_v12 }
 0x89d   : > { %v3655_v61 = vpop.f32.mrf.mxu2 }
 0x89e   : > { %v4003_v43 = vpop.f32.mrf.mxu3 }
 0x89f   : > { %v4158_v3 = vpop.f32.mrf.mxu1 }
 0x8a5   : > { %v8090_v2 = vpop.f32.mrf.mxu2 }
 0x8a6   : > { %v3505_v20 = vpop.f32.mrf.mxu0  ;;  %v4005_v10 = vpop.f32.mrf.mxu3 }
 0x8a7   : > { %v3525_v56 = vadd.f32 %v3505_v20, %v7961_v36  ;;  %v4023_v62 = vpack.c.bf16 %v4005_v10, %v4003_v43  ;;  %v4160_v57 = vpop.f32.mrf.mxu1  ;;  %v3251_v43 = vadd.f32 %v3250_v42, %v7965_v24 }
 0x8a8   : > { %v4166_v54 = vpack.c.bf16 %v4160_v57, %v4158_v3 }
 0x8a9   : > { %v3665_v0 = vadd.f32 %v3645_v44, %v3525_v56  ;;  %5960 = vmatmul.msk.bf16.vlgmr.msrb.gmra.mxu0 %vm2501_vm6, %v4023_v62  ;;  %v3392_v12 = vadd.f32 %v8066_v26, %v3251_v43  ;;  %v6274_v62 = vld [vmem:[%s8271_s10 + $0x8] sm:$0xff] }
 0x8aa   : > { %4334 = vmatpush.bf16.msrb.mxu0 %v7808_v7  ;;  %6007 = vmatmul.msk.bf16.gmra.mxu2 %vm2501_vm6, %v4166_v54 }
 0x8ad   : > { %v3660_v17 = vpop.f32.mrf.mxu2 }
 0x8ae   : > { %v3507_v9 = vpop.f32.mrf.mxu0  ;;  %v4008_v35 = vpop.f32.mrf.mxu3  ;;  %4335 = vmatpush.bf16.msrb.mxu0 %v7819_v38 }
 0x8af   : > { %v8088_v36 = vadd.f32 %v3507_v9, %v3386_v4 }
 0x8b5   : > { %v3662_v40 = vpop.f32.mrf.mxu2 }
 0x8b6   : > { %v3510_v15 = vpop.f32.mrf.mxu0  ;;  %v4010_v22 = vpop.f32.mrf.mxu3 }
 0x8b7   : > { %v3527_v25 = vadd.f32 %v3510_v15, %v7979_v14  ;;  %v4024_v19 = vpack.c.bf16 %v4010_v22, %v4008_v35 }
 0x8b9   : > { %v3667_v7 = vadd.f32 %v3650_v41, %v3527_v25  ;;  %5961 = vmatmul.msk.bf16.gmra.mxu0 %vm2501_vm6, %v4024_v19 }
 0x8bd   : > { %v3925_v14 = vpop.f32.mrf.mxu2 }
 0x8be   : > { %v8095_v18 = vpop.f32.mrf.mxu0  ;;  %v4013_v38 = vpop.f32.mrf.mxu3 }
 0x8c5   : > { %v3927_v53 = vpop.f32.mrf.mxu2 }
 0x8c6   : > { %v3515_v34 = vpop.f32.mrf.mxu0  ;;  %v4015_v60 = vpop.f32.mrf.mxu3 }
 0x8c7   : > { %v3529_v33 = vadd.f32 %v3515_v34, %v7990_v27  ;;  %v4025_v44 = vpack.c.bf16 %v4015_v60, %v4013_v38 }
 0x8c9   : > { %v3669_v50 = vadd.f32 %v3655_v61, %v3529_v33  ;;  %5962 = vmatmul.msk.bf16.gmra.mxu0 %vm2501_vm6, %v4025_v44 }
 0x8cd   : > { %v3930_v27 = vpop.f32.mrf.mxu2 }
 0x8ce   : > { %v8099_v28 = vpop.f32.mrf.mxu0  ;;  %v4018_v59 = vpop.f32.mrf.mxu3 }
 0x8d5   : > { %v3932_v61 = vpop.f32.mrf.mxu2 }
 0x8d6   : > { %v3520_v6 = vpop.f32.mrf.mxu0  ;;  %v4020_v55 = vpop.f32.mrf.mxu3 }
 0x8d7   : > { %v3531_v41 = vadd.f32 %v3520_v6, %v8028_v45  ;;  %v4026_v32 = vpack.c.bf16 %v4020_v55, %v4018_v59 }
 0x8d9   : > { %v3671_v16 = vadd.f32 %v3660_v17, %v3531_v41  ;;  %5963 = vmatmul.msk.bf16.gmra.mxu0 %vm2501_vm6, %v4026_v32  ;;  %v8122_v41 = vld [vmem:[%s8273_s12] ss:$0 sm:$0xff] }
 0x8dd   : > { %v3935_v42 = vpop.f32.mrf.mxu2 }
 0x8de   : > { %v3522_v20 = vpop.f32.mrf.mxu0 }
 0x8df   : > { %v3532_v10 = vadd.f32 %v3522_v20, %v3392_v12 }
 0x8e1   : > { %v3672_v56 = vadd.f32 %v3662_v40, %v3532_v10 }
 0x8e5   : > { %v3937_v35 = vpop.f32.mrf.mxu2 }
 0x8e6   : > { %v3785_v11 = vpop.f32.mrf.mxu0 }
 0x8e7   : > { %v3805_v3 = vadd.f32 %v3785_v11, %v3665_v0 }
 0x8e9   : > { %v3945_v45 = vadd.f32 %v3925_v14, %v3805_v3  ;;  %6019 = vmatmul.msk.bf16.vlgmr.msra.gmra.mxu0 %vm1095_vm3, %v6274_v62 }
 0x8ea   : > { %4377 = vmatpush.bf16.msra.mxu0 %v7789_v21 }
 0x8ed   : > { %v3940_v54 = vpop.f32.mrf.mxu2 }
 0x8ee   : > { %v3787_v24 = vpop.f32.mrf.mxu0  ;;  %4378 = vmatpush.bf16.msra.mxu0 %v7801_v47 }
 0x8f5   : > { %v8111_v0 = vpop.f32.mrf.mxu2 }
 0x8f6   : > { %v3790_v26 = vpop.f32.mrf.mxu0 }
 0x8f7   : > { %v3807_v4 = vadd.f32 %v3790_v26, %v3667_v7  ;;  %v3666_v7 = vadd.f32 %v8074_v48, %v8088_v36 }
 0x8f9   : > { %v3947_v9 = vadd.f32 %v3930_v27, %v3807_v4  ;;  %v3806_v14 = vadd.f32 %v3787_v24, %v3666_v7 }
 0x8fb   : > { %v3946_v6 = vadd.f32 %v3927_v53, %v3806_v14 }
 0x8fd   : > { %v4205_v40 = vpop.f32.mrf.mxu2 }
 0x8fe   : > { %v3792_v57 = vpop.f32.mrf.mxu0 }
 0x905   : > { %v4207_v47 = vpop.f32.mrf.mxu2 }
 0x906   : > { %v3795_v15 = vpop.f32.mrf.mxu0 }
 0x907   : > { %v3809_v22 = vadd.f32 %v3795_v15, %v3669_v50  ;;  %v3241_v50 = vadd.f32 %v7981_v13, %v7904_v23 }
 0x909   : > { %v3949_v25 = vadd.f32 %v3935_v42, %v3809_v22 }
 0x90d   : > { %v4210_v59 = vpop.f32.mrf.mxu2 }
 0x90e   : > { %v3797_v19 = vpop.f32.mrf.mxu0 }
 0x915   : > { %v4212_v53 = vpop.f32.mrf.mxu2 }
 0x916   : > { %v3800_v17 = vpop.f32.mrf.mxu0 }
 0x917   : > { %v3811_v38 = vadd.f32 %v3800_v17, %v3671_v16  ;;  %v3388_v16 = vadd.f32 %v7976_v58, %v3241_v50  ;;  %v3246_v58 = vadd.f32 %v7994_v5, %v7938_v52 }
 0x919   : > { %v3951_v21 = vadd.f32 %v3940_v54, %v3811_v38  ;;  %v3528_v36 = vadd.f32 %v8095_v18, %v3388_v16  ;;  %v3390_v26 = vadd.f32 %v7992_v31, %v3246_v58  ;;  %v4276_v31 = vpop.f32.mrf.mxu3  ;;  %v6282_v58 = vld [vmem:[%s8274_s13] sm:$0xff] }
 0x91b   : > { %v3668_v10 = vadd.f32 %v8078_v1, %v3528_v36  ;;  %v3530_v15 = vadd.f32 %v8099_v28, %v3390_v26 }
 0x91d   : > { %v3808_v11 = vadd.f32 %v3792_v57, %v3668_v10  ;;  %v4215_v18 = vpop.f32.mrf.mxu2  ;;  %v3670_v17 = vadd.f32 %v8090_v2, %v3530_v15  ;;  %v6276_v10 = vld [vmem:[%s8271_s10 + $0x18] sm:$0xff] }
 0x91e   : > { %v3802_v34 = vpop.f32.mrf.mxu0 }
 0x91f   : > { %v8113_v60 = vadd.f32 %v3802_v34, %v3672_v56  ;;  %v3948_v3 = vadd.f32 %v3932_v61, %v3808_v11  ;;  %v3810_v61 = vadd.f32 %v3797_v19, %v3670_v17  ;;  %v6283_v11 = vld [vmem:[%s8274_s13 + $0x8] sm:$0xff] }
 0x925   : > { %v4217_v38 = vpop.f32.mrf.mxu2 }
 0x926   : > { %v4065_v33 = vpop.f32.mrf.mxu0 }
 0x927   : > { %v4085_v44 = vadd.f32 %v4065_v33, %v3945_v45 }
 0x929   : > { %v4225_v55 = vadd.f32 %v4205_v40, %v4085_v44  ;;  %v3950_v40 = vadd.f32 %v3937_v35, %v3810_v61  ;;  %v3952_v35 = vadd.f32 %v8111_v0, %v8113_v60  ;;  %v6275_v0 = vld [vmem:[%s8271_s10 + $0x10] sm:$0xff]  ;;  %v6281_v60 = vld [vmem:[%s8271_s10 + $0x40] sm:$0xff] }
 0x92b   : > { %v4237_v27 = vadd.f32 %v8122_v41, %v4225_v55  ;;  %v4278_v55 = vpop.f32.mrf.mxu3 }
 0x92d   : > { %v4245_v20 = vmax.f32 %v4237_v27, 0.0  ;;  %v4220_v14 = vpop.f32.mrf.mxu2 }
 0x92e   : > { %v4067_v32 = vpop.f32.mrf.mxu0 }
 0x92f   : > { %v4086_v43 = vadd.f32 %v4067_v32, %v3946_v6 }
 0x931   : > { %v4226_v48 = vadd.f32 %v4207_v47, %v4086_v43 }
 0x933   : > { %v4238_v12 = vadd.f32 %v8122_v41, %v4226_v48 }
 0x935   : > { %v4246_v23 = vmax.f32 %v4238_v12, 0.0  ;;  %v4222_v16 = vpop.f32.mrf.mxu2 }
 0x936   : > { %v4070_v13 = vpop.f32.mrf.mxu0 }
 0x937   : > { %v8129_v56 = vpack.c.bf16 %v4246_v23, %v4245_v20  ;;  %v4087_v62 = vadd.f32 %v4070_v13, %v3947_v9 }
 0x939   : > { %v4227_v45 = vadd.f32 %v4210_v59, %v4087_v62  ;;  %v6278_v62 = vld [vmem:[%s8271_s10 + $0x28] sm:$0xff] }
 0x93b   : > { %v4239_v4 = vadd.f32 %v8122_v41, %v4227_v45 }
 0x93d   : > { %v4247_v22 = vmax.f32 %v4239_v4, 0.0 }
 0x93e   : > { %v4072_v24 = vpop.f32.mrf.mxu0 }
 0x93f   : > { %v4088_v42 = vadd.f32 %v4072_v24, %v3948_v3  ;;  %v4452_v3 = vpop.f32.mrf.mxu1 }
 0x941   : > { %v4228_v54 = vadd.f32 %v4212_v53, %v4088_v42 }
 0x943   : > { %v4240_v1 = vadd.f32 %v8122_v41, %v4228_v54 }
 0x945   : > { %v4248_v9 = vmax.f32 %v4240_v1, 0.0 }
 0x946   : > { %v4075_v57 = vpop.f32.mrf.mxu0 }
 0x947   : > { %v4254_v52 = vpack.c.bf16 %v4248_v9, %v4247_v22  ;;  %v4089_v5 = vadd.f32 %v4075_v57, %v3949_v25  ;;  %v4281_v25 = vpack.c.bf16 %v4278_v55, %v4276_v31  ;;  %v4454_v45 = vpop.f32.mrf.mxu1  ;;  %v4723_v55 = vlaneseq }
 0x948   : > { %v4457_v24 = vpack.c.bf16 %v4454_v45, %v4452_v3 }
 0x949   : > { %v4229_v34 = vadd.f32 %v4215_v18, %v4089_v5  ;;  %6021 = vmatmul.msk.bf16.vlgmr.msrb.gmra.mxu0 %vm2501_vm6, %v4281_v25 }
 0x94a   : > { %4422 = vmatpush.bf16.msrb.mxu0 %v7913_v49  ;;  %6045 = vmatmul.msk.bf16.vlgmr.msrb.gmra.mxu2 %vm2501_vm6, %v4457_v24 }
 0x94b   : > { %v4241_v7 = vadd.f32 %v8122_v41, %v4229_v34  ;;  %4647 = vmatpush.bf16.msrb.mxu2 %v8058_v30 }
 0x94d   : > { %v4249_v59 = vmax.f32 %v4241_v7, 0.0 }
 0x94e   : > { %v4077_v47 = vpop.f32.mrf.mxu0  ;;  %4423 = vmatpush.bf16.msrb.mxu0 %v7943_v51  ;;  %v6279_v51 = vld [vmem:[%s8271_s10 + $0x30] sm:$0xff] }
 0x94f   : > { %v4090_v33 = vadd.f32 %v4077_v47, %v3950_v40  ;;  %6060 = vmatmul.msk.bf16.vlgmr.msra.gmra.mxu1 %vm1095_vm3, %v6279_v51  ;;  %4648 = vmatpush.bf16.msrb.mxu2 %v8064_v46 }
 0x951   : > { %v4230_v44 = vadd.f32 %v4217_v38, %v4090_v33 }
 0x953   : > { %v4242_v28 = vadd.f32 %v8122_v41, %v4230_v44 }
 0x955   : > { %v4250_v50 = vmax.f32 %v4242_v28, 0.0 }
 0x956   : > { %v4080_v6 = vpop.f32.mrf.mxu0 }
 0x957   : > { %v4255_v2 = vpack.c.bf16 %v4250_v50, %v4249_v59  ;;  %v4091_v32 = vadd.f32 %v4080_v6, %v3951_v21 }
 0x959   : > { %v4231_v19 = vadd.f32 %v4220_v14, %v4091_v32 }
 0x95b   : > { %v4243_v48 = vadd.f32 %v8122_v41, %v4231_v19 }
 0x95d   : > { %v4251_v21 = vmax.f32 %v4243_v48, 0.0 }
 0x95e   : > { %v4082_v43 = vpop.f32.mrf.mxu0 }
 0x95f   : > { %v4092_v27 = vadd.f32 %v4082_v43, %v3952_v35  ;;  %6076 = vmatmul.msk.bf16.vlgmr.msrb.gmra.mxu1 %vm1095_vm3, %v6281_v60  ;;  %v8213_v35 = vand.u32 127, %v4723_v55 }
 0x961   : > { %v4232_v36 = vadd.f32 %v4222_v16, %v4092_v27  ;;  %vm4765_vm7 = vcmp.lt.s32.totalorder %v8213_v35, 3 }
 0x963   : > { %v4244_v12 = vadd.f32 %v8122_v41, %v4232_v36 }
 0x965   : > { %v4252_v20 = vmax.f32 %v4244_v12, 0.0 }
 0x966   : > { %v4302_v23 = vpop.f32.mrf.mxu0 }
 0x967   : > { %v4256_v13 = vpack.c.bf16 %v4252_v20, %v4251_v21 }
 0x96e   : > { %v4304_v53 = vpop.f32.mrf.mxu0 }
 0x96f   : > { %v4307_v49 = vpack.c.bf16 %v4304_v53, %v4302_v23 }
 0x971   : > { %6020 = vmatmul.msk.bf16.vlgmr.msrb.gmra.mxu3 %vm2501_vm6, %v4307_v49 }
 0x972   : > { %4405 = vmatpush.bf16.msrb.mxu3 %v7953_v63 }
 0x981   : > { %6028 = vmatmul.msk.bf16.vlgmr.msra.gmra.mxu3 %vm1095_vm3, %v6275_v0 }
 0x982   : > { %4495 = vmatpush.bf16.msra.mxu3 %v7953_v63 }
 0x991   : > { %6036 = vmatmul.msk.bf16.vlgmr.msrb.gmra.mxu3 %vm1095_vm3, %v6276_v10 }
 0x992   : > { %4585 = vmatpush.bf16.msrb.mxu3 %v7953_v63  ;;  %v6280_v63 = vld [vmem:[%s8271_s10 + $0x38] sm:$0xff] }
 0x9a1   : > { %6052 = vmatmul.msk.bf16.vlgmr.msra.gmra.mxu3 %vm1095_vm3, %v6278_v62 }
 0x9a2   : > { %4700 = vmatpush.bf16.msra.mxu3 %v6283_v11 }
 0x9a6   : > { %4701 = vmatpush.bf16.msra.mxu3 %v6282_v58 }
 0x9b1   : > { %6068 = vmatmul.msk.bf16.vlgmr.msrb.gmra.mxu3 %vm1095_vm3, %v6280_v63 }
 0x9c1   : > { %6086 = vmatmul.msk.bf16.vlgmr.msra.gmra.mxu3 %vm2501_vm6, %v8129_v56 }
 0x9cc   : > { %v4542_v42 = vpop.f32.mrf.mxu1 }
 0x9d1   : > { %6087 = vmatmul.msk.bf16.gmra.mxu3 %vm2501_vm6, %v4254_v52 }
 0x9d4   : > { %v4544_v26 = vpop.f32.mrf.mxu1 }
 0x9d5   : > { %v4547_v56 = vpack.c.bf16 %v4544_v26, %v4542_v42 }
 0x9d7   : > { %6061 = vmatmul.msk.bf16.vlgmr.msra.gmra.mxu2 %vm2501_vm6, %v4547_v56 }
 0x9dc   : > { %v4632_v54 = vpop.f32.mrf.mxu1 }
 0x9e1   : > { %6088 = vmatmul.msk.bf16.gmra.mxu3 %vm2501_vm6, %v4255_v2 }
 0x9e4   : > { %v4634_v1 = vpop.f32.mrf.mxu1 }
 0x9e5   : > { %v4637_v22 = vpack.c.bf16 %v4634_v1, %v4632_v54 }
 0x9e7   : > { %6077 = vmatmul.msk.bf16.vlgmr.msrb.gmra.mxu2 %vm2501_vm6, %v4637_v22 }
 0x9f1   : > { %6089 = vmatmul.msk.bf16.gmra.mxu3 %vm2501_vm6, %v4256_v13 }
 0x9f4   : > { %v8189_v18 = vpop.f32.mrf.mxu3 }
 0x9fc   : > { %v8191_v4 = vpop.f32.mrf.mxu3 }
 0xa04   : > { %v4362_v15 = vpop.f32.mrf.mxu3 }
 0xa0c   : > { %v4364_v9 = vpop.f32.mrf.mxu3 }
 0xa0d   : > { %v4367_v57 = vpack.c.bf16 %v4364_v9, %v4362_v15 }
 0xa0f   : > { %6029 = vmatmul.msk.bf16.vlgmr.msra.gmra.mxu0 %vm2501_vm6, %v4367_v57 }
 0xa10   : > { %4512 = vmatpush.bf16.msra.mxu0 %v8004_v39 }
 0xa14   : > { %v4407_v30 = vpop.f32.mrf.mxu3  ;;  %4513 = vmatpush.bf16.msra.mxu0 %v8016_v29  ;;  %v8206_v29 = vld [vmem:[%s8275_s14] ss:$0 sm:$0xff] }
 0xa1c   : > { %v4409_v46 = vpop.f32.mrf.mxu3 }
 0xa1d   : > { %v4412_v17 = vpack.c.bf16 %v4409_v46, %v4407_v30  ;;  %v4337_v30 = vpop.f32.mrf.mxu0 }
 0xa1f   : > { %6037 = vmatmul.msk.bf16.vlgmr.msrb.gmra.mxu0 %vm2501_vm6, %v4412_v17 }
 0xa20   : > { %4602 = vmatpush.bf16.msrb.mxu0 %v8021_v8 }
 0xa24   : > { %v4497_v52 = vpop.f32.mrf.mxu3  ;;  %4603 = vmatpush.bf16.msrb.mxu0 %v8038_v37 }
 0xa2c   : > { %v4499_v5 = vpop.f32.mrf.mxu3 }
 0xa2d   : > { %v4502_v61 = vpack.c.bf16 %v4499_v5, %v4497_v52 }
 0xa2f   : > { %6053 = vmatmul.msk.bf16.vlgmr.msra.gmra.mxu0 %vm2501_vm6, %v4502_v61 }
 0xa30   : > { %4799 = vmatpush.bf16.msra.mxu0 %v6283_v11 }
 0xa34   : > { %v4587_v38 = vpop.f32.mrf.mxu3  ;;  %4800 = vmatpush.bf16.msra.mxu0 %v6282_v58 }
 0xa3c   : > { %v4589_v39 = vpop.f32.mrf.mxu3 }
 0xa3d   : > { %v4592_v40 = vpack.c.bf16 %v4589_v39, %v4587_v38 }
 0xa3f   : > { %6069 = vmatmul.msk.bf16.vlgmr.msrb.gmra.mxu0 %vm2501_vm6, %v4592_v40 }
 0xa44   : > { %v4703_v8 = vpop.f32.mrf.mxu3 }
 0xa45   : > { %v4704_v37 = vadd.f32 %v8206_v29, %v4703_v8 }
 0xa47   : > { %v4725_v34 = vsub.f32 0.0, %v4704_v37 }
 0xa49   : > { %v4733_v47 = vmul.f32 1.442695, %v4725_v34  ;;  %v4339_v34 = vpop.f32.mrf.mxu0 }
 0xa4b   : > { %6344 = vpow2.f32 %v4733_v47 }
 0xa4c   : > { %v4705_v31 = vpop.f32.mrf.mxu3 }
 0xa4d   : > { %v4706_v33 = vadd.f32 %v8206_v29, %v4705_v31 }
 0xa4f   : > { %v4726_v7 = vsub.f32 0.0, %v4706_v33 }
 0xa51   : > { %v4735_v44 = vmul.f32 1.442695, %v4726_v7  ;;  %v6345_v28 = vpop.eup %6344 }
 0xa52   : > { %v4749_v50 = vadd.f32 1.0, %v6345_v28 }
 0xa53   : > { %6346 = vpow2.f32 %v4735_v44 }
 0xa54   : > { %v4708_v14 = vpop.f32.mrf.mxu3  ;;  %6348 = vrcp.f32 %v4749_v50 }
 0xa55   : > { %v4709_v59 = vadd.f32 %v8206_v29, %v4708_v14 }
 0xa57   : > { %v4727_v6 = vsub.f32 0.0, %v4709_v59 }
 0xa59   : > { %v6347_v2 = vpop.eup %6346  ;;  %v4737_v32 = vmul.f32 1.442695, %v4727_v6 }
 0xa5a   : > { %v4750_v25 = vadd.f32 1.0, %v6347_v2  ;;  %v6349_v27 = vpop.eup %6348  ;;  %v4470_v2 = vpop.f32.mrf.mxu2 }
 0xa5b   : > { %v4766_v21 = vsel %vm4765_vm7, %v6349_v27, %v4704_v37  ;;  %v4338_v27 = vadd.f32 %v4337_v30, %v8189_v18 }
 0xa5c   : > { %6350 = vrcp.f32 %v4750_v25  ;;  %v4710_v19 = vpop.f32.mrf.mxu3 }
 0xa5d   : > { %6352 = vpow2.f32 %v4737_v32  ;;  %v4711_v43 = vadd.f32 %v8206_v29, %v4710_v19 }
 0xa5f   : > { %v4728_v16 = vsub.f32 0.0, %v4711_v43 }
 0xa61   : > { %v4739_v48 = vmul.f32 1.442695, %v4728_v16 }
 0xa62   : > { %v6351_v36 = vpop.eup %6350  ;;  %v4472_v25 = vpop.f32.mrf.mxu2 }
 0xa63   : > { %v6353_v12 = vpop.eup %6352  ;;  %v4767_v20 = vsel %vm4765_vm7, %v6351_v36, %v4706_v33  ;;  %6354 = vpow2.f32 %v4739_v48 }
 0xa64   : > { %v6287_v23 = vpack.c.bf16 %v4767_v20, %v4766_v21  ;;  %v4713_v13 = vpop.f32.mrf.mxu3  ;;  %v4751_v49 = vadd.f32 1.0, %v6353_v12  ;;  %v4340_v20 = vadd.f32 %v4339_v34, %v8191_v4 }
 0xa65   : > { %v4714_v53 = vadd.f32 %v8206_v29, %v4713_v13 }
 0xa66   : > { %6288 = vst [vmem:[%s8222_s23] sm:$0xff] %v6287_v23   ;;  %6356 = vrcp.f32 %v4751_v49 }
 0xa67   : > { %v4729_v51 = vsub.f32 0.0, %v4714_v53 }
 0xa69   : > { %v6355_v0 = vpop.eup %6354  ;;  %v4741_v60 = vmul.f32 1.442695, %v4729_v51 }
 0xa6a   : > { %v4752_v10 = vadd.f32 1.0, %v6355_v0 }
 0xa6c   : > { %6358 = vrcp.f32 %v4752_v10  ;;  %v4715_v62 = vpop.f32.mrf.mxu3  ;;  %v6357_v63 = vpop.eup %6356 }
 0xa6d   : > { %6360 = vpow2.f32 %v4741_v60  ;;  %v4716_v11 = vadd.f32 %v8206_v29, %v4715_v62  ;;  %v4768_v42 = vsel %vm4765_vm7, %v6357_v63, %v4709_v59 }
 0xa6f   : > { %v4730_v58 = vsub.f32 0.0, %v4716_v11 }
 0xa71   : > { %v4743_v3 = vmul.f32 1.442695, %v4730_v58 }
 0xa72   : > { %v6359_v45 = vpop.eup %6358 }
 0xa73   : > { %v6361_v24 = vpop.eup %6360  ;;  %v4769_v26 = vsel %vm4765_vm7, %v6359_v45, %v4711_v43  ;;  %6362 = vpow2.f32 %v4743_v3  ;;  %v4560_v43 = vpop.f32.mrf.mxu2 }
 0xa74   : > { %v6292_v56 = vpack.c.bf16 %v4769_v26, %v4768_v42  ;;  %v4718_v54 = vpop.f32.mrf.mxu3  ;;  %v4753_v1 = vadd.f32 1.0, %v6361_v24 }
 0xa75   : > { %v4719_v15 = vadd.f32 %v8206_v29, %v4718_v54 }
 0xa76   : > { %6309 = vst [vmem:[%s8222_s23 + $0x8] sm:$0xff] %v6292_v56   ;;  %6364 = vrcp.f32 %v4753_v1 }
 0xa77   : > { %v4731_v22 = vsub.f32 0.0, %v4719_v15 }
 0xa79   : > { %v6363_v9 = vpop.eup %6362  ;;  %v4745_v57 = vmul.f32 1.442695, %v4731_v22 }
 0xa7a   : > { %v4754_v46 = vadd.f32 1.0, %v6363_v9 }
 0xa7b   : > { %v4562_v36 = vpop.f32.mrf.mxu2 }
 0xa7c   : > { %6366 = vrcp.f32 %v4754_v46  ;;  %v4720_v17 = vpop.f32.mrf.mxu3  ;;  %v6365_v61 = vpop.eup %6364 }
 0xa7d   : > { %6368 = vpow2.f32 %v4745_v57  ;;  %v4721_v52 = vadd.f32 %v8206_v29, %v4720_v17  ;;  %v4770_v8 = vsel %vm4765_vm7, %v6365_v61, %v4714_v53 }
 0xa7f   : > { %v4732_v5 = vsub.f32 0.0, %v4721_v52 }
 0xa81   : > { %v4747_v38 = vmul.f32 1.442695, %v4732_v5 }
 0xa82   : > { %v6367_v39 = vpop.eup %6366 }
 0xa83   : > { %v6369_v40 = vpop.eup %6368  ;;  %v4771_v37 = vsel %vm4765_vm7, %v6367_v39, %v4716_v11  ;;  %6370 = vpow2.f32 %v4747_v38  ;;  %v4650_v0 = vpop.f32.mrf.mxu2 }
 0xa84   : > { %v6297_v47 = vpack.c.bf16 %v4771_v37, %v4770_v8  ;;  %v4755_v31 = vadd.f32 1.0, %v6369_v40 }
 0xa86   : > { %6310 = vst [vmem:[%s8222_s23 + $0x10] sm:$0xff] %v6297_v47   ;;  %6372 = vrcp.f32 %v4755_v31 }
 0xa89   : > { %v6371_v33 = vpop.eup %6370 }
 0xa8a   : > { %v4756_v7 = vadd.f32 1.0, %v6371_v33 }
 0xa8b   : > { %v4652_v45 = vpop.f32.mrf.mxu2 }
 0xa8c   : > { %6374 = vrcp.f32 %v4756_v7  ;;  %v4380_v44 = vpop.f32.mrf.mxu0  ;;  %v6373_v28 = vpop.eup %6372 }
 0xa8d   : > { %v4772_v59 = vsel %vm4765_vm7, %v6373_v28, %v4719_v15  ;;  %v4385_v48 = vadd.f32 %v4380_v44, %v4338_v27 }
 0xa92   : > { %v6375_v14 = vpop.eup %6374 }
 0xa93   : > { %v4773_v50 = vsel %vm4765_vm7, %v6375_v14, %v4721_v52 }
 0xa94   : > { %v6302_v6 = vpack.c.bf16 %v4773_v50, %v4772_v59  ;;  %v4382_v55 = vpop.f32.mrf.mxu0 }
 0xa95   : > { %v4386_v23 = vadd.f32 %v4382_v55, %v4340_v20 }
 0xa96   : > { %6311 = vst [vmem:[%s8222_s23 + $0x18] sm:$0xff] %v6302_v6  }
 0xa9c   : > { %v4425_v32 = vpop.f32.mrf.mxu0 }
 0xa9d   : > { %v4430_v12 = vadd.f32 %v4425_v32, %v4385_v48 }
 0xa9f   : > { %v4475_v13 = vadd.f32 %v4470_v2, %v4430_v12 }
 0xaa4   : > { %v4427_v19 = vpop.f32.mrf.mxu0 }
 0xaa5   : > { %v4431_v53 = vadd.f32 %v4427_v19, %v4386_v23 }
 0xaa7   : > { %v4476_v60 = vadd.f32 %v4472_v25, %v4431_v53 }
 0xaac   : > { %v4515_v16 = vpop.f32.mrf.mxu0 }
 0xaad   : > { %v4520_v49 = vadd.f32 %v4515_v16, %v4475_v13 }
 0xaaf   : > { %v4565_v10 = vadd.f32 %v4560_v43, %v4520_v49 }
 0xab4   : > { %v4517_v21 = vpop.f32.mrf.mxu0 }
 0xab5   : > { %v4521_v62 = vadd.f32 %v4517_v21, %v4476_v60 }
 0xab7   : > { %v4566_v58 = vadd.f32 %v4562_v36, %v4521_v62 }
 0xabc   : > { %v4605_v51 = vpop.f32.mrf.mxu0 }
 0xabd   : > { %v4610_v11 = vadd.f32 %v4605_v51, %v4565_v10 }
 0xabf   : > { %v4655_v63 = vadd.f32 %v4650_v0, %v4610_v11 }
 0xac1   : > { %v4657_v24 = vadd.f32 %v8122_v41, %v4655_v63 }
 0xac3   : > { %v4659_v26 = vmax.f32 %v4657_v24, 0.0 }
 0xac4   : > { %v4607_v3 = vpop.f32.mrf.mxu0 }
 0xac5   : > { %v4611_v18 = vadd.f32 %v4607_v3, %v4566_v58 }
 0xac7   : > { %v4656_v42 = vadd.f32 %v4652_v45, %v4611_v18 }
 0xac9   : > { %v4658_v4 = vadd.f32 %v8122_v41, %v4656_v42 }
 0xacb   : > { %v4660_v56 = vmax.f32 %v4658_v4, 0.0 }
 0xacd   : > { %v4661_v54 = vpack.c.bf16 %v4660_v56, %v4659_v26 }
 0xacf   : > { %6090 = vmatmul.msk.bf16.vlgmr.msra.gmra.mxu0 %vm2501_vm6, %v4661_v54 }
 0xb4c   : > { %v4802_v15 = vpop.f32.mrf.mxu0 }
 0xb4d   : > { %v4803_v1 = vadd.f32 %v8206_v29, %v4802_v15 }
 0xb4f   : > { %v4807_v22 = vsub.f32 0.0, %v4803_v1 }
 0xb51   : > { %v4809_v9 = vmul.f32 1.442695, %v4807_v22 }
 0xb53   : > { %6376 = vpow2.f32 %v4809_v9 }
 0xb54   : > { %v4804_v57 = vpop.f32.mrf.mxu0 }
 0xb55   : > { %v4805_v30 = vadd.f32 %v8206_v29, %v4804_v57 }
 0xb57   : > { %v4808_v46 = vsub.f32 0.0, %v4805_v30 }
 0xb59   : > { %v4811_v17 = vmul.f32 1.442695, %v4808_v46  ;;  %v6377_v52 = vpop.eup %6376 }
 0xb5a   : > { %v4813_v41 = vadd.f32 1.0, %v6377_v52 }
 0xb5b   : > { %6378 = vpow2.f32 %v4811_v17 }
 0xb5c   : > { %6380 = vrcp.f32 %v4813_v41 }
 0xb61   : > { %v6379_v5 = vpop.eup %6378 }
 0xb62   : > { %v4814_v61 = vadd.f32 1.0, %v6379_v5  ;;  %v6381_v38 = vpop.eup %6380 }
 0xb63   : > { %v4817_v40 = vsel %vm4765_vm7, %v6381_v38, %v4803_v1 }
 0xb64   : > { %6382 = vrcp.f32 %v4814_v61 }
 0xb6a   : > { %v6383_v39 = vpop.eup %6382 }
 0xb6b   : > { %v4818_v8 = vsel %vm4765_vm7, %v6383_v39, %v4805_v30 }
 0xb6c   : > { %v6307_v37 = vpack.c.bf16 %v4818_v8, %v4817_v40 }
 0xb6e   : > { %6312 = vst [vmem:[%s8222_s23 + $0x20] sm:$0xff] %v6307_v37  }
 0xb6f PF: > { %s27_s21 = sadd.s32 1, %s6390_s21  }
 0xb70   : > { %p24_p6 = scmp.ge.s32.totalorder %s27_s21, 4  }
 0xb72   :  { %26 = sbr.rel (!%p24_p6) target bundleno = 2 (0x2), region = 178 }

</bundles_post_ra>
